<compile_context>
chip_gen: v7x
topology: tpu7x:2x2x1
jax: 0.10.0
libtpu: 0.0.40
codegen_flags: <defaults>
</compile_context>

<pallas_src>
import jax
import jax.numpy as jnp
from jax import lax
from jax.experimental import pallas as pl
from jax.experimental.pallas import tpu as pltpu

N_EVALS = 30
N_UNITS = 30
N1_LAYERS = [80, 160, 320, 640, 320, 160, 80]
BN_EPS = 1e-5
SELU_ALPHA = 1.6732632423543772
SELU_SCALE = 1.0507009873554805

VEC_W = max(N1_LAYERS)                      # 640: width of the packed vector table
N_VEC_ROWS = 2 + 3 * len(N1_LAYERS) + 1     # 24 rows (multiple of 8)
N_WEIGHTS = len(N1_LAYERS) + 1              # 7 hidden + 1 output = 8

# bf16 apply of the BN scale/shift (stats stay f32).  Set False on v5e
# (no bf16 VPU path); on v6e/v7x it halves the dominant elementwise pass.
BN_APPLY_BF16 = True

_DIMS = [N_EVALS] + N1_LAYERS
WEIGHT_SHAPES = [(_DIMS[i], _DIMS[i + 1]) for i in range(len(N1_LAYERS))] \
    + [(_DIMS[-1], N_UNITS)]                # pre-transposed (in, out) shapes


def _batchnorm(h, gamma, beta, apply_dtype):
    """Training-mode BatchNorm1d.  Stats in f32; folded scale/shift applied
    in `apply_dtype` as a single multiply-add over the (B, F) tensor.

    NOTE: var = E[x^2] - mean^2 (single sweep, f32).  Post-SELU activations
    are near zero-mean so cancellation is benign here, and the pure-JAX
    reference uses the identical formula.
    """
    inv_n = 1.0 / h.shape[0]
    mean = jnp.sum(h, axis=0, keepdims=True) * inv_n
    ex2 = jnp.sum(h * h, axis=0, keepdims=True) * inv_n
    var = ex2 - mean * mean
    scale = gamma * lax.rsqrt(var + BN_EPS)
    shift = beta - mean * scale
    return (h.astype(apply_dtype) * scale.astype(apply_dtype)
            + shift.astype(apply_dtype))


def _selu(h):
    # Clamp before exp so the (discarded) positive branch cannot overflow.
    neg = SELU_ALPHA * (jnp.exp(jnp.minimum(h, 0.0)) - 1.0)
    return SELU_SCALE * jnp.where(h > 0, h, neg)


def _forward_math(x, get_weight, vec):
    """Shared forward math.  Used inside the kernel (get_weight waits on the
    layer's DMA and loads the VMEM scratch buffer) and as the pure-JAX
    reference (get_weight just returns the host array), so numerics match.

    get_weight(i): (in, out) bf16 matrix for layer i.
    vec:           (24, 640) f32 packed table of all 1-row parameters.
    """
    apply_dtype = jnp.bfloat16 if BN_APPLY_BF16 else jnp.float32

    h = x.astype(jnp.float32)
    # initial BatchNorm1d(N_EVALS): rows 0 (gamma), 1 (beta)
    h = _batchnorm(h, vec[0:1, :N_EVALS], vec[1:2, :N_EVALS], apply_dtype)

    row = 2
    for li, width in enumerate(N1_LAYERS):
        W = get_weight(li)                    # (in, out) bf16
        b = vec[row + 0:row + 1, :width]      # bias
        g = vec[row + 1:row + 2, :width]      # bn gamma
        bt = vec[row + 2:row + 3, :width]     # bn beta
        row += 3
        h = jnp.dot(h.astype(jnp.bfloat16), W,
                    preferred_element_type=jnp.float32) + b
        h = _selu(h)
        h = _batchnorm(h, g, bt, apply_dtype)

    outb = vec[row:row + 1, :N_UNITS]
    return jnp.dot(h.astype(jnp.bfloat16), get_weight(N_WEIGHTS - 1),
                   preferred_element_type=jnp.float32) + outb


def n1_kernel(*refs):
    # refs = [x, vec_table, W0_hbm..W7_hbm, o_ref, wbuf0..wbuf7, dma_sems]
    x_ref = refs[0]
    vec_ref = refs[1]
    w_hbm_refs = refs[2:2 + N_WEIGHTS]
    o_ref = refs[2 + N_WEIGHTS]
    w_bufs = refs[3 + N_WEIGHTS:3 + 2 * N_WEIGHTS]
    sem = refs[-1]

    # Kick off the whole weight stream immediately.  Layer i's matmul waits
    # only on its own weight, so layers i+1.. stream in behind the compute
    # (input BN + early small matmuls hide the bulk of the ~1 MB DMA).
    copies = []
    for i in range(N_WEIGHTS):
        cp = pltpu.make_async_copy(w_hbm_refs[i], w_bufs[i], sem.at[i])
        cp.start()
        copies.append(cp)

    def get_weight(i):
        copies[i].wait()          # just-in-time wait for this layer's weight
        return w_bufs[i][...]

    y = _forward_math(x_ref[...], get_weight, vec_ref[...])
    o_ref[...] = y.astype(o_ref.dtype)


def n1_forward(x, weights, vec):
    in_specs = (
        [pl.BlockSpec(memory_space=pltpu.MemorySpace.VMEM),   # x
         pl.BlockSpec(memory_space=pltpu.MemorySpace.VMEM)]   # packed vec table
        + [pl.BlockSpec(memory_space=pl.ANY)] * N_WEIGHTS     # weights stay in HBM
    )
    scratch_shapes = (
        [pltpu.VMEM(shape, jnp.bfloat16) for shape in WEIGHT_SHAPES]
        + [pltpu.SemaphoreType.DMA((N_WEIGHTS,))]
    )
    return pl.pallas_call(
        n1_kernel,
        out_shape=jax.ShapeDtypeStruct((x.shape[0], N_UNITS), jnp.float32),
        in_specs=in_specs,
        out_specs=pl.BlockSpec(memory_space=pltpu.MemorySpace.VMEM),
        scratch_shapes=scratch_shapes,
    )(x, vec, *weights)


def _pad_row(v):
    return jnp.pad(v, (0, VEC_W - v.shape[0]))


def init_params(key):
    """Deterministic init matching the torch module's parameter shapes.

    Linear: U(-1/sqrt(fan_in), 1/sqrt(fan_in)); BatchNorm: gamma=1, beta=0.
    Weights are pre-transposed to (in, out) and stored as bf16; all 1-row
    parameters are packed into a single (24, 640) f32 table.
    """
    dims = [N_EVALS] + N1_LAYERS
    weights = []
    rows = []
    # bn1 gamma / beta
    rows.append(jnp.ones((N_EVALS,), jnp.float32))
    rows.append(jnp.zeros((N_EVALS,), jnp.float32))
    # hidden layers
    for n in range(1, len(dims)):
        fan_in, fan_out = dims[n - 1], dims[n]
        key, k1, k2 = jax.random.split(key, 3)
        bound = fan_in ** -0.5
        W = jax.random.uniform(k1, (fan_out, fan_in), jnp.float32, -bound, bound)
        b = jax.random.uniform(k2, (fan_out,), jnp.float32, -bound, bound)
        weights.append(W.T.astype(jnp.bfloat16))           # pre-transposed (in, out)
        rows.append(b)                                      # bias
        rows.append(jnp.ones((fan_out,), jnp.float32))      # bn gamma
        rows.append(jnp.zeros((fan_out,), jnp.float32))     # bn beta
    # output layer: last hidden -> N_UNITS
    fan_in = dims[-1]
    key, k1, k2 = jax.random.split(key, 3)
    bound = fan_in ** -0.5
    Wo = jax.random.uniform(k1, (N_UNITS, fan_in), jnp.float32, -bound, bound)
    bo = jax.random.uniform(k2, (N_UNITS,), jnp.float32, -bound, bound)
    weights.append(Wo.T.astype(jnp.bfloat16))
    rows.append(bo)

    vec = jnp.stack([_pad_row(r) for r in rows])            # (24, 640) f32
    assert vec.shape == (N_VEC_ROWS, VEC_W)
    assert len(weights) == N_WEIGHTS
    for w, s in zip(weights, WEIGHT_SHAPES):
        assert w.shape == s
    return weights, vec


def n1_reference(x, weights, vec):
    """Pure-JAX reference of the same forward (same stored params / numerics)."""
    return _forward_math(x, lambda i: weights[i], vec)


if __name__ == "__main__":
    key = jax.random.PRNGKey(0)
    kx, kp = jax.random.split(key)

    B = 8
    x = jax.random.normal(kx, (B, N_EVALS), jnp.float32)
    weights, vec = init_params(kp)

    out = n1_forward(x, weights, vec)
    out = jax.block_until_ready(out)

    ref = n1_reference(x, weights, vec)
    assert out.shape == (B, N_UNITS)
    # Kernel and reference share the exact same math (bf16 weights + bf16 BN
    # apply); tolerance covers backend-level reassociation / EUP ulp deltas.
    assert jnp.allclose(out, ref, atol=1e-3, rtol=1e-3), (
        float(jnp.max(jnp.abs(out - ref))))

    print("KERNEL_OK")
</pallas_src>

<mosaic_0001>
module attributes {stable_mosaic.version = 11 : i64} {
  func.func @n1_kernel(%arg0: memref<8x30xf32, #tpu.memory_space<vmem>>, %arg1: memref<24x640xf32, #tpu.memory_space<vmem>>, %arg2: memref<30x80xbf16, #tpu.memory_space<any>>, %arg3: memref<80x160xbf16, #tpu.memory_space<any>>, %arg4: memref<160x320xbf16, #tpu.memory_space<any>>, %arg5: memref<320x640xbf16, #tpu.memory_space<any>>, %arg6: memref<640x320xbf16, #tpu.memory_space<any>>, %arg7: memref<320x160xbf16, #tpu.memory_space<any>>, %arg8: memref<160x80xbf16, #tpu.memory_space<any>>, %arg9: memref<80x30xbf16, #tpu.memory_space<any>>, %arg10: memref<8x30xf32, #tpu.memory_space<vmem>>, %arg11: memref<30x80xbf16, #tpu.memory_space<vmem>>, %arg12: memref<80x160xbf16, #tpu.memory_space<vmem>>, %arg13: memref<160x320xbf16, #tpu.memory_space<vmem>>, %arg14: memref<320x640xbf16, #tpu.memory_space<vmem>>, %arg15: memref<640x320xbf16, #tpu.memory_space<vmem>>, %arg16: memref<320x160xbf16, #tpu.memory_space<vmem>>, %arg17: memref<160x80xbf16, #tpu.memory_space<vmem>>, %arg18: memref<80x30xbf16, #tpu.memory_space<vmem>>, %arg19: memref<8x!tpu.dma_semaphore, #tpu.memory_space<semaphore_mem>>) attributes {dimension_semantics = [], scalar_prefetch = 0 : i64, scratch_operands = 9 : i64, tpu.core_type = #tpu.core_type<tc>} {
    %c0_i32 = arith.constant 0 : i32
    %0 = tpu.memref_slice %arg19[%c0_i32] : memref<8x!tpu.dma_semaphore, #tpu.memory_space<semaphore_mem>> -> memref<1x!tpu.dma_semaphore, #tpu.memory_space<semaphore_mem>>
    %1 = tpu.memref_squeeze %0 : memref<1x!tpu.dma_semaphore, #tpu.memory_space<semaphore_mem>> -> memref<!tpu.dma_semaphore, #tpu.memory_space<semaphore_mem>>
    tpu.enqueue_dma source(%arg2 : memref<30x80xbf16, #tpu.memory_space<any>>) target(%arg11 : memref<30x80xbf16, #tpu.memory_space<vmem>>) target_semaphore(%1 : memref<!tpu.dma_semaphore, #tpu.memory_space<semaphore_mem>>)
    %c1_i32 = arith.constant 1 : i32
    %2 = tpu.memref_slice %arg19[%c1_i32] : memref<8x!tpu.dma_semaphore, #tpu.memory_space<semaphore_mem>> -> memref<1x!tpu.dma_semaphore, #tpu.memory_space<semaphore_mem>>
    %3 = tpu.memref_squeeze %2 : memref<1x!tpu.dma_semaphore, #tpu.memory_space<semaphore_mem>> -> memref<!tpu.dma_semaphore, #tpu.memory_space<semaphore_mem>>
    tpu.enqueue_dma source(%arg3 : memref<80x160xbf16, #tpu.memory_space<any>>) target(%arg12 : memref<80x160xbf16, #tpu.memory_space<vmem>>) target_semaphore(%3 : memref<!tpu.dma_semaphore, #tpu.memory_space<semaphore_mem>>)
    %c2_i32 = arith.constant 2 : i32
    %4 = tpu.memref_slice %arg19[%c2_i32] : memref<8x!tpu.dma_semaphore, #tpu.memory_space<semaphore_mem>> -> memref<1x!tpu.dma_semaphore, #tpu.memory_space<semaphore_mem>>
    %5 = tpu.memref_squeeze %4 : memref<1x!tpu.dma_semaphore, #tpu.memory_space<semaphore_mem>> -> memref<!tpu.dma_semaphore, #tpu.memory_space<semaphore_mem>>
    tpu.enqueue_dma source(%arg4 : memref<160x320xbf16, #tpu.memory_space<any>>) target(%arg13 : memref<160x320xbf16, #tpu.memory_space<vmem>>) target_semaphore(%5 : memref<!tpu.dma_semaphore, #tpu.memory_space<semaphore_mem>>)
    %c3_i32 = arith.constant 3 : i32
    %6 = tpu.memref_slice %arg19[%c3_i32] : memref<8x!tpu.dma_semaphore, #tpu.memory_space<semaphore_mem>> -> memref<1x!tpu.dma_semaphore, #tpu.memory_space<semaphore_mem>>
    %7 = tpu.memref_squeeze %6 : memref<1x!tpu.dma_semaphore, #tpu.memory_space<semaphore_mem>> -> memref<!tpu.dma_semaphore, #tpu.memory_space<semaphore_mem>>
    tpu.enqueue_dma source(%arg5 : memref<320x640xbf16, #tpu.memory_space<any>>) target(%arg14 : memref<320x640xbf16, #tpu.memory_space<vmem>>) target_semaphore(%7 : memref<!tpu.dma_semaphore, #tpu.memory_space<semaphore_mem>>)
    %c4_i32 = arith.constant 4 : i32
    %8 = tpu.memref_slice %arg19[%c4_i32] : memref<8x!tpu.dma_semaphore, #tpu.memory_space<semaphore_mem>> -> memref<1x!tpu.dma_semaphore, #tpu.memory_space<semaphore_mem>>
    %9 = tpu.memref_squeeze %8 : memref<1x!tpu.dma_semaphore, #tpu.memory_space<semaphore_mem>> -> memref<!tpu.dma_semaphore, #tpu.memory_space<semaphore_mem>>
    tpu.enqueue_dma source(%arg6 : memref<640x320xbf16, #tpu.memory_space<any>>) target(%arg15 : memref<640x320xbf16, #tpu.memory_space<vmem>>) target_semaphore(%9 : memref<!tpu.dma_semaphore, #tpu.memory_space<semaphore_mem>>)
    %c5_i32 = arith.constant 5 : i32
    %10 = tpu.memref_slice %arg19[%c5_i32] : memref<8x!tpu.dma_semaphore, #tpu.memory_space<semaphore_mem>> -> memref<1x!tpu.dma_semaphore, #tpu.memory_space<semaphore_mem>>
    %11 = tpu.memref_squeeze %10 : memref<1x!tpu.dma_semaphore, #tpu.memory_space<semaphore_mem>> -> memref<!tpu.dma_semaphore, #tpu.memory_space<semaphore_mem>>
    tpu.enqueue_dma source(%arg7 : memref<320x160xbf16, #tpu.memory_space<any>>) target(%arg16 : memref<320x160xbf16, #tpu.memory_space<vmem>>) target_semaphore(%11 : memref<!tpu.dma_semaphore, #tpu.memory_space<semaphore_mem>>)
    %c6_i32 = arith.constant 6 : i32
    %12 = tpu.memref_slice %arg19[%c6_i32] : memref<8x!tpu.dma_semaphore, #tpu.memory_space<semaphore_mem>> -> memref<1x!tpu.dma_semaphore, #tpu.memory_space<semaphore_mem>>
    %13 = tpu.memref_squeeze %12 : memref<1x!tpu.dma_semaphore, #tpu.memory_space<semaphore_mem>> -> memref<!tpu.dma_semaphore, #tpu.memory_space<semaphore_mem>>
    tpu.enqueue_dma source(%arg8 : memref<160x80xbf16, #tpu.memory_space<any>>) target(%arg17 : memref<160x80xbf16, #tpu.memory_space<vmem>>) target_semaphore(%13 : memref<!tpu.dma_semaphore, #tpu.memory_space<semaphore_mem>>)
    %c7_i32 = arith.constant 7 : i32
    %14 = tpu.memref_slice %arg19[%c7_i32] : memref<8x!tpu.dma_semaphore, #tpu.memory_space<semaphore_mem>> -> memref<1x!tpu.dma_semaphore, #tpu.memory_space<semaphore_mem>>
    %15 = tpu.memref_squeeze %14 : memref<1x!tpu.dma_semaphore, #tpu.memory_space<semaphore_mem>> -> memref<!tpu.dma_semaphore, #tpu.memory_space<semaphore_mem>>
    tpu.enqueue_dma source(%arg9 : memref<80x30xbf16, #tpu.memory_space<any>>) target(%arg18 : memref<80x30xbf16, #tpu.memory_space<vmem>>) target_semaphore(%15 : memref<!tpu.dma_semaphore, #tpu.memory_space<semaphore_mem>>)
    %c0 = arith.constant 0 : index
    %c0_0 = arith.constant 0 : index
    %16 = vector.load %arg0[%c0, %c0_0] : memref<8x30xf32, #tpu.memory_space<vmem>>, vector<8x30xf32>
    %c0_1 = arith.constant 0 : index
    %c0_2 = arith.constant 0 : index
    %17 = vector.load %arg1[%c0_1, %c0_2] : memref<24x640xf32, #tpu.memory_space<vmem>>, vector<24x640xf32>
    %18 = vector.extract_strided_slice %17 {offsets = [0, 0], sizes = [1, 30], strides = [1, 1]} : vector<24x640xf32> to vector<1x30xf32>
    %19 = vector.extract_strided_slice %17 {offsets = [1, 0], sizes = [1, 30], strides = [1, 1]} : vector<24x640xf32> to vector<1x30xf32>
    %cst = arith.constant dense<0.000000e+00> : vector<30xf32>
    %20 = vector.multi_reduction <add>, %16, %cst [0] : vector<8x30xf32> to vector<30xf32>
    %21 = vector.shape_cast %20 : vector<30xf32> to vector<1x30xf32>
    %cst_3 = arith.constant 1.250000e-01 : f32
    %22 = vector.broadcast %cst_3 : f32 to vector<1x30xf32>
    %23 = arith.mulf %21, %22 : vector<1x30xf32>
    %24 = arith.mulf %16, %16 : vector<8x30xf32>
    %cst_4 = arith.constant dense<0.000000e+00> : vector<30xf32>
    %25 = vector.multi_reduction <add>, %24, %cst_4 [0] : vector<8x30xf32> to vector<30xf32>
    %26 = vector.shape_cast %25 : vector<30xf32> to vector<1x30xf32>
    %cst_5 = arith.constant 1.250000e-01 : f32
    %27 = vector.broadcast %cst_5 : f32 to vector<1x30xf32>
    %28 = arith.mulf %26, %27 : vector<1x30xf32>
    %29 = arith.mulf %23, %23 : vector<1x30xf32>
    %30 = arith.subf %28, %29 : vector<1x30xf32>
    %cst_6 = arith.constant 9.99999974E-6 : f32
    %31 = vector.broadcast %cst_6 : f32 to vector<1x30xf32>
    %32 = arith.addf %30, %31 : vector<1x30xf32>
    %33 = math.rsqrt %32 : vector<1x30xf32>
    %34 = arith.mulf %18, %33 : vector<1x30xf32>
    %35 = arith.mulf %23, %34 : vector<1x30xf32>
    %36 = arith.subf %19, %35 : vector<1x30xf32>
    %37 = arith.truncf %16 : vector<8x30xf32> to vector<8x30xbf16>
    %38 = arith.truncf %34 : vector<1x30xf32> to vector<1x30xbf16>
    %39 = vector.broadcast %38 : vector<1x30xbf16> to vector<8x30xbf16>
    %40 = arith.mulf %37, %39 : vector<8x30xbf16>
    %41 = arith.truncf %36 : vector<1x30xf32> to vector<1x30xbf16>
    %42 = vector.broadcast %41 : vector<1x30xbf16> to vector<8x30xbf16>
    %43 = arith.addf %40, %42 : vector<8x30xbf16>
    %c0_i32_7 = arith.constant 0 : i32
    %44 = tpu.memref_slice %arg19[%c0_i32_7] : memref<8x!tpu.dma_semaphore, #tpu.memory_space<semaphore_mem>> -> memref<1x!tpu.dma_semaphore, #tpu.memory_space<semaphore_mem>>
    %45 = tpu.memref_squeeze %44 : memref<1x!tpu.dma_semaphore, #tpu.memory_space<semaphore_mem>> -> memref<!tpu.dma_semaphore, #tpu.memory_space<semaphore_mem>>
    tpu.wait_dma2 semaphore(%45 : memref<!tpu.dma_semaphore, #tpu.memory_space<semaphore_mem>>) src(%arg2 : memref<30x80xbf16, #tpu.memory_space<any>>) dst(%arg11 : memref<30x80xbf16, #tpu.memory_space<vmem>>)
    %c0_8 = arith.constant 0 : index
    %c0_9 = arith.constant 0 : index
    %46 = vector.load %arg11[%c0_8, %c0_9] : memref<30x80xbf16, #tpu.memory_space<vmem>>, vector<30x80xbf16>
    %47 = vector.extract_strided_slice %17 {offsets = [2, 0], sizes = [1, 80], strides = [1, 1]} : vector<24x640xf32> to vector<1x80xf32>
    %48 = vector.extract_strided_slice %17 {offsets = [3, 0], sizes = [1, 80], strides = [1, 1]} : vector<24x640xf32> to vector<1x80xf32>
    %49 = vector.extract_strided_slice %17 {offsets = [4, 0], sizes = [1, 80], strides = [1, 1]} : vector<24x640xf32> to vector<1x80xf32>
    %cst_10 = arith.constant dense<0.000000e+00> : vector<8x80xf32>
    %50 = tpu.matmul %43, %46, %cst_10 {dimension_numbers = #tpu.dot_dimension_numbers<[1], [0], [0], [1], [0, 0, 1, 1], [], []>} : vector<8x30xbf16>, vector<30x80xbf16>, vector<8x80xf32> -> vector<8x80xf32>
    %51 = vector.broadcast %47 : vector<1x80xf32> to vector<8x80xf32>
    %52 = arith.addf %50, %51 : vector<8x80xf32>
    %cst_11 = arith.constant 0.000000e+00 : f32
    %53 = vector.broadcast %cst_11 : f32 to vector<8x80xf32>
    %54 = arith.minimumf %52, %53 : vector<8x80xf32>
    %55 = math.exp %54 : vector<8x80xf32>
    %cst_12 = arith.constant 1.000000e+00 : f32
    %56 = vector.broadcast %cst_12 : f32 to vector<8x80xf32>
    %57 = arith.subf %55, %56 : vector<8x80xf32>
    %cst_13 = arith.constant 1.67326319 : f32
    %58 = vector.broadcast %cst_13 : f32 to vector<8x80xf32>
    %59 = arith.mulf %58, %57 : vector<8x80xf32>
    %cst_14 = arith.constant 0.000000e+00 : f32
    %60 = vector.broadcast %cst_14 : f32 to vector<8x80xf32>
    %61 = arith.cmpf ogt, %52, %60 : vector<8x80xf32>
    %62 = arith.select %61, %52, %59 : vector<8x80xi1>, vector<8x80xf32>
    %cst_15 = arith.constant 1.05070102 : f32
    %63 = vector.broadcast %cst_15 : f32 to vector<8x80xf32>
    %64 = arith.mulf %63, %62 : vector<8x80xf32>
    %cst_16 = arith.constant dense<0.000000e+00> : vector<80xf32>
    %65 = vector.multi_reduction <add>, %64, %cst_16 [0] : vector<8x80xf32> to vector<80xf32>
    %66 = vector.shape_cast %65 : vector<80xf32> to vector<1x80xf32>
    %cst_17 = arith.constant 1.250000e-01 : f32
    %67 = vector.broadcast %cst_17 : f32 to vector<1x80xf32>
    %68 = arith.mulf %66, %67 : vector<1x80xf32>
    %69 = arith.mulf %64, %64 : vector<8x80xf32>
    %cst_18 = arith.constant dense<0.000000e+00> : vector<80xf32>
    %70 = vector.multi_reduction <add>, %69, %cst_18 [0] : vector<8x80xf32> to vector<80xf32>
    %71 = vector.shape_cast %70 : vector<80xf32> to vector<1x80xf32>
    %cst_19 = arith.constant 1.250000e-01 : f32
    %72 = vector.broadcast %cst_19 : f32 to vector<1x80xf32>
    %73 = arith.mulf %71, %72 : vector<1x80xf32>
    %74 = arith.mulf %68, %68 : vector<1x80xf32>
    %75 = arith.subf %73, %74 : vector<1x80xf32>
    %cst_20 = arith.constant 9.99999974E-6 : f32
    %76 = vector.broadcast %cst_20 : f32 to vector<1x80xf32>
    %77 = arith.addf %75, %76 : vector<1x80xf32>
    %78 = math.rsqrt %77 : vector<1x80xf32>
    %79 = arith.mulf %48, %78 : vector<1x80xf32>
    %80 = arith.mulf %68, %79 : vector<1x80xf32>
    %81 = arith.subf %49, %80 : vector<1x80xf32>
    %82 = arith.truncf %64 : vector<8x80xf32> to vector<8x80xbf16>
    %83 = arith.truncf %79 : vector<1x80xf32> to vector<1x80xbf16>
    %84 = vector.broadcast %83 : vector<1x80xbf16> to vector<8x80xbf16>
    %85 = arith.mulf %82, %84 : vector<8x80xbf16>
    %86 = arith.truncf %81 : vector<1x80xf32> to vector<1x80xbf16>
    %87 = vector.broadcast %86 : vector<1x80xbf16> to vector<8x80xbf16>
    %88 = arith.addf %85, %87 : vector<8x80xbf16>
    %c1_i32_21 = arith.constant 1 : i32
    %89 = tpu.memref_slice %arg19[%c1_i32_21] : memref<8x!tpu.dma_semaphore, #tpu.memory_space<semaphore_mem>> -> memref<1x!tpu.dma_semaphore, #tpu.memory_space<semaphore_mem>>
    %90 = tpu.memref_squeeze %89 : memref<1x!tpu.dma_semaphore, #tpu.memory_space<semaphore_mem>> -> memref<!tpu.dma_semaphore, #tpu.memory_space<semaphore_mem>>
    tpu.wait_dma2 semaphore(%90 : memref<!tpu.dma_semaphore, #tpu.memory_space<semaphore_mem>>) src(%arg3 : memref<80x160xbf16, #tpu.memory_space<any>>) dst(%arg12 : memref<80x160xbf16, #tpu.memory_space<vmem>>)
    %c0_22 = arith.constant 0 : index
    %c0_23 = arith.constant 0 : index
    %91 = vector.load %arg12[%c0_22, %c0_23] : memref<80x160xbf16, #tpu.memory_space<vmem>>, vector<80x160xbf16>
    %92 = vector.extract_strided_slice %17 {offsets = [5, 0], sizes = [1, 160], strides = [1, 1]} : vector<24x640xf32> to vector<1x160xf32>
    %93 = vector.extract_strided_slice %17 {offsets = [6, 0], sizes = [1, 160], strides = [1, 1]} : vector<24x640xf32> to vector<1x160xf32>
    %94 = vector.extract_strided_slice %17 {offsets = [7, 0], sizes = [1, 160], strides = [1, 1]} : vector<24x640xf32> to vector<1x160xf32>
    %cst_24 = arith.constant dense<0.000000e+00> : vector<8x160xf32>
    %95 = tpu.matmul %88, %91, %cst_24 {dimension_numbers = #tpu.dot_dimension_numbers<[1], [0], [0], [1], [0, 0, 1, 1], [], []>} : vector<8x80xbf16>, vector<80x160xbf16>, vector<8x160xf32> -> vector<8x160xf32>
    %96 = vector.broadcast %92 : vector<1x160xf32> to vector<8x160xf32>
    %97 = arith.addf %95, %96 : vector<8x160xf32>
    %cst_25 = arith.constant 0.000000e+00 : f32
    %98 = vector.broadcast %cst_25 : f32 to vector<8x160xf32>
    %99 = arith.minimumf %97, %98 : vector<8x160xf32>
    %100 = math.exp %99 : vector<8x160xf32>
    %cst_26 = arith.constant 1.000000e+00 : f32
    %101 = vector.broadcast %cst_26 : f32 to vector<8x160xf32>
    %102 = arith.subf %100, %101 : vector<8x160xf32>
    %cst_27 = arith.constant 1.67326319 : f32
    %103 = vector.broadcast %cst_27 : f32 to vector<8x160xf32>
    %104 = arith.mulf %103, %102 : vector<8x160xf32>
    %cst_28 = arith.constant 0.000000e+00 : f32
    %105 = vector.broadcast %cst_28 : f32 to vector<8x160xf32>
    %106 = arith.cmpf ogt, %97, %105 : vector<8x160xf32>
    %107 = arith.select %106, %97, %104 : vector<8x160xi1>, vector<8x160xf32>
    %cst_29 = arith.constant 1.05070102 : f32
    %108 = vector.broadcast %cst_29 : f32 to vector<8x160xf32>
    %109 = arith.mulf %108, %107 : vector<8x160xf32>
    %cst_30 = arith.constant dense<0.000000e+00> : vector<160xf32>
    %110 = vector.multi_reduction <add>, %109, %cst_30 [0] : vector<8x160xf32> to vector<160xf32>
    %111 = vector.shape_cast %110 : vector<160xf32> to vector<1x160xf32>
    %cst_31 = arith.constant 1.250000e-01 : f32
    %112 = vector.broadcast %cst_31 : f32 to vector<1x160xf32>
    %113 = arith.mulf %111, %112 : vector<1x160xf32>
    %114 = arith.mulf %109, %109 : vector<8x160xf32>
    %cst_32 = arith.constant dense<0.000000e+00> : vector<160xf32>
    %115 = vector.multi_reduction <add>, %114, %cst_32 [0] : vector<8x160xf32> to vector<160xf32>
    %116 = vector.shape_cast %115 : vector<160xf32> to vector<1x160xf32>
    %cst_33 = arith.constant 1.250000e-01 : f32
    %117 = vector.broadcast %cst_33 : f32 to vector<1x160xf32>
    %118 = arith.mulf %116, %117 : vector<1x160xf32>
    %119 = arith.mulf %113, %113 : vector<1x160xf32>
    %120 = arith.subf %118, %119 : vector<1x160xf32>
    %cst_34 = arith.constant 9.99999974E-6 : f32
    %121 = vector.broadcast %cst_34 : f32 to vector<1x160xf32>
    %122 = arith.addf %120, %121 : vector<1x160xf32>
    %123 = math.rsqrt %122 : vector<1x160xf32>
    %124 = arith.mulf %93, %123 : vector<1x160xf32>
    %125 = arith.mulf %113, %124 : vector<1x160xf32>
    %126 = arith.subf %94, %125 : vector<1x160xf32>
    %127 = arith.truncf %109 : vector<8x160xf32> to vector<8x160xbf16>
    %128 = arith.truncf %124 : vector<1x160xf32> to vector<1x160xbf16>
    %129 = vector.broadcast %128 : vector<1x160xbf16> to vector<8x160xbf16>
    %130 = arith.mulf %127, %129 : vector<8x160xbf16>
    %131 = arith.truncf %126 : vector<1x160xf32> to vector<1x160xbf16>
    %132 = vector.broadcast %131 : vector<1x160xbf16> to vector<8x160xbf16>
    %133 = arith.addf %130, %132 : vector<8x160xbf16>
    %c2_i32_35 = arith.constant 2 : i32
    %134 = tpu.memref_slice %arg19[%c2_i32_35] : memref<8x!tpu.dma_semaphore, #tpu.memory_space<semaphore_mem>> -> memref<1x!tpu.dma_semaphore, #tpu.memory_space<semaphore_mem>>
    %135 = tpu.memref_squeeze %134 : memref<1x!tpu.dma_semaphore, #tpu.memory_space<semaphore_mem>> -> memref<!tpu.dma_semaphore, #tpu.memory_space<semaphore_mem>>
    tpu.wait_dma2 semaphore(%135 : memref<!tpu.dma_semaphore, #tpu.memory_space<semaphore_mem>>) src(%arg4 : memref<160x320xbf16, #tpu.memory_space<any>>) dst(%arg13 : memref<160x320xbf16, #tpu.memory_space<vmem>>)
    %c0_36 = arith.constant 0 : index
    %c0_37 = arith.constant 0 : index
    %136 = vector.load %arg13[%c0_36, %c0_37] : memref<160x320xbf16, #tpu.memory_space<vmem>>, vector<160x320xbf16>
    %137 = vector.extract_strided_slice %17 {offsets = [8, 0], sizes = [1, 320], strides = [1, 1]} : vector<24x640xf32> to vector<1x320xf32>
    %138 = vector.extract_strided_slice %17 {offsets = [9, 0], sizes = [1, 320], strides = [1, 1]} : vector<24x640xf32> to vector<1x320xf32>
    %139 = vector.extract_strided_slice %17 {offsets = [10, 0], sizes = [1, 320], strides = [1, 1]} : vector<24x640xf32> to vector<1x320xf32>
    %cst_38 = arith.constant dense<0.000000e+00> : vector<8x320xf32>
    %140 = tpu.matmul %133, %136, %cst_38 {dimension_numbers = #tpu.dot_dimension_numbers<[1], [0], [0], [1], [0, 0, 1, 1], [], []>} : vector<8x160xbf16>, vector<160x320xbf16>, vector<8x320xf32> -> vector<8x320xf32>
    %141 = vector.broadcast %137 : vector<1x320xf32> to vector<8x320xf32>
    %142 = arith.addf %140, %141 : vector<8x320xf32>
    %cst_39 = arith.constant 0.000000e+00 : f32
    %143 = vector.broadcast %cst_39 : f32 to vector<8x320xf32>
    %144 = arith.minimumf %142, %143 : vector<8x320xf32>
    %145 = math.exp %144 : vector<8x320xf32>
    %cst_40 = arith.constant 1.000000e+00 : f32
    %146 = vector.broadcast %cst_40 : f32 to vector<8x320xf32>
    %147 = arith.subf %145, %146 : vector<8x320xf32>
    %cst_41 = arith.constant 1.67326319 : f32
    %148 = vector.broadcast %cst_41 : f32 to vector<8x320xf32>
    %149 = arith.mulf %148, %147 : vector<8x320xf32>
    %cst_42 = arith.constant 0.000000e+00 : f32
    %150 = vector.broadcast %cst_42 : f32 to vector<8x320xf32>
    %151 = arith.cmpf ogt, %142, %150 : vector<8x320xf32>
    %152 = arith.select %151, %142, %149 : vector<8x320xi1>, vector<8x320xf32>
    %cst_43 = arith.constant 1.05070102 : f32
    %153 = vector.broadcast %cst_43 : f32 to vector<8x320xf32>
    %154 = arith.mulf %153, %152 : vector<8x320xf32>
    %cst_44 = arith.constant dense<0.000000e+00> : vector<320xf32>
    %155 = vector.multi_reduction <add>, %154, %cst_44 [0] : vector<8x320xf32> to vector<320xf32>
    %156 = vector.shape_cast %155 : vector<320xf32> to vector<1x320xf32>
    %cst_45 = arith.constant 1.250000e-01 : f32
    %157 = vector.broadcast %cst_45 : f32 to vector<1x320xf32>
    %158 = arith.mulf %156, %157 : vector<1x320xf32>
    %159 = arith.mulf %154, %154 : vector<8x320xf32>
    %cst_46 = arith.constant dense<0.000000e+00> : vector<320xf32>
    %160 = vector.multi_reduction <add>, %159, %cst_46 [0] : vector<8x320xf32> to vector<320xf32>
    %161 = vector.shape_cast %160 : vector<320xf32> to vector<1x320xf32>
    %cst_47 = arith.constant 1.250000e-01 : f32
    %162 = vector.broadcast %cst_47 : f32 to vector<1x320xf32>
    %163 = arith.mulf %161, %162 : vector<1x320xf32>
    %164 = arith.mulf %158, %158 : vector<1x320xf32>
    %165 = arith.subf %163, %164 : vector<1x320xf32>
    %cst_48 = arith.constant 9.99999974E-6 : f32
    %166 = vector.broadcast %cst_48 : f32 to vector<1x320xf32>
    %167 = arith.addf %165, %166 : vector<1x320xf32>
    %168 = math.rsqrt %167 : vector<1x320xf32>
    %169 = arith.mulf %138, %168 : vector<1x320xf32>
    %170 = arith.mulf %158, %169 : vector<1x320xf32>
    %171 = arith.subf %139, %170 : vector<1x320xf32>
    %172 = arith.truncf %154 : vector<8x320xf32> to vector<8x320xbf16>
    %173 = arith.truncf %169 : vector<1x320xf32> to vector<1x320xbf16>
    %174 = vector.broadcast %173 : vector<1x320xbf16> to vector<8x320xbf16>
    %175 = arith.mulf %172, %174 : vector<8x320xbf16>
    %176 = arith.truncf %171 : vector<1x320xf32> to vector<1x320xbf16>
    %177 = vector.broadcast %176 : vector<1x320xbf16> to vector<8x320xbf16>
    %178 = arith.addf %175, %177 : vector<8x320xbf16>
    %c3_i32_49 = arith.constant 3 : i32
    %179 = tpu.memref_slice %arg19[%c3_i32_49] : memref<8x!tpu.dma_semaphore, #tpu.memory_space<semaphore_mem>> -> memref<1x!tpu.dma_semaphore, #tpu.memory_space<semaphore_mem>>
    %180 = tpu.memref_squeeze %179 : memref<1x!tpu.dma_semaphore, #tpu.memory_space<semaphore_mem>> -> memref<!tpu.dma_semaphore, #tpu.memory_space<semaphore_mem>>
    tpu.wait_dma2 semaphore(%180 : memref<!tpu.dma_semaphore, #tpu.memory_space<semaphore_mem>>) src(%arg5 : memref<320x640xbf16, #tpu.memory_space<any>>) dst(%arg14 : memref<320x640xbf16, #tpu.memory_space<vmem>>)
    %c0_50 = arith.constant 0 : index
    %c0_51 = arith.constant 0 : index
    %181 = vector.load %arg14[%c0_50, %c0_51] : memref<320x640xbf16, #tpu.memory_space<vmem>>, vector<320x640xbf16>
    %182 = vector.extract_strided_slice %17 {offsets = [11, 0], sizes = [1, 640], strides = [1, 1]} : vector<24x640xf32> to vector<1x640xf32>
    %183 = vector.extract_strided_slice %17 {offsets = [12, 0], sizes = [1, 640], strides = [1, 1]} : vector<24x640xf32> to vector<1x640xf32>
    %184 = vector.extract_strided_slice %17 {offsets = [13, 0], sizes = [1, 640], strides = [1, 1]} : vector<24x640xf32> to vector<1x640xf32>
    %cst_52 = arith.constant dense<0.000000e+00> : vector<8x640xf32>
    %185 = tpu.matmul %178, %181, %cst_52 {dimension_numbers = #tpu.dot_dimension_numbers<[1], [0], [0], [1], [0, 0, 1, 1], [], []>} : vector<8x320xbf16>, vector<320x640xbf16>, vector<8x640xf32> -> vector<8x640xf32>
    %186 = vector.broadcast %182 : vector<1x640xf32> to vector<8x640xf32>
    %187 = arith.addf %185, %186 : vector<8x640xf32>
    %cst_53 = arith.constant 0.000000e+00 : f32
    %188 = vector.broadcast %cst_53 : f32 to vector<8x640xf32>
    %189 = arith.minimumf %187, %188 : vector<8x640xf32>
    %190 = math.exp %189 : vector<8x640xf32>
    %cst_54 = arith.constant 1.000000e+00 : f32
    %191 = vector.broadcast %cst_54 : f32 to vector<8x640xf32>
    %192 = arith.subf %190, %191 : vector<8x640xf32>
    %cst_55 = arith.constant 1.67326319 : f32
    %193 = vector.broadcast %cst_55 : f32 to vector<8x640xf32>
    %194 = arith.mulf %193, %192 : vector<8x640xf32>
    %cst_56 = arith.constant 0.000000e+00 : f32
    %195 = vector.broadcast %cst_56 : f32 to vector<8x640xf32>
    %196 = arith.cmpf ogt, %187, %195 : vector<8x640xf32>
    %197 = arith.select %196, %187, %194 : vector<8x640xi1>, vector<8x640xf32>
    %cst_57 = arith.constant 1.05070102 : f32
    %198 = vector.broadcast %cst_57 : f32 to vector<8x640xf32>
    %199 = arith.mulf %198, %197 : vector<8x640xf32>
    %cst_58 = arith.constant dense<0.000000e+00> : vector<640xf32>
    %200 = vector.multi_reduction <add>, %199, %cst_58 [0] : vector<8x640xf32> to vector<640xf32>
    %201 = vector.shape_cast %200 : vector<640xf32> to vector<1x640xf32>
    %cst_59 = arith.constant 1.250000e-01 : f32
    %202 = vector.broadcast %cst_59 : f32 to vector<1x640xf32>
    %203 = arith.mulf %201, %202 : vector<1x640xf32>
    %204 = arith.mulf %199, %199 : vector<8x640xf32>
    %cst_60 = arith.constant dense<0.000000e+00> : vector<640xf32>
    %205 = vector.multi_reduction <add>, %204, %cst_60 [0] : vector<8x640xf32> to vector<640xf32>
    %206 = vector.shape_cast %205 : vector<640xf32> to vector<1x640xf32>
    %cst_61 = arith.constant 1.250000e-01 : f32
    %207 = vector.broadcast %cst_61 : f32 to vector<1x640xf32>
    %208 = arith.mulf %206, %207 : vector<1x640xf32>
    %209 = arith.mulf %203, %203 : vector<1x640xf32>
    %210 = arith.subf %208, %209 : vector<1x640xf32>
    %cst_62 = arith.constant 9.99999974E-6 : f32
    %211 = vector.broadcast %cst_62 : f32 to vector<1x640xf32>
    %212 = arith.addf %210, %211 : vector<1x640xf32>
    %213 = math.rsqrt %212 : vector<1x640xf32>
    %214 = arith.mulf %183, %213 : vector<1x640xf32>
    %215 = arith.mulf %203, %214 : vector<1x640xf32>
    %216 = arith.subf %184, %215 : vector<1x640xf32>
    %217 = arith.truncf %199 : vector<8x640xf32> to vector<8x640xbf16>
    %218 = arith.truncf %214 : vector<1x640xf32> to vector<1x640xbf16>
    %219 = vector.broadcast %218 : vector<1x640xbf16> to vector<8x640xbf16>
    %220 = arith.mulf %217, %219 : vector<8x640xbf16>
    %221 = arith.truncf %216 : vector<1x640xf32> to vector<1x640xbf16>
    %222 = vector.broadcast %221 : vector<1x640xbf16> to vector<8x640xbf16>
    %223 = arith.addf %220, %222 : vector<8x640xbf16>
    %c4_i32_63 = arith.constant 4 : i32
    %224 = tpu.memref_slice %arg19[%c4_i32_63] : memref<8x!tpu.dma_semaphore, #tpu.memory_space<semaphore_mem>> -> memref<1x!tpu.dma_semaphore, #tpu.memory_space<semaphore_mem>>
    %225 = tpu.memref_squeeze %224 : memref<1x!tpu.dma_semaphore, #tpu.memory_space<semaphore_mem>> -> memref<!tpu.dma_semaphore, #tpu.memory_space<semaphore_mem>>
    tpu.wait_dma2 semaphore(%225 : memref<!tpu.dma_semaphore, #tpu.memory_space<semaphore_mem>>) src(%arg6 : memref<640x320xbf16, #tpu.memory_space<any>>) dst(%arg15 : memref<640x320xbf16, #tpu.memory_space<vmem>>)
    %c0_64 = arith.constant 0 : index
    %c0_65 = arith.constant 0 : index
    %226 = vector.load %arg15[%c0_64, %c0_65] : memref<640x320xbf16, #tpu.memory_space<vmem>>, vector<640x320xbf16>
    %227 = vector.extract_strided_slice %17 {offsets = [14, 0], sizes = [1, 320], strides = [1, 1]} : vector<24x640xf32> to vector<1x320xf32>
    %228 = vector.extract_strided_slice %17 {offsets = [15, 0], sizes = [1, 320], strides = [1, 1]} : vector<24x640xf32> to vector<1x320xf32>
    %229 = vector.extract_strided_slice %17 {offsets = [16, 0], sizes = [1, 320], strides = [1, 1]} : vector<24x640xf32> to vector<1x320xf32>
    %cst_66 = arith.constant dense<0.000000e+00> : vector<8x320xf32>
    %230 = tpu.matmul %223, %226, %cst_66 {dimension_numbers = #tpu.dot_dimension_numbers<[1], [0], [0], [1], [0, 0, 1, 1], [], []>} : vector<8x640xbf16>, vector<640x320xbf16>, vector<8x320xf32> -> vector<8x320xf32>
    %231 = vector.broadcast %227 : vector<1x320xf32> to vector<8x320xf32>
    %232 = arith.addf %230, %231 : vector<8x320xf32>
    %cst_67 = arith.constant 0.000000e+00 : f32
    %233 = vector.broadcast %cst_67 : f32 to vector<8x320xf32>
    %234 = arith.minimumf %232, %233 : vector<8x320xf32>
    %235 = math.exp %234 : vector<8x320xf32>
    %cst_68 = arith.constant 1.000000e+00 : f32
    %236 = vector.broadcast %cst_68 : f32 to vector<8x320xf32>
    %237 = arith.subf %235, %236 : vector<8x320xf32>
    %cst_69 = arith.constant 1.67326319 : f32
    %238 = vector.broadcast %cst_69 : f32 to vector<8x320xf32>
    %239 = arith.mulf %238, %237 : vector<8x320xf32>
    %cst_70 = arith.constant 0.000000e+00 : f32
    %240 = vector.broadcast %cst_70 : f32 to vector<8x320xf32>
    %241 = arith.cmpf ogt, %232, %240 : vector<8x320xf32>
    %242 = arith.select %241, %232, %239 : vector<8x320xi1>, vector<8x320xf32>
    %cst_71 = arith.constant 1.05070102 : f32
    %243 = vector.broadcast %cst_71 : f32 to vector<8x320xf32>
    %244 = arith.mulf %243, %242 : vector<8x320xf32>
    %cst_72 = arith.constant dense<0.000000e+00> : vector<320xf32>
    %245 = vector.multi_reduction <add>, %244, %cst_72 [0] : vector<8x320xf32> to vector<320xf32>
    %246 = vector.shape_cast %245 : vector<320xf32> to vector<1x320xf32>
    %cst_73 = arith.constant 1.250000e-01 : f32
    %247 = vector.broadcast %cst_73 : f32 to vector<1x320xf32>
    %248 = arith.mulf %246, %247 : vector<1x320xf32>
    %249 = arith.mulf %244, %244 : vector<8x320xf32>
    %cst_74 = arith.constant dense<0.000000e+00> : vector<320xf32>
    %250 = vector.multi_reduction <add>, %249, %cst_74 [0] : vector<8x320xf32> to vector<320xf32>
    %251 = vector.shape_cast %250 : vector<320xf32> to vector<1x320xf32>
    %cst_75 = arith.constant 1.250000e-01 : f32
    %252 = vector.broadcast %cst_75 : f32 to vector<1x320xf32>
    %253 = arith.mulf %251, %252 : vector<1x320xf32>
    %254 = arith.mulf %248, %248 : vector<1x320xf32>
    %255 = arith.subf %253, %254 : vector<1x320xf32>
    %cst_76 = arith.constant 9.99999974E-6 : f32
    %256 = vector.broadcast %cst_76 : f32 to vector<1x320xf32>
    %257 = arith.addf %255, %256 : vector<1x320xf32>
    %258 = math.rsqrt %257 : vector<1x320xf32>
    %259 = arith.mulf %228, %258 : vector<1x320xf32>
    %260 = arith.mulf %248, %259 : vector<1x320xf32>
    %261 = arith.subf %229, %260 : vector<1x320xf32>
    %262 = arith.truncf %244 : vector<8x320xf32> to vector<8x320xbf16>
    %263 = arith.truncf %259 : vector<1x320xf32> to vector<1x320xbf16>
    %264 = vector.broadcast %263 : vector<1x320xbf16> to vector<8x320xbf16>
    %265 = arith.mulf %262, %264 : vector<8x320xbf16>
    %266 = arith.truncf %261 : vector<1x320xf32> to vector<1x320xbf16>
    %267 = vector.broadcast %266 : vector<1x320xbf16> to vector<8x320xbf16>
    %268 = arith.addf %265, %267 : vector<8x320xbf16>
    %c5_i32_77 = arith.constant 5 : i32
    %269 = tpu.memref_slice %arg19[%c5_i32_77] : memref<8x!tpu.dma_semaphore, #tpu.memory_space<semaphore_mem>> -> memref<1x!tpu.dma_semaphore, #tpu.memory_space<semaphore_mem>>
    %270 = tpu.memref_squeeze %269 : memref<1x!tpu.dma_semaphore, #tpu.memory_space<semaphore_mem>> -> memref<!tpu.dma_semaphore, #tpu.memory_space<semaphore_mem>>
    tpu.wait_dma2 semaphore(%270 : memref<!tpu.dma_semaphore, #tpu.memory_space<semaphore_mem>>) src(%arg7 : memref<320x160xbf16, #tpu.memory_space<any>>) dst(%arg16 : memref<320x160xbf16, #tpu.memory_space<vmem>>)
    %c0_78 = arith.constant 0 : index
    %c0_79 = arith.constant 0 : index
    %271 = vector.load %arg16[%c0_78, %c0_79] : memref<320x160xbf16, #tpu.memory_space<vmem>>, vector<320x160xbf16>
    %272 = vector.extract_strided_slice %17 {offsets = [17, 0], sizes = [1, 160], strides = [1, 1]} : vector<24x640xf32> to vector<1x160xf32>
    %273 = vector.extract_strided_slice %17 {offsets = [18, 0], sizes = [1, 160], strides = [1, 1]} : vector<24x640xf32> to vector<1x160xf32>
    %274 = vector.extract_strided_slice %17 {offsets = [19, 0], sizes = [1, 160], strides = [1, 1]} : vector<24x640xf32> to vector<1x160xf32>
    %cst_80 = arith.constant dense<0.000000e+00> : vector<8x160xf32>
    %275 = tpu.matmul %268, %271, %cst_80 {dimension_numbers = #tpu.dot_dimension_numbers<[1], [0], [0], [1], [0, 0, 1, 1], [], []>} : vector<8x320xbf16>, vector<320x160xbf16>, vector<8x160xf32> -> vector<8x160xf32>
    %276 = vector.broadcast %272 : vector<1x160xf32> to vector<8x160xf32>
    %277 = arith.addf %275, %276 : vector<8x160xf32>
    %cst_81 = arith.constant 0.000000e+00 : f32
    %278 = vector.broadcast %cst_81 : f32 to vector<8x160xf32>
    %279 = arith.minimumf %277, %278 : vector<8x160xf32>
    %280 = math.exp %279 : vector<8x160xf32>
    %cst_82 = arith.constant 1.000000e+00 : f32
    %281 = vector.broadcast %cst_82 : f32 to vector<8x160xf32>
    %282 = arith.subf %280, %281 : vector<8x160xf32>
    %cst_83 = arith.constant 1.67326319 : f32
    %283 = vector.broadcast %cst_83 : f32 to vector<8x160xf32>
    %284 = arith.mulf %283, %282 : vector<8x160xf32>
    %cst_84 = arith.constant 0.000000e+00 : f32
    %285 = vector.broadcast %cst_84 : f32 to vector<8x160xf32>
    %286 = arith.cmpf ogt, %277, %285 : vector<8x160xf32>
    %287 = arith.select %286, %277, %284 : vector<8x160xi1>, vector<8x160xf32>
    %cst_85 = arith.constant 1.05070102 : f32
    %288 = vector.broadcast %cst_85 : f32 to vector<8x160xf32>
    %289 = arith.mulf %288, %287 : vector<8x160xf32>
    %cst_86 = arith.constant dense<0.000000e+00> : vector<160xf32>
    %290 = vector.multi_reduction <add>, %289, %cst_86 [0] : vector<8x160xf32> to vector<160xf32>
    %291 = vector.shape_cast %290 : vector<160xf32> to vector<1x160xf32>
    %cst_87 = arith.constant 1.250000e-01 : f32
    %292 = vector.broadcast %cst_87 : f32 to vector<1x160xf32>
    %293 = arith.mulf %291, %292 : vector<1x160xf32>
    %294 = arith.mulf %289, %289 : vector<8x160xf32>
    %cst_88 = arith.constant dense<0.000000e+00> : vector<160xf32>
    %295 = vector.multi_reduction <add>, %294, %cst_88 [0] : vector<8x160xf32> to vector<160xf32>
    %296 = vector.shape_cast %295 : vector<160xf32> to vector<1x160xf32>
    %cst_89 = arith.constant 1.250000e-01 : f32
    %297 = vector.broadcast %cst_89 : f32 to vector<1x160xf32>
    %298 = arith.mulf %296, %297 : vector<1x160xf32>
    %299 = arith.mulf %293, %293 : vector<1x160xf32>
    %300 = arith.subf %298, %299 : vector<1x160xf32>
    %cst_90 = arith.constant 9.99999974E-6 : f32
    %301 = vector.broadcast %cst_90 : f32 to vector<1x160xf32>
    %302 = arith.addf %300, %301 : vector<1x160xf32>
    %303 = math.rsqrt %302 : vector<1x160xf32>
    %304 = arith.mulf %273, %303 : vector<1x160xf32>
    %305 = arith.mulf %293, %304 : vector<1x160xf32>
    %306 = arith.subf %274, %305 : vector<1x160xf32>
    %307 = arith.truncf %289 : vector<8x160xf32> to vector<8x160xbf16>
    %308 = arith.truncf %304 : vector<1x160xf32> to vector<1x160xbf16>
    %309 = vector.broadcast %308 : vector<1x160xbf16> to vector<8x160xbf16>
    %310 = arith.mulf %307, %309 : vector<8x160xbf16>
    %311 = arith.truncf %306 : vector<1x160xf32> to vector<1x160xbf16>
    %312 = vector.broadcast %311 : vector<1x160xbf16> to vector<8x160xbf16>
    %313 = arith.addf %310, %312 : vector<8x160xbf16>
    %c6_i32_91 = arith.constant 6 : i32
    %314 = tpu.memref_slice %arg19[%c6_i32_91] : memref<8x!tpu.dma_semaphore, #tpu.memory_space<semaphore_mem>> -> memref<1x!tpu.dma_semaphore, #tpu.memory_space<semaphore_mem>>
    %315 = tpu.memref_squeeze %314 : memref<1x!tpu.dma_semaphore, #tpu.memory_space<semaphore_mem>> -> memref<!tpu.dma_semaphore, #tpu.memory_space<semaphore_mem>>
    tpu.wait_dma2 semaphore(%315 : memref<!tpu.dma_semaphore, #tpu.memory_space<semaphore_mem>>) src(%arg8 : memref<160x80xbf16, #tpu.memory_space<any>>) dst(%arg17 : memref<160x80xbf16, #tpu.memory_space<vmem>>)
    %c0_92 = arith.constant 0 : index
    %c0_93 = arith.constant 0 : index
    %316 = vector.load %arg17[%c0_92, %c0_93] : memref<160x80xbf16, #tpu.memory_space<vmem>>, vector<160x80xbf16>
    %317 = vector.extract_strided_slice %17 {offsets = [20, 0], sizes = [1, 80], strides = [1, 1]} : vector<24x640xf32> to vector<1x80xf32>
    %318 = vector.extract_strided_slice %17 {offsets = [21, 0], sizes = [1, 80], strides = [1, 1]} : vector<24x640xf32> to vector<1x80xf32>
    %319 = vector.extract_strided_slice %17 {offsets = [22, 0], sizes = [1, 80], strides = [1, 1]} : vector<24x640xf32> to vector<1x80xf32>
    %cst_94 = arith.constant dense<0.000000e+00> : vector<8x80xf32>
    %320 = tpu.matmul %313, %316, %cst_94 {dimension_numbers = #tpu.dot_dimension_numbers<[1], [0], [0], [1], [0, 0, 1, 1], [], []>} : vector<8x160xbf16>, vector<160x80xbf16>, vector<8x80xf32> -> vector<8x80xf32>
    %321 = vector.broadcast %317 : vector<1x80xf32> to vector<8x80xf32>
    %322 = arith.addf %320, %321 : vector<8x80xf32>
    %cst_95 = arith.constant 0.000000e+00 : f32
    %323 = vector.broadcast %cst_95 : f32 to vector<8x80xf32>
    %324 = arith.minimumf %322, %323 : vector<8x80xf32>
    %325 = math.exp %324 : vector<8x80xf32>
    %cst_96 = arith.constant 1.000000e+00 : f32
    %326 = vector.broadcast %cst_96 : f32 to vector<8x80xf32>
    %327 = arith.subf %325, %326 : vector<8x80xf32>
    %cst_97 = arith.constant 1.67326319 : f32
    %328 = vector.broadcast %cst_97 : f32 to vector<8x80xf32>
    %329 = arith.mulf %328, %327 : vector<8x80xf32>
    %cst_98 = arith.constant 0.000000e+00 : f32
    %330 = vector.broadcast %cst_98 : f32 to vector<8x80xf32>
    %331 = arith.cmpf ogt, %322, %330 : vector<8x80xf32>
    %332 = arith.select %331, %322, %329 : vector<8x80xi1>, vector<8x80xf32>
    %cst_99 = arith.constant 1.05070102 : f32
    %333 = vector.broadcast %cst_99 : f32 to vector<8x80xf32>
    %334 = arith.mulf %333, %332 : vector<8x80xf32>
    %cst_100 = arith.constant dense<0.000000e+00> : vector<80xf32>
    %335 = vector.multi_reduction <add>, %334, %cst_100 [0] : vector<8x80xf32> to vector<80xf32>
    %336 = vector.shape_cast %335 : vector<80xf32> to vector<1x80xf32>
    %cst_101 = arith.constant 1.250000e-01 : f32
    %337 = vector.broadcast %cst_101 : f32 to vector<1x80xf32>
    %338 = arith.mulf %336, %337 : vector<1x80xf32>
    %339 = arith.mulf %334, %334 : vector<8x80xf32>
    %cst_102 = arith.constant dense<0.000000e+00> : vector<80xf32>
    %340 = vector.multi_reduction <add>, %339, %cst_102 [0] : vector<8x80xf32> to vector<80xf32>
    %341 = vector.shape_cast %340 : vector<80xf32> to vector<1x80xf32>
    %cst_103 = arith.constant 1.250000e-01 : f32
    %342 = vector.broadcast %cst_103 : f32 to vector<1x80xf32>
    %343 = arith.mulf %341, %342 : vector<1x80xf32>
    %344 = arith.mulf %338, %338 : vector<1x80xf32>
    %345 = arith.subf %343, %344 : vector<1x80xf32>
    %cst_104 = arith.constant 9.99999974E-6 : f32
    %346 = vector.broadcast %cst_104 : f32 to vector<1x80xf32>
    %347 = arith.addf %345, %346 : vector<1x80xf32>
    %348 = math.rsqrt %347 : vector<1x80xf32>
    %349 = arith.mulf %318, %348 : vector<1x80xf32>
    %350 = arith.mulf %338, %349 : vector<1x80xf32>
    %351 = arith.subf %319, %350 : vector<1x80xf32>
    %352 = arith.truncf %334 : vector<8x80xf32> to vector<8x80xbf16>
    %353 = arith.truncf %349 : vector<1x80xf32> to vector<1x80xbf16>
    %354 = vector.broadcast %353 : vector<1x80xbf16> to vector<8x80xbf16>
    %355 = arith.mulf %352, %354 : vector<8x80xbf16>
    %356 = arith.truncf %351 : vector<1x80xf32> to vector<1x80xbf16>
    %357 = vector.broadcast %356 : vector<1x80xbf16> to vector<8x80xbf16>
    %358 = arith.addf %355, %357 : vector<8x80xbf16>
    %359 = vector.extract_strided_slice %17 {offsets = [23, 0], sizes = [1, 30], strides = [1, 1]} : vector<24x640xf32> to vector<1x30xf32>
    %c7_i32_105 = arith.constant 7 : i32
    %360 = tpu.memref_slice %arg19[%c7_i32_105] : memref<8x!tpu.dma_semaphore, #tpu.memory_space<semaphore_mem>> -> memref<1x!tpu.dma_semaphore, #tpu.memory_space<semaphore_mem>>
    %361 = tpu.memref_squeeze %360 : memref<1x!tpu.dma_semaphore, #tpu.memory_space<semaphore_mem>> -> memref<!tpu.dma_semaphore, #tpu.memory_space<semaphore_mem>>
    tpu.wait_dma2 semaphore(%361 : memref<!tpu.dma_semaphore, #tpu.memory_space<semaphore_mem>>) src(%arg9 : memref<80x30xbf16, #tpu.memory_space<any>>) dst(%arg18 : memref<80x30xbf16, #tpu.memory_space<vmem>>)
    %c0_106 = arith.constant 0 : index
    %c0_107 = arith.constant 0 : index
    %362 = vector.load %arg18[%c0_106, %c0_107] : memref<80x30xbf16, #tpu.memory_space<vmem>>, vector<80x30xbf16>
    %cst_108 = arith.constant dense<0.000000e+00> : vector<8x30xf32>
    %363 = tpu.matmul %358, %362, %cst_108 {dimension_numbers = #tpu.dot_dimension_numbers<[1], [0], [0], [1], [0, 0, 1, 1], [], []>} : vector<8x80xbf16>, vector<80x30xbf16>, vector<8x30xf32> -> vector<8x30xf32>
    %364 = vector.broadcast %359 : vector<1x30xf32> to vector<8x30xf32>
    %365 = arith.addf %363, %364 : vector<8x30xf32>
    %c0_109 = arith.constant 0 : index
    %c0_110 = arith.constant 0 : index
    %366 = vector.load %arg10[%c0_109, %c0_110] : memref<8x30xf32, #tpu.memory_space<vmem>>, vector<8x30xf32>
    tpu.vector_store %arg10[%c0_109, %c0_110], %365 {strides = array<i32>} : memref<8x30xf32, #tpu.memory_space<vmem>>, vector<8x30xf32>,
    return
  }
}

</mosaic_0001>

<bundles_post_ra>
// kernel: tpu_custom_call.1
= control target key start
LH: loop header
LB: loop body
LE: loop exit
PB: predicated region body
PF: predicated region fallthrough
CT: control target
= control target key end

     0   :  { %15 = vsyncpa [#allocation12], 0  ;;  %s7658_s0 = inlined_call_operand.vmem [shape: f32[8,30], index: 0, kind: input, shape index: {}]   ;;  %s7659_s1 = inlined_call_operand.vmem [shape: f32[24,640], index: 1, kind: input, shape index: {}]   ;;  %s7660_s2 = inlined_call_operand.vmem [shape: bf16[30,80], index: 2, kind: input, shape index: {}]   ;;  %s7661_s3 = inlined_call_operand.vmem [shape: bf16[80,160], index: 3, kind: input, shape index: {}]   ;;  %s7662_s4 = inlined_call_operand.vmem [shape: bf16[160,320], index: 4, kind: input, shape index: {}]   ;;  %s7663_s5 = inlined_call_operand.vmem [shape: bf16[320,640], index: 5, kind: input, shape index: {}]   ;;  %s7664_s6 = inlined_call_operand.vmem [shape: bf16[640,320], index: 6, kind: input, shape index: {}]   ;;  %s7665_s7 = inlined_call_operand.vmem [shape: bf16[320,160], index: 7, kind: input, shape index: {}]   ;;  %s7666_s8 = inlined_call_operand.vmem [shape: bf16[160,80], index: 8, kind: input, shape index: {}]   ;;  %s7667_s9 = inlined_call_operand.vmem [shape: bf16[80,30], index: 9, kind: input, shape index: {}]   ;;  %s7668_s10 = inlined_call_operand.hbm [shape: f32[8,30], index: 10, kind: output, shape index: {}]  }
   0x1   :  { %v53_v0 = vld [vmem:[%s7660_s2] sm:$0xff]  ;;  %v55_v1 = vld [vmem:[%s7660_s2 + $0x8] sm:$0xff] }
   0x2   :  { %54 = vst [vmem:[#allocation2] sm:$0xff] %v53_v0  ;;  %56 = vst [vmem:[#allocation2 + $0x8] sm:$0xff] %v55_v1 }
   0x3   :  { %64 = vsyncadd [#allocation10], 256  ;;  %v83_v2 = vld [vmem:[%s7661_s3] sm:$0xf]  ;;  %v85_v3 = vld [vmem:[%s7661_s3 + $0x8] sm:$0xf] }
   0x4   :  { %84 = vst [vmem:[#allocation3] sm:$0xf] %v83_v2  ;;  %86 = vst [vmem:[#allocation3 + $0x4] sm:$0xf] %v85_v3  ;;  %v87_v4 = vld [vmem:[%s7661_s3 + $0x4] sm:$0xf] }
   0x5   :  { %v89_v5 = vld [vmem:[%s7661_s3 + $0xc] sm:$0xff]   ;;  %v93_v6 = vld [vmem:[%s7661_s3 + $0x18] sm:$0xf]  ;;  %88 = vst [vmem:[#allocation3 + $0x8] sm:$0xf] %v87_v4  ;;  %v97_v8 = vld [vmem:[%s7661_s3 + $0x1c] sm:$0xff]  }
   0x6   :  { %90 = vst [vmem:[#allocation3 + $0xc] sm:$0xff] %v89_v5   ;;  %94 = vst [vmem:[#allocation3 + $0x14] sm:$0xf] %v93_v6  ;;  %v95_v7 = vld [vmem:[%s7661_s3 + $0x14] sm:$0xf]  ;;  %v105_v11 = vld [vmem:[%s7661_s3 + $0x2c] sm:$0xff]  }
   0x7   :  { %v101_v9 = vld [vmem:[%s7661_s3 + $0x28] sm:$0xf]  ;;  %96 = vst [vmem:[#allocation3 + $0x18] sm:$0xf] %v95_v7  ;;  %98 = vst [vmem:[#allocation3 + $0x1c] sm:$0xff] %v97_v8   ;;  %v113_v14 = vld [vmem:[%s7661_s3 + $0x3c] sm:$0xff]  }
   0x8   :  { %102 = vst [vmem:[#allocation3 + $0x24] sm:$0xf] %v101_v9  ;;  %v103_v10 = vld [vmem:[%s7661_s3 + $0x24] sm:$0xf]  ;;  %v109_v12 = vld [vmem:[%s7661_s3 + $0x38] sm:$0xf] }
   0x9   :  { %104 = vst [vmem:[#allocation3 + $0x28] sm:$0xf] %v103_v10  ;;  %106 = vst [vmem:[#allocation3 + $0x2c] sm:$0xff] %v105_v11   ;;  %v111_v13 = vld [vmem:[%s7661_s3 + $0x34] sm:$0xf] }
   0xa   :  { %110 = vst [vmem:[#allocation3 + $0x34] sm:$0xf] %v109_v12  ;;  %v117_v15 = vld [vmem:[%s7661_s3 + $0x48] sm:$0xf]  ;;  %112 = vst [vmem:[#allocation3 + $0x38] sm:$0xf] %v111_v13 }
   0xb   :  { %114 = vst [vmem:[#allocation3 + $0x3c] sm:$0xff] %v113_v14   ;;  %118 = vst [vmem:[#allocation3 + $0x44] sm:$0xf] %v117_v15  ;;  %v119_v16 = vld [vmem:[%s7661_s3 + $0x44] sm:$0xf] }
   0xc   :  { %v121_v17 = vld [vmem:[%s7661_s3 + $0x4c] sm:$0xf]  ;;  %120 = vst [vmem:[#allocation3 + $0x48] sm:$0xf] %v119_v16 }
   0xd   :  { %122 = vst [vmem:[#allocation3 + $0x4c] sm:$0xf] %v121_v17 }
   0xe   :  { %193 = vsyncadd [#allocation10 + $0x1], 1280  ;;  %v212_v18 = vld [vmem:[%s7662_s4] sm:$0xf]  ;;  %v214_v19 = vld [vmem:[%s7662_s4 + $0xc] sm:$0xf] }
   0xf   :  { %213 = vst [vmem:[#allocation4] sm:$0xf] %v212_v18  ;;  %215 = vst [vmem:[#allocation4 + $0x4] sm:$0xf] %v214_v19  ;;  %v216_v20 = vld [vmem:[%s7662_s4 + $0x4] sm:$0xf] }
  0x10   :  { %v218_v21 = vld [vmem:[%s7662_s4 + $0x10] sm:$0xf]  ;;  %v220_v22 = vld [vmem:[%s7662_s4 + $0x8] sm:$0xf]  ;;  %217 = vst [vmem:[#allocation4 + $0x8] sm:$0xf] %v216_v20 }
  0x11   :  { %219 = vst [vmem:[#allocation4 + $0xc] sm:$0xf] %v218_v21  ;;  %221 = vst [vmem:[#allocation4 + $0x10] sm:$0xf] %v220_v22  ;;  %v222_v23 = vld [vmem:[%s7662_s4 + $0x14] sm:$0xff]   ;;  %v234_v28 = vld [vmem:[%s7662_s4 + $0x2c] sm:$0xff]  }
  0x12   :  { %v226_v24 = vld [vmem:[%s7662_s4 + $0x24] sm:$0xf]  ;;  %v228_v25 = vld [vmem:[%s7662_s4 + $0x1c] sm:$0xf]  ;;  %223 = vst [vmem:[#allocation4 + $0x14] sm:$0xff] %v222_v23   ;;  %235 = vst [vmem:[#allocation4 + $0x2c] sm:$0xff] %v234_v28  }
  0x13   :  { %227 = vst [vmem:[#allocation4 + $0x1c] sm:$0xf] %v226_v24  ;;  %229 = vst [vmem:[#allocation4 + $0x20] sm:$0xf] %v228_v25  ;;  %v230_v26 = vld [vmem:[%s7662_s4 + $0x28] sm:$0xf] }
  0x14   :  { %v232_v27 = vld [vmem:[%s7662_s4 + $0x20] sm:$0xf]  ;;  %231 = vst [vmem:[#allocation4 + $0x24] sm:$0xf] %v230_v26  ;;  %v238_v29 = vld [vmem:[%s7662_s4 + $0x3c] sm:$0xf] }
  0x15   :  { %233 = vst [vmem:[#allocation4 + $0x28] sm:$0xf] %v232_v27  ;;  %v240_v30 = vld [vmem:[%s7662_s4 + $0x34] sm:$0xf]  ;;  %v242_v31 = vld [vmem:[%s7662_s4 + $0x40] sm:$0xf] }
  0x16   :  { %239 = vst [vmem:[#allocation4 + $0x34] sm:$0xf] %v238_v29  ;;  %241 = vst [vmem:[#allocation4 + $0x38] sm:$0xf] %v240_v30  ;;  %v244_v32 = vld [vmem:[%s7662_s4 + $0x38] sm:$0xf] }
  0x17   :  { %243 = vst [vmem:[#allocation4 + $0x3c] sm:$0xf] %v242_v31  ;;  %v246_v33 = vld [vmem:[%s7662_s4 + $0x44] sm:$0xff]   ;;  %v250_v34 = vld [vmem:[%s7662_s4 + $0x54] sm:$0xf]  ;;  %v258_v38 = vld [vmem:[%s7662_s4 + $0x5c] sm:$0xff]  }
  0x18   :  { %245 = vst [vmem:[#allocation4 + $0x40] sm:$0xf] %v244_v32  ;;  %247 = vst [vmem:[#allocation4 + $0x44] sm:$0xff] %v246_v33   ;;  %v252_v35 = vld [vmem:[%s7662_s4 + $0x4c] sm:$0xf]  ;;  %v270_v43 = vld [vmem:[%s7662_s4 + $0x74] sm:$0xff]  }
  0x19   :  { %251 = vst [vmem:[#allocation4 + $0x4c] sm:$0xf] %v250_v34  ;;  %v254_v36 = vld [vmem:[%s7662_s4 + $0x58] sm:$0xf]  ;;  %v256_v37 = vld [vmem:[%s7662_s4 + $0x50] sm:$0xf] }
  0x1a   :  { %253 = vst [vmem:[#allocation4 + $0x50] sm:$0xf] %v252_v35  ;;  %255 = vst [vmem:[#allocation4 + $0x54] sm:$0xf] %v254_v36  ;;  %v262_v39 = vld [vmem:[%s7662_s4 + $0x6c] sm:$0xf] }
  0x1b   :  { %257 = vst [vmem:[#allocation4 + $0x58] sm:$0xf] %v256_v37  ;;  %v264_v40 = vld [vmem:[%s7662_s4 + $0x64] sm:$0xf]  ;;  %259 = vst [vmem:[#allocation4 + $0x5c] sm:$0xff] %v258_v38   ;;  %v282_v48 = vld [vmem:[%s7662_s4 + $0x8c] sm:$0xff]  }
  0x1c   :  { %263 = vst [vmem:[#allocation4 + $0x64] sm:$0xf] %v262_v39  ;;  %265 = vst [vmem:[#allocation4 + $0x68] sm:$0xf] %v264_v40  ;;  %v266_v41 = vld [vmem:[%s7662_s4 + $0x70] sm:$0xf] }
  0x1d   :  { %v268_v42 = vld [vmem:[%s7662_s4 + $0x68] sm:$0xf]  ;;  %267 = vst [vmem:[#allocation4 + $0x6c] sm:$0xf] %v266_v41  ;;  %271 = vst [vmem:[#allocation4 + $0x74] sm:$0xff] %v270_v43   ;;  %v306_v58 = vld [vmem:[%s7662_s4 + $0xbc] sm:$0xff]  }
  0x1e   :  { %269 = vst [vmem:[#allocation4 + $0x70] sm:$0xf] %v268_v42  ;;  %v274_v44 = vld [vmem:[%s7662_s4 + $0x84] sm:$0xf]  ;;  %v276_v45 = vld [vmem:[%s7662_s4 + $0x7c] sm:$0xf] }
  0x1f   :  { %v278_v46 = vld [vmem:[%s7662_s4 + $0x88] sm:$0xf]  ;;  %275 = vst [vmem:[#allocation4 + $0x7c] sm:$0xf] %v274_v44  ;;  %277 = vst [vmem:[#allocation4 + $0x80] sm:$0xf] %v276_v45 }
  0x20   :  { %279 = vst [vmem:[#allocation4 + $0x84] sm:$0xf] %v278_v46  ;;  %v280_v47 = vld [vmem:[%s7662_s4 + $0x80] sm:$0xf]  ;;  %v286_v49 = vld [vmem:[%s7662_s4 + $0x9c] sm:$0xf] }
  0x21   :  { %281 = vst [vmem:[#allocation4 + $0x88] sm:$0xf] %v280_v47  ;;  %283 = vst [vmem:[#allocation4 + $0x8c] sm:$0xff] %v282_v48   ;;  %v288_v50 = vld [vmem:[%s7662_s4 + $0x94] sm:$0xf]  ;;  %v294_v53 = vld [vmem:[%s7662_s4 + $0xa4] sm:$0xff]  }
  0x22   :  { %287 = vst [vmem:[#allocation4 + $0x94] sm:$0xf] %v286_v49  ;;  %v290_v51 = vld [vmem:[%s7662_s4 + $0xa0] sm:$0xf]  ;;  %v292_v52 = vld [vmem:[%s7662_s4 + $0x98] sm:$0xf] }
  0x23   :  { %289 = vst [vmem:[#allocation4 + $0x98] sm:$0xf] %v288_v50  ;;  %291 = vst [vmem:[#allocation4 + $0x9c] sm:$0xf] %v290_v51  ;;  %v298_v54 = vld [vmem:[%s7662_s4 + $0xb4] sm:$0xf] }
  0x24   :  { %293 = vst [vmem:[#allocation4 + $0xa0] sm:$0xf] %v292_v52  ;;  %v300_v55 = vld [vmem:[%s7662_s4 + $0xac] sm:$0xf]  ;;  %295 = vst [vmem:[#allocation4 + $0xa4] sm:$0xff] %v294_v53   ;;  %v318_v63 = vld [vmem:[%s7662_s4 + $0xd4] sm:$0xff]  }
  0x25   :  { %299 = vst [vmem:[#allocation4 + $0xac] sm:$0xf] %v298_v54  ;;  %301 = vst [vmem:[#allocation4 + $0xb0] sm:$0xf] %v300_v55  ;;  %v302_v56 = vld [vmem:[%s7662_s4 + $0xb8] sm:$0xf] }
  0x26   :  { %v304_v57 = vld [vmem:[%s7662_s4 + $0xb0] sm:$0xf]  ;;  %303 = vst [vmem:[#allocation4 + $0xb4] sm:$0xf] %v302_v56  ;;  %307 = vst [vmem:[#allocation4 + $0xbc] sm:$0xff] %v306_v58  }
  0x27   :  { %305 = vst [vmem:[#allocation4 + $0xb8] sm:$0xf] %v304_v57  ;;  %v310_v59 = vld [vmem:[%s7662_s4 + $0xcc] sm:$0xf]  ;;  %v312_v60 = vld [vmem:[%s7662_s4 + $0xc4] sm:$0xf] }
  0x28   :  { %v314_v61 = vld [vmem:[%s7662_s4 + $0xd0] sm:$0xf]  ;;  %311 = vst [vmem:[#allocation4 + $0xc4] sm:$0xf] %v310_v59  ;;  %313 = vst [vmem:[#allocation4 + $0xc8] sm:$0xf] %v312_v60 }
  0x29   :  { %315 = vst [vmem:[#allocation4 + $0xcc] sm:$0xf] %v314_v61  ;;  %v316_v62 = vld [vmem:[%s7662_s4 + $0xc8] sm:$0xf]  ;;  %v322_v0 = vld [vmem:[%s7662_s4 + $0xe4] sm:$0xf] }
  0x2a   :  { %317 = vst [vmem:[#allocation4 + $0xd0] sm:$0xf] %v316_v62  ;;  %319 = vst [vmem:[#allocation4 + $0xd4] sm:$0xff] %v318_v63   ;;  %v324_v1 = vld [vmem:[%s7662_s4 + $0xdc] sm:$0xf] }
  0x2b   :  { %323 = vst [vmem:[#allocation4 + $0xdc] sm:$0xf] %v322_v0  ;;  %v326_v2 = vld [vmem:[%s7662_s4 + $0xe8] sm:$0xf]  ;;  %v328_v3 = vld [vmem:[%s7662_s4 + $0xe0] sm:$0xf] }
  0x2c   :  { %325 = vst [vmem:[#allocation4 + $0xe0] sm:$0xf] %v324_v1  ;;  %327 = vst [vmem:[#allocation4 + $0xe4] sm:$0xf] %v326_v2  ;;  %v330_v4 = vld [vmem:[%s7662_s4 + $0xec] sm:$0xf] }
  0x2d   :  { %329 = vst [vmem:[#allocation4 + $0xe8] sm:$0xf] %v328_v3  ;;  %331 = vst [vmem:[#allocation4 + $0xec] sm:$0xf] %v330_v4 }
  0x2e   :  { %482 = vsyncadd [#allocation10 + $0x2], 3840  ;;  %v501_v5 = vld [vmem:[%s7663_s5] sm:$0xf]  ;;  %v503_v6 = vld [vmem:[%s7663_s5 + $0x14] sm:$0xf] }
  0x2f   :  { %502 = vst [vmem:[#allocation5] sm:$0xf] %v501_v5  ;;  %504 = vst [vmem:[#allocation5 + $0x4] sm:$0xf] %v503_v6  ;;  %v505_v7 = vld [vmem:[%s7663_s5 + $0x4] sm:$0xf] }
  0x30   :  { %v507_v8 = vld [vmem:[%s7663_s5 + $0x18] sm:$0xf]  ;;  %v509_v9 = vld [vmem:[%s7663_s5 + $0x8] sm:$0xf]  ;;  %506 = vst [vmem:[#allocation5 + $0x8] sm:$0xf] %v505_v7 }
  0x31   :  { %508 = vst [vmem:[#allocation5 + $0xc] sm:$0xf] %v507_v8  ;;  %510 = vst [vmem:[#allocation5 + $0x10] sm:$0xf] %v509_v9  ;;  %v511_v10 = vld [vmem:[%s7663_s5 + $0x1c] sm:$0xf] }
  0x32   :  { %v513_v11 = vld [vmem:[%s7663_s5 + $0xc] sm:$0xf]  ;;  %v515_v12 = vld [vmem:[%s7663_s5 + $0x20] sm:$0xf]  ;;  %512 = vst [vmem:[#allocation5 + $0x14] sm:$0xf] %v511_v10 }
  0x33   :  { %514 = vst [vmem:[#allocation5 + $0x18] sm:$0xf] %v513_v11  ;;  %516 = vst [vmem:[#allocation5 + $0x1c] sm:$0xf] %v515_v12  ;;  %v517_v13 = vld [vmem:[%s7663_s5 + $0x10] sm:$0xf] }
  0x34   :  { %v519_v14 = vld [vmem:[%s7663_s5 + $0x24] sm:$0xff]   ;;  %v523_v15 = vld [vmem:[%s7663_s5 + $0x3c] sm:$0xf]  ;;  %518 = vst [vmem:[#allocation5 + $0x20] sm:$0xf] %v517_v13  ;;  %v539_v23 = vld [vmem:[%s7663_s5 + $0x4c] sm:$0xff]  }
  0x35   :  { %520 = vst [vmem:[#allocation5 + $0x24] sm:$0xff] %v519_v14   ;;  %524 = vst [vmem:[#allocation5 + $0x2c] sm:$0xf] %v523_v15  ;;  %v525_v16 = vld [vmem:[%s7663_s5 + $0x2c] sm:$0xf]  ;;  %v559_v32 = vld [vmem:[%s7663_s5 + $0x74] sm:$0xff]  }
  0x36   :  { %v527_v17 = vld [vmem:[%s7663_s5 + $0x40] sm:$0xf]  ;;  %v529_v18 = vld [vmem:[%s7663_s5 + $0x30] sm:$0xf]  ;;  %526 = vst [vmem:[#allocation5 + $0x30] sm:$0xf] %v525_v16 }
  0x37   :  { %528 = vst [vmem:[#allocation5 + $0x34] sm:$0xf] %v527_v17  ;;  %530 = vst [vmem:[#allocation5 + $0x38] sm:$0xf] %v529_v18  ;;  %v531_v19 = vld [vmem:[%s7663_s5 + $0x44] sm:$0xf] }
  0x38   :  { %v533_v20 = vld [vmem:[%s7663_s5 + $0x34] sm:$0xf]  ;;  %v535_v21 = vld [vmem:[%s7663_s5 + $0x48] sm:$0xf]  ;;  %532 = vst [vmem:[#allocation5 + $0x3c] sm:$0xf] %v531_v19 }
  0x39   :  { %534 = vst [vmem:[#allocation5 + $0x40] sm:$0xf] %v533_v20  ;;  %536 = vst [vmem:[#allocation5 + $0x44] sm:$0xf] %v535_v21  ;;  %v537_v22 = vld [vmem:[%s7663_s5 + $0x38] sm:$0xf] }
  0x3a   :  { %v543_v24 = vld [vmem:[%s7663_s5 + $0x64] sm:$0xf]  ;;  %538 = vst [vmem:[#allocation5 + $0x48] sm:$0xf] %v537_v22  ;;  %540 = vst [vmem:[#allocation5 + $0x4c] sm:$0xff] %v539_v23   ;;  %v579_v41 = vld [vmem:[%s7663_s5 + $0x9c] sm:$0xff]  }
  0x3b   :  { %544 = vst [vmem:[#allocation5 + $0x54] sm:$0xf] %v543_v24  ;;  %v545_v25 = vld [vmem:[%s7663_s5 + $0x54] sm:$0xf]  ;;  %v547_v26 = vld [vmem:[%s7663_s5 + $0x68] sm:$0xf] }
  0x3c   :  { %v549_v27 = vld [vmem:[%s7663_s5 + $0x58] sm:$0xf]  ;;  %546 = vst [vmem:[#allocation5 + $0x58] sm:$0xf] %v545_v25  ;;  %548 = vst [vmem:[#allocation5 + $0x5c] sm:$0xf] %v547_v26 }
  0x3d   :  { %550 = vst [vmem:[#allocation5 + $0x60] sm:$0xf] %v549_v27  ;;  %v551_v28 = vld [vmem:[%s7663_s5 + $0x6c] sm:$0xf]  ;;  %v553_v29 = vld [vmem:[%s7663_s5 + $0x5c] sm:$0xf] }
  0x3e   :  { %v555_v30 = vld [vmem:[%s7663_s5 + $0x70] sm:$0xf]  ;;  %552 = vst [vmem:[#allocation5 + $0x64] sm:$0xf] %v551_v28  ;;  %554 = vst [vmem:[#allocation5 + $0x68] sm:$0xf] %v553_v29 }
  0x3f   :  { %556 = vst [vmem:[#allocation5 + $0x6c] sm:$0xf] %v555_v30  ;;  %v557_v31 = vld [vmem:[%s7663_s5 + $0x60] sm:$0xf]  ;;  %v563_v33 = vld [vmem:[%s7663_s5 + $0x8c] sm:$0xf] }
  0x40   :  { %558 = vst [vmem:[#allocation5 + $0x70] sm:$0xf] %v557_v31  ;;  %560 = vst [vmem:[#allocation5 + $0x74] sm:$0xff] %v559_v32   ;;  %v565_v34 = vld [vmem:[%s7663_s5 + $0x7c] sm:$0xf]  ;;  %v599_v50 = vld [vmem:[%s7663_s5 + $0xc4] sm:$0xff]  }
  0x41   :  { %564 = vst [vmem:[#allocation5 + $0x7c] sm:$0xf] %v563_v33  ;;  %v567_v35 = vld [vmem:[%s7663_s5 + $0x90] sm:$0xf]  ;;  %v569_v36 = vld [vmem:[%s7663_s5 + $0x80] sm:$0xf] }
  0x42   :  { %566 = vst [vmem:[#allocation5 + $0x80] sm:$0xf] %v565_v34  ;;  %568 = vst [vmem:[#allocation5 + $0x84] sm:$0xf] %v567_v35  ;;  %v571_v37 = vld [vmem:[%s7663_s5 + $0x94] sm:$0xf] }
  0x43   :  { %570 = vst [vmem:[#allocation5 + $0x88] sm:$0xf] %v569_v36  ;;  %v573_v38 = vld [vmem:[%s7663_s5 + $0x84] sm:$0xf]  ;;  %v575_v39 = vld [vmem:[%s7663_s5 + $0x98] sm:$0xf] }
  0x44   :  { %572 = vst [vmem:[#allocation5 + $0x8c] sm:$0xf] %v571_v37  ;;  %574 = vst [vmem:[#allocation5 + $0x90] sm:$0xf] %v573_v38  ;;  %v577_v40 = vld [vmem:[%s7663_s5 + $0x88] sm:$0xf] }
  0x45   :  { %576 = vst [vmem:[#allocation5 + $0x94] sm:$0xf] %v575_v39  ;;  %v583_v42 = vld [vmem:[%s7663_s5 + $0xb4] sm:$0xf]  ;;  %578 = vst [vmem:[#allocation5 + $0x98] sm:$0xf] %v577_v40 }
  0x46   :  { %580 = vst [vmem:[#allocation5 + $0x9c] sm:$0xff] %v579_v41   ;;  %584 = vst [vmem:[#allocation5 + $0xa4] sm:$0xf] %v583_v42  ;;  %v585_v43 = vld [vmem:[%s7663_s5 + $0xa4] sm:$0xf]  ;;  %v619_v59 = vld [vmem:[%s7663_s5 + $0xec] sm:$0xff]  }
  0x47   :  { %v587_v44 = vld [vmem:[%s7663_s5 + $0xb8] sm:$0xf]  ;;  %v589_v45 = vld [vmem:[%s7663_s5 + $0xa8] sm:$0xf]  ;;  %586 = vst [vmem:[#allocation5 + $0xa8] sm:$0xf] %v585_v43 }
  0x48   :  { %588 = vst [vmem:[#allocation5 + $0xac] sm:$0xf] %v587_v44  ;;  %590 = vst [vmem:[#allocation5 + $0xb0] sm:$0xf] %v589_v45  ;;  %v591_v46 = vld [vmem:[%s7663_s5 + $0xbc] sm:$0xf] }
  0x49   :  { %v593_v47 = vld [vmem:[%s7663_s5 + $0xac] sm:$0xf]  ;;  %v595_v48 = vld [vmem:[%s7663_s5 + $0xc0] sm:$0xf]  ;;  %592 = vst [vmem:[#allocation5 + $0xb4] sm:$0xf] %v591_v46 }
  0x4a   :  { %594 = vst [vmem:[#allocation5 + $0xb8] sm:$0xf] %v593_v47  ;;  %596 = vst [vmem:[#allocation5 + $0xbc] sm:$0xf] %v595_v48  ;;  %v597_v49 = vld [vmem:[%s7663_s5 + $0xb0] sm:$0xf] }
  0x4b   :  { %v603_v51 = vld [vmem:[%s7663_s5 + $0xdc] sm:$0xf]  ;;  %598 = vst [vmem:[#allocation5 + $0xc0] sm:$0xf] %v597_v49  ;;  %600 = vst [vmem:[#allocation5 + $0xc4] sm:$0xff] %v599_v50   ;;  %v639_v4 = vld [vmem:[%s7663_s5 + $0x114] sm:$0xff]  }
  0x4c   :  { %604 = vst [vmem:[#allocation5 + $0xcc] sm:$0xf] %v603_v51  ;;  %v605_v52 = vld [vmem:[%s7663_s5 + $0xcc] sm:$0xf]  ;;  %v607_v53 = vld [vmem:[%s7663_s5 + $0xe0] sm:$0xf] }
  0x4d   :  { %v609_v54 = vld [vmem:[%s7663_s5 + $0xd0] sm:$0xf]  ;;  %606 = vst [vmem:[#allocation5 + $0xd0] sm:$0xf] %v605_v52  ;;  %608 = vst [vmem:[#allocation5 + $0xd4] sm:$0xf] %v607_v53 }
  0x4e   :  { %610 = vst [vmem:[#allocation5 + $0xd8] sm:$0xf] %v609_v54  ;;  %v611_v55 = vld [vmem:[%s7663_s5 + $0xe4] sm:$0xf]  ;;  %v613_v56 = vld [vmem:[%s7663_s5 + $0xd4] sm:$0xf] }
  0x4f   :  { %v615_v57 = vld [vmem:[%s7663_s5 + $0xe8] sm:$0xf]  ;;  %612 = vst [vmem:[#allocation5 + $0xdc] sm:$0xf] %v611_v55  ;;  %614 = vst [vmem:[#allocation5 + $0xe0] sm:$0xf] %v613_v56 }
  0x50   :  { %616 = vst [vmem:[#allocation5 + $0xe4] sm:$0xf] %v615_v57  ;;  %v617_v58 = vld [vmem:[%s7663_s5 + $0xd8] sm:$0xf]  ;;  %v623_v60 = vld [vmem:[%s7663_s5 + $0x104] sm:$0xf] }
  0x51   :  { %618 = vst [vmem:[#allocation5 + $0xe8] sm:$0xf] %v617_v58  ;;  %620 = vst [vmem:[#allocation5 + $0xec] sm:$0xff] %v619_v59   ;;  %v625_v61 = vld [vmem:[%s7663_s5 + $0xf4] sm:$0xf]  ;;  %v659_v13 = vld [vmem:[%s7663_s5 + $0x13c] sm:$0xff]  }
  0x52   :  { %624 = vst [vmem:[#allocation5 + $0xf4] sm:$0xf] %v623_v60  ;;  %v627_v62 = vld [vmem:[%s7663_s5 + $0x108] sm:$0xf]  ;;  %v629_v63 = vld [vmem:[%s7663_s5 + $0xf8] sm:$0xf] }
  0x53   :  { %626 = vst [vmem:[#allocation5 + $0xf8] sm:$0xf] %v625_v61  ;;  %628 = vst [vmem:[#allocation5 + $0xfc] sm:$0xf] %v627_v62  ;;  %v631_v0 = vld [vmem:[%s7663_s5 + $0x10c] sm:$0xf] }
  0x54   :  { %630 = vst [vmem:[#allocation5 + $0x100] sm:$0xf] %v629_v63  ;;  %v633_v1 = vld [vmem:[%s7663_s5 + $0xfc] sm:$0xf]  ;;  %v635_v2 = vld [vmem:[%s7663_s5 + $0x110] sm:$0xf] }
  0x55   :  { %632 = vst [vmem:[#allocation5 + $0x104] sm:$0xf] %v631_v0  ;;  %634 = vst [vmem:[#allocation5 + $0x108] sm:$0xf] %v633_v1  ;;  %v637_v3 = vld [vmem:[%s7663_s5 + $0x100] sm:$0xf] }
  0x56   :  { %636 = vst [vmem:[#allocation5 + $0x10c] sm:$0xf] %v635_v2  ;;  %v643_v5 = vld [vmem:[%s7663_s5 + $0x12c] sm:$0xf]  ;;  %638 = vst [vmem:[#allocation5 + $0x110] sm:$0xf] %v637_v3 }
  0x57   :  { %640 = vst [vmem:[#allocation5 + $0x114] sm:$0xff] %v639_v4   ;;  %644 = vst [vmem:[#allocation5 + $0x11c] sm:$0xf] %v643_v5  ;;  %v645_v6 = vld [vmem:[%s7663_s5 + $0x11c] sm:$0xf]  ;;  %v679_v22 = vld [vmem:[%s7663_s5 + $0x164] sm:$0xff]  }
  0x58   :  { %v647_v7 = vld [vmem:[%s7663_s5 + $0x130] sm:$0xf]  ;;  %v649_v8 = vld [vmem:[%s7663_s5 + $0x120] sm:$0xf]  ;;  %646 = vst [vmem:[#allocation5 + $0x120] sm:$0xf] %v645_v6 }
  0x59   :  { %648 = vst [vmem:[#allocation5 + $0x124] sm:$0xf] %v647_v7  ;;  %650 = vst [vmem:[#allocation5 + $0x128] sm:$0xf] %v649_v8  ;;  %v651_v9 = vld [vmem:[%s7663_s5 + $0x134] sm:$0xf] }
  0x5a   :  { %v653_v10 = vld [vmem:[%s7663_s5 + $0x124] sm:$0xf]  ;;  %v655_v11 = vld [vmem:[%s7663_s5 + $0x138] sm:$0xf]  ;;  %652 = vst [vmem:[#allocation5 + $0x12c] sm:$0xf] %v651_v9 }
  0x5b   :  { %654 = vst [vmem:[#allocation5 + $0x130] sm:$0xf] %v653_v10  ;;  %656 = vst [vmem:[#allocation5 + $0x134] sm:$0xf] %v655_v11  ;;  %v657_v12 = vld [vmem:[%s7663_s5 + $0x128] sm:$0xf] }
  0x5c   :  { %v663_v14 = vld [vmem:[%s7663_s5 + $0x154] sm:$0xf]  ;;  %658 = vst [vmem:[#allocation5 + $0x138] sm:$0xf] %v657_v12  ;;  %660 = vst [vmem:[#allocation5 + $0x13c] sm:$0xff] %v659_v13   ;;  %v699_v31 = vld [vmem:[%s7663_s5 + $0x18c] sm:$0xff]  }
  0x5d   :  { %664 = vst [vmem:[#allocation5 + $0x144] sm:$0xf] %v663_v14  ;;  %v665_v15 = vld [vmem:[%s7663_s5 + $0x144] sm:$0xf]  ;;  %v667_v16 = vld [vmem:[%s7663_s5 + $0x158] sm:$0xf] }
  0x5e   :  { %v669_v17 = vld [vmem:[%s7663_s5 + $0x148] sm:$0xf]  ;;  %666 = vst [vmem:[#allocation5 + $0x148] sm:$0xf] %v665_v15  ;;  %668 = vst [vmem:[#allocation5 + $0x14c] sm:$0xf] %v667_v16 }
  0x5f   :  { %670 = vst [vmem:[#allocation5 + $0x150] sm:$0xf] %v669_v17  ;;  %v671_v18 = vld [vmem:[%s7663_s5 + $0x15c] sm:$0xf]  ;;  %v673_v19 = vld [vmem:[%s7663_s5 + $0x14c] sm:$0xf] }
  0x60   :  { %v675_v20 = vld [vmem:[%s7663_s5 + $0x160] sm:$0xf]  ;;  %672 = vst [vmem:[#allocation5 + $0x154] sm:$0xf] %v671_v18  ;;  %674 = vst [vmem:[#allocation5 + $0x158] sm:$0xf] %v673_v19 }
  0x61   :  { %676 = vst [vmem:[#allocation5 + $0x15c] sm:$0xf] %v675_v20  ;;  %v677_v21 = vld [vmem:[%s7663_s5 + $0x150] sm:$0xf]  ;;  %v683_v23 = vld [vmem:[%s7663_s5 + $0x17c] sm:$0xf] }
  0x62   :  { %678 = vst [vmem:[#allocation5 + $0x160] sm:$0xf] %v677_v21  ;;  %680 = vst [vmem:[#allocation5 + $0x164] sm:$0xff] %v679_v22   ;;  %v685_v24 = vld [vmem:[%s7663_s5 + $0x16c] sm:$0xf]  ;;  %v719_v40 = vld [vmem:[%s7663_s5 + $0x1b4] sm:$0xff]  }
  0x63   :  { %684 = vst [vmem:[#allocation5 + $0x16c] sm:$0xf] %v683_v23  ;;  %v687_v25 = vld [vmem:[%s7663_s5 + $0x180] sm:$0xf]  ;;  %v689_v26 = vld [vmem:[%s7663_s5 + $0x170] sm:$0xf] }
  0x64   :  { %686 = vst [vmem:[#allocation5 + $0x170] sm:$0xf] %v685_v24  ;;  %688 = vst [vmem:[#allocation5 + $0x174] sm:$0xf] %v687_v25  ;;  %v691_v27 = vld [vmem:[%s7663_s5 + $0x184] sm:$0xf] }
  0x65   :  { %690 = vst [vmem:[#allocation5 + $0x178] sm:$0xf] %v689_v26  ;;  %v693_v28 = vld [vmem:[%s7663_s5 + $0x174] sm:$0xf]  ;;  %v695_v29 = vld [vmem:[%s7663_s5 + $0x188] sm:$0xf] }
  0x66   :  { %692 = vst [vmem:[#allocation5 + $0x17c] sm:$0xf] %v691_v27  ;;  %694 = vst [vmem:[#allocation5 + $0x180] sm:$0xf] %v693_v28  ;;  %v697_v30 = vld [vmem:[%s7663_s5 + $0x178] sm:$0xf] }
  0x67   :  { %696 = vst [vmem:[#allocation5 + $0x184] sm:$0xf] %v695_v29  ;;  %v703_v32 = vld [vmem:[%s7663_s5 + $0x1a4] sm:$0xf]  ;;  %698 = vst [vmem:[#allocation5 + $0x188] sm:$0xf] %v697_v30 }
  0x68   :  { %700 = vst [vmem:[#allocation5 + $0x18c] sm:$0xff] %v699_v31   ;;  %704 = vst [vmem:[#allocation5 + $0x194] sm:$0xf] %v703_v32  ;;  %v705_v33 = vld [vmem:[%s7663_s5 + $0x194] sm:$0xf]  ;;  %v739_v49 = vld [vmem:[%s7663_s5 + $0x1dc] sm:$0xff]  }
  0x69   :  { %v707_v34 = vld [vmem:[%s7663_s5 + $0x1a8] sm:$0xf]  ;;  %v709_v35 = vld [vmem:[%s7663_s5 + $0x198] sm:$0xf]  ;;  %706 = vst [vmem:[#allocation5 + $0x198] sm:$0xf] %v705_v33 }
  0x6a   :  { %708 = vst [vmem:[#allocation5 + $0x19c] sm:$0xf] %v707_v34  ;;  %710 = vst [vmem:[#allocation5 + $0x1a0] sm:$0xf] %v709_v35  ;;  %v711_v36 = vld [vmem:[%s7663_s5 + $0x1ac] sm:$0xf] }
  0x6b   :  { %v713_v37 = vld [vmem:[%s7663_s5 + $0x19c] sm:$0xf]  ;;  %v715_v38 = vld [vmem:[%s7663_s5 + $0x1b0] sm:$0xf]  ;;  %712 = vst [vmem:[#allocation5 + $0x1a4] sm:$0xf] %v711_v36 }
  0x6c   :  { %714 = vst [vmem:[#allocation5 + $0x1a8] sm:$0xf] %v713_v37  ;;  %716 = vst [vmem:[#allocation5 + $0x1ac] sm:$0xf] %v715_v38  ;;  %v717_v39 = vld [vmem:[%s7663_s5 + $0x1a0] sm:$0xf] }
  0x6d   :  { %v723_v41 = vld [vmem:[%s7663_s5 + $0x1cc] sm:$0xf]  ;;  %718 = vst [vmem:[#allocation5 + $0x1b0] sm:$0xf] %v717_v39  ;;  %720 = vst [vmem:[#allocation5 + $0x1b4] sm:$0xff] %v719_v40   ;;  %v759_v58 = vld [vmem:[%s7663_s5 + $0x204] sm:$0xff]  }
  0x6e   :  { %724 = vst [vmem:[#allocation5 + $0x1bc] sm:$0xf] %v723_v41  ;;  %v725_v42 = vld [vmem:[%s7663_s5 + $0x1bc] sm:$0xf]  ;;  %v727_v43 = vld [vmem:[%s7663_s5 + $0x1d0] sm:$0xf] }
  0x6f   :  { %v729_v44 = vld [vmem:[%s7663_s5 + $0x1c0] sm:$0xf]  ;;  %726 = vst [vmem:[#allocation5 + $0x1c0] sm:$0xf] %v725_v42  ;;  %728 = vst [vmem:[#allocation5 + $0x1c4] sm:$0xf] %v727_v43 }
  0x70   :  { %730 = vst [vmem:[#allocation5 + $0x1c8] sm:$0xf] %v729_v44  ;;  %v731_v45 = vld [vmem:[%s7663_s5 + $0x1d4] sm:$0xf]  ;;  %v733_v46 = vld [vmem:[%s7663_s5 + $0x1c4] sm:$0xf] }
  0x71   :  { %v735_v47 = vld [vmem:[%s7663_s5 + $0x1d8] sm:$0xf]  ;;  %732 = vst [vmem:[#allocation5 + $0x1cc] sm:$0xf] %v731_v45  ;;  %734 = vst [vmem:[#allocation5 + $0x1d0] sm:$0xf] %v733_v46 }
  0x72   :  { %736 = vst [vmem:[#allocation5 + $0x1d4] sm:$0xf] %v735_v47  ;;  %v737_v48 = vld [vmem:[%s7663_s5 + $0x1c8] sm:$0xf]  ;;  %v743_v50 = vld [vmem:[%s7663_s5 + $0x1f4] sm:$0xf] }
  0x73   :  { %738 = vst [vmem:[#allocation5 + $0x1d8] sm:$0xf] %v737_v48  ;;  %740 = vst [vmem:[#allocation5 + $0x1dc] sm:$0xff] %v739_v49   ;;  %v745_v51 = vld [vmem:[%s7663_s5 + $0x1e4] sm:$0xf]  ;;  %v779_v3 = vld [vmem:[%s7663_s5 + $0x22c] sm:$0xff]  }
  0x74   :  { %744 = vst [vmem:[#allocation5 + $0x1e4] sm:$0xf] %v743_v50  ;;  %v747_v52 = vld [vmem:[%s7663_s5 + $0x1f8] sm:$0xf]  ;;  %v749_v53 = vld [vmem:[%s7663_s5 + $0x1e8] sm:$0xf] }
  0x75   :  { %746 = vst [vmem:[#allocation5 + $0x1e8] sm:$0xf] %v745_v51  ;;  %748 = vst [vmem:[#allocation5 + $0x1ec] sm:$0xf] %v747_v52  ;;  %v751_v54 = vld [vmem:[%s7663_s5 + $0x1fc] sm:$0xf] }
  0x76   :  { %750 = vst [vmem:[#allocation5 + $0x1f0] sm:$0xf] %v749_v53  ;;  %v753_v55 = vld [vmem:[%s7663_s5 + $0x1ec] sm:$0xf]  ;;  %v755_v56 = vld [vmem:[%s7663_s5 + $0x200] sm:$0xf] }
  0x77   :  { %752 = vst [vmem:[#allocation5 + $0x1f4] sm:$0xf] %v751_v54  ;;  %754 = vst [vmem:[#allocation5 + $0x1f8] sm:$0xf] %v753_v55  ;;  %v757_v57 = vld [vmem:[%s7663_s5 + $0x1f0] sm:$0xf] }
  0x78   :  { %756 = vst [vmem:[#allocation5 + $0x1fc] sm:$0xf] %v755_v56  ;;  %v763_v59 = vld [vmem:[%s7663_s5 + $0x21c] sm:$0xf]  ;;  %758 = vst [vmem:[#allocation5 + $0x200] sm:$0xf] %v757_v57 }
  0x79   :  { %760 = vst [vmem:[#allocation5 + $0x204] sm:$0xff] %v759_v58   ;;  %764 = vst [vmem:[#allocation5 + $0x20c] sm:$0xf] %v763_v59  ;;  %v765_v60 = vld [vmem:[%s7663_s5 + $0x20c] sm:$0xf]  ;;  %v799_v12 = vld [vmem:[%s7663_s5 + $0x254] sm:$0xff]  }
  0x7a   :  { %v767_v61 = vld [vmem:[%s7663_s5 + $0x220] sm:$0xf]  ;;  %v769_v62 = vld [vmem:[%s7663_s5 + $0x210] sm:$0xf]  ;;  %766 = vst [vmem:[#allocation5 + $0x210] sm:$0xf] %v765_v60 }
  0x7b   :  { %768 = vst [vmem:[#allocation5 + $0x214] sm:$0xf] %v767_v61  ;;  %770 = vst [vmem:[#allocation5 + $0x218] sm:$0xf] %v769_v62  ;;  %v771_v63 = vld [vmem:[%s7663_s5 + $0x224] sm:$0xf] }
  0x7c   :  { %v773_v0 = vld [vmem:[%s7663_s5 + $0x214] sm:$0xf]  ;;  %v775_v1 = vld [vmem:[%s7663_s5 + $0x228] sm:$0xf]  ;;  %772 = vst [vmem:[#allocation5 + $0x21c] sm:$0xf] %v771_v63 }
  0x7d   :  { %774 = vst [vmem:[#allocation5 + $0x220] sm:$0xf] %v773_v0  ;;  %776 = vst [vmem:[#allocation5 + $0x224] sm:$0xf] %v775_v1  ;;  %v777_v2 = vld [vmem:[%s7663_s5 + $0x218] sm:$0xf] }
  0x7e   :  { %v783_v4 = vld [vmem:[%s7663_s5 + $0x244] sm:$0xf]  ;;  %778 = vst [vmem:[#allocation5 + $0x228] sm:$0xf] %v777_v2  ;;  %780 = vst [vmem:[#allocation5 + $0x22c] sm:$0xff] %v779_v3   ;;  %v819_v21 = vld [vmem:[%s7663_s5 + $0x27c] sm:$0xff]  }
  0x7f   :  { %784 = vst [vmem:[#allocation5 + $0x234] sm:$0xf] %v783_v4  ;;  %v785_v5 = vld [vmem:[%s7663_s5 + $0x234] sm:$0xf]  ;;  %v787_v6 = vld [vmem:[%s7663_s5 + $0x248] sm:$0xf] }
  0x80   :  { %v789_v7 = vld [vmem:[%s7663_s5 + $0x238] sm:$0xf]  ;;  %786 = vst [vmem:[#allocation5 + $0x238] sm:$0xf] %v785_v5  ;;  %788 = vst [vmem:[#allocation5 + $0x23c] sm:$0xf] %v787_v6 }
  0x81   :  { %790 = vst [vmem:[#allocation5 + $0x240] sm:$0xf] %v789_v7  ;;  %v791_v8 = vld [vmem:[%s7663_s5 + $0x24c] sm:$0xf]  ;;  %v793_v9 = vld [vmem:[%s7663_s5 + $0x23c] sm:$0xf] }
  0x82   :  { %v795_v10 = vld [vmem:[%s7663_s5 + $0x250] sm:$0xf]  ;;  %792 = vst [vmem:[#allocation5 + $0x244] sm:$0xf] %v791_v8  ;;  %794 = vst [vmem:[#allocation5 + $0x248] sm:$0xf] %v793_v9 }
  0x83   :  { %796 = vst [vmem:[#allocation5 + $0x24c] sm:$0xf] %v795_v10  ;;  %v797_v11 = vld [vmem:[%s7663_s5 + $0x240] sm:$0xf]  ;;  %v803_v13 = vld [vmem:[%s7663_s5 + $0x26c] sm:$0xf] }
  0x84   :  { %798 = vst [vmem:[#allocation5 + $0x250] sm:$0xf] %v797_v11  ;;  %800 = vst [vmem:[#allocation5 + $0x254] sm:$0xff] %v799_v12   ;;  %v805_v14 = vld [vmem:[%s7663_s5 + $0x25c] sm:$0xf]  ;;  %v839_v30 = vld [vmem:[%s7663_s5 + $0x2a4] sm:$0xff]  }
  0x85   :  { %804 = vst [vmem:[#allocation5 + $0x25c] sm:$0xf] %v803_v13  ;;  %v807_v15 = vld [vmem:[%s7663_s5 + $0x270] sm:$0xf]  ;;  %v809_v16 = vld [vmem:[%s7663_s5 + $0x260] sm:$0xf] }
  0x86   :  { %806 = vst [vmem:[#allocation5 + $0x260] sm:$0xf] %v805_v14  ;;  %808 = vst [vmem:[#allocation5 + $0x264] sm:$0xf] %v807_v15  ;;  %v811_v17 = vld [vmem:[%s7663_s5 + $0x274] sm:$0xf] }
  0x87   :  { %810 = vst [vmem:[#allocation5 + $0x268] sm:$0xf] %v809_v16  ;;  %v813_v18 = vld [vmem:[%s7663_s5 + $0x264] sm:$0xf]  ;;  %v815_v19 = vld [vmem:[%s7663_s5 + $0x278] sm:$0xf] }
  0x88   :  { %812 = vst [vmem:[#allocation5 + $0x26c] sm:$0xf] %v811_v17  ;;  %814 = vst [vmem:[#allocation5 + $0x270] sm:$0xf] %v813_v18  ;;  %v817_v20 = vld [vmem:[%s7663_s5 + $0x268] sm:$0xf] }
  0x89   :  { %816 = vst [vmem:[#allocation5 + $0x274] sm:$0xf] %v815_v19  ;;  %v823_v22 = vld [vmem:[%s7663_s5 + $0x294] sm:$0xf]  ;;  %818 = vst [vmem:[#allocation5 + $0x278] sm:$0xf] %v817_v20 }
  0x8a   :  { %820 = vst [vmem:[#allocation5 + $0x27c] sm:$0xff] %v819_v21   ;;  %824 = vst [vmem:[#allocation5 + $0x284] sm:$0xf] %v823_v22  ;;  %v825_v23 = vld [vmem:[%s7663_s5 + $0x284] sm:$0xf]  ;;  %v859_v39 = vld [vmem:[%s7663_s5 + $0x2cc] sm:$0xff]  }
  0x8b   :  { %v827_v24 = vld [vmem:[%s7663_s5 + $0x298] sm:$0xf]  ;;  %v829_v25 = vld [vmem:[%s7663_s5 + $0x288] sm:$0xf]  ;;  %826 = vst [vmem:[#allocation5 + $0x288] sm:$0xf] %v825_v23 }
  0x8c   :  { %828 = vst [vmem:[#allocation5 + $0x28c] sm:$0xf] %v827_v24  ;;  %830 = vst [vmem:[#allocation5 + $0x290] sm:$0xf] %v829_v25  ;;  %v831_v26 = vld [vmem:[%s7663_s5 + $0x29c] sm:$0xf] }
  0x8d   :  { %v833_v27 = vld [vmem:[%s7663_s5 + $0x28c] sm:$0xf]  ;;  %v835_v28 = vld [vmem:[%s7663_s5 + $0x2a0] sm:$0xf]  ;;  %832 = vst [vmem:[#allocation5 + $0x294] sm:$0xf] %v831_v26 }
  0x8e   :  { %834 = vst [vmem:[#allocation5 + $0x298] sm:$0xf] %v833_v27  ;;  %836 = vst [vmem:[#allocation5 + $0x29c] sm:$0xf] %v835_v28  ;;  %v837_v29 = vld [vmem:[%s7663_s5 + $0x290] sm:$0xf] }
  0x8f   :  { %v843_v31 = vld [vmem:[%s7663_s5 + $0x2bc] sm:$0xf]  ;;  %838 = vst [vmem:[#allocation5 + $0x2a0] sm:$0xf] %v837_v29  ;;  %840 = vst [vmem:[#allocation5 + $0x2a4] sm:$0xff] %v839_v30   ;;  %v879_v48 = vld [vmem:[%s7663_s5 + $0x2f4] sm:$0xff]  }
  0x90   :  { %844 = vst [vmem:[#allocation5 + $0x2ac] sm:$0xf] %v843_v31  ;;  %v845_v32 = vld [vmem:[%s7663_s5 + $0x2ac] sm:$0xf]  ;;  %v847_v33 = vld [vmem:[%s7663_s5 + $0x2c0] sm:$0xf] }
  0x91   :  { %v849_v34 = vld [vmem:[%s7663_s5 + $0x2b0] sm:$0xf]  ;;  %846 = vst [vmem:[#allocation5 + $0x2b0] sm:$0xf] %v845_v32  ;;  %848 = vst [vmem:[#allocation5 + $0x2b4] sm:$0xf] %v847_v33 }
  0x92   :  { %850 = vst [vmem:[#allocation5 + $0x2b8] sm:$0xf] %v849_v34  ;;  %v851_v35 = vld [vmem:[%s7663_s5 + $0x2c4] sm:$0xf]  ;;  %v853_v36 = vld [vmem:[%s7663_s5 + $0x2b4] sm:$0xf] }
  0x93   :  { %v855_v37 = vld [vmem:[%s7663_s5 + $0x2c8] sm:$0xf]  ;;  %852 = vst [vmem:[#allocation5 + $0x2bc] sm:$0xf] %v851_v35  ;;  %854 = vst [vmem:[#allocation5 + $0x2c0] sm:$0xf] %v853_v36 }
  0x94   :  { %856 = vst [vmem:[#allocation5 + $0x2c4] sm:$0xf] %v855_v37  ;;  %v857_v38 = vld [vmem:[%s7663_s5 + $0x2b8] sm:$0xf]  ;;  %v863_v40 = vld [vmem:[%s7663_s5 + $0x2e4] sm:$0xf] }
  0x95   :  { %858 = vst [vmem:[#allocation5 + $0x2c8] sm:$0xf] %v857_v38  ;;  %860 = vst [vmem:[#allocation5 + $0x2cc] sm:$0xff] %v859_v39   ;;  %v865_v41 = vld [vmem:[%s7663_s5 + $0x2d4] sm:$0xf] }
  0x96   :  { %864 = vst [vmem:[#allocation5 + $0x2d4] sm:$0xf] %v863_v40  ;;  %v867_v42 = vld [vmem:[%s7663_s5 + $0x2e8] sm:$0xf]  ;;  %v869_v43 = vld [vmem:[%s7663_s5 + $0x2d8] sm:$0xf] }
  0x97   :  { %866 = vst [vmem:[#allocation5 + $0x2d8] sm:$0xf] %v865_v41  ;;  %868 = vst [vmem:[#allocation5 + $0x2dc] sm:$0xf] %v867_v42  ;;  %v871_v44 = vld [vmem:[%s7663_s5 + $0x2ec] sm:$0xf] }
  0x98   :  { %870 = vst [vmem:[#allocation5 + $0x2e0] sm:$0xf] %v869_v43  ;;  %v873_v45 = vld [vmem:[%s7663_s5 + $0x2dc] sm:$0xf]  ;;  %v875_v46 = vld [vmem:[%s7663_s5 + $0x2f0] sm:$0xf] }
  0x99   :  { %872 = vst [vmem:[#allocation5 + $0x2e4] sm:$0xf] %v871_v44  ;;  %874 = vst [vmem:[#allocation5 + $0x2e8] sm:$0xf] %v873_v45  ;;  %v877_v47 = vld [vmem:[%s7663_s5 + $0x2e0] sm:$0xf] }
  0x9a   :  { %876 = vst [vmem:[#allocation5 + $0x2ec] sm:$0xf] %v875_v46  ;;  %v883_v49 = vld [vmem:[%s7663_s5 + $0x30c] sm:$0xf]  ;;  %878 = vst [vmem:[#allocation5 + $0x2f0] sm:$0xf] %v877_v47 }
  0x9b   :  { %880 = vst [vmem:[#allocation5 + $0x2f4] sm:$0xff] %v879_v48   ;;  %884 = vst [vmem:[#allocation5 + $0x2fc] sm:$0xf] %v883_v49  ;;  %v885_v50 = vld [vmem:[%s7663_s5 + $0x2fc] sm:$0xf] }
  0x9c   :  { %v887_v51 = vld [vmem:[%s7663_s5 + $0x310] sm:$0xf]  ;;  %v889_v52 = vld [vmem:[%s7663_s5 + $0x300] sm:$0xf]  ;;  %886 = vst [vmem:[#allocation5 + $0x300] sm:$0xf] %v885_v50 }
  0x9d   :  { %888 = vst [vmem:[#allocation5 + $0x304] sm:$0xf] %v887_v51  ;;  %890 = vst [vmem:[#allocation5 + $0x308] sm:$0xf] %v889_v52  ;;  %v891_v53 = vld [vmem:[%s7663_s5 + $0x314] sm:$0xf] }
  0x9e   :  { %v893_v54 = vld [vmem:[%s7663_s5 + $0x304] sm:$0xf]  ;;  %v895_v55 = vld [vmem:[%s7663_s5 + $0x318] sm:$0xf]  ;;  %892 = vst [vmem:[#allocation5 + $0x30c] sm:$0xf] %v891_v53 }
  0x9f   :  { %894 = vst [vmem:[#allocation5 + $0x310] sm:$0xf] %v893_v54  ;;  %896 = vst [vmem:[#allocation5 + $0x314] sm:$0xf] %v895_v55  ;;  %v897_v56 = vld [vmem:[%s7663_s5 + $0x308] sm:$0xf] }
  0xa0   :  { %v899_v57 = vld [vmem:[%s7663_s5 + $0x31c] sm:$0xf]  ;;  %898 = vst [vmem:[#allocation5 + $0x318] sm:$0xf] %v897_v56 }
  0xa1   :  { %900 = vst [vmem:[#allocation5 + $0x31c] sm:$0xf] %v899_v57 }
  0xa2   :  { %1331 = vsyncadd [#allocation10 + $0x3], 12800  ;;  %v1350_v58 = vld [vmem:[%s7664_s6] sm:$0xf]  ;;  %v1352_v59 = vld [vmem:[%s7664_s6 + $0xc] sm:$0xf] }
  0xa3   :  { %1351 = vst [vmem:[#allocation6] sm:$0xf] %v1350_v58  ;;  %1353 = vst [vmem:[#allocation6 + $0x4] sm:$0xf] %v1352_v59  ;;  %v1354_v60 = vld [vmem:[%s7664_s6 + $0x4] sm:$0xf] }
  0xa4   :  { %v1356_v61 = vld [vmem:[%s7664_s6 + $0x10] sm:$0xf]  ;;  %v1358_v62 = vld [vmem:[%s7664_s6 + $0x8] sm:$0xf]  ;;  %1355 = vst [vmem:[#allocation6 + $0x8] sm:$0xf] %v1354_v60 }
  0xa5   :  { %1357 = vst [vmem:[#allocation6 + $0xc] sm:$0xf] %v1356_v61  ;;  %1359 = vst [vmem:[#allocation6 + $0x10] sm:$0xf] %v1358_v62  ;;  %v1360_v63 = vld [vmem:[%s7664_s6 + $0x14] sm:$0xff]   ;;  %v1372_v4 = vld [vmem:[%s7664_s6 + $0x2c] sm:$0xff]  }
  0xa6   :  { %v1364_v0 = vld [vmem:[%s7664_s6 + $0x24] sm:$0xf]  ;;  %v1366_v1 = vld [vmem:[%s7664_s6 + $0x1c] sm:$0xf]  ;;  %1361 = vst [vmem:[#allocation6 + $0x14] sm:$0xff] %v1360_v63   ;;  %1373 = vst [vmem:[#allocation6 + $0x2c] sm:$0xff] %v1372_v4  }
  0xa7   :  { %1365 = vst [vmem:[#allocation6 + $0x1c] sm:$0xf] %v1364_v0  ;;  %1367 = vst [vmem:[#allocation6 + $0x20] sm:$0xf] %v1366_v1  ;;  %v1368_v2 = vld [vmem:[%s7664_s6 + $0x28] sm:$0xf] }
  0xa8   :  { %v1370_v3 = vld [vmem:[%s7664_s6 + $0x20] sm:$0xf]  ;;  %1369 = vst [vmem:[#allocation6 + $0x24] sm:$0xf] %v1368_v2  ;;  %v1376_v5 = vld [vmem:[%s7664_s6 + $0x3c] sm:$0xf] }
  0xa9   :  { %1371 = vst [vmem:[#allocation6 + $0x28] sm:$0xf] %v1370_v3  ;;  %v1378_v6 = vld [vmem:[%s7664_s6 + $0x34] sm:$0xf]  ;;  %v1380_v7 = vld [vmem:[%s7664_s6 + $0x40] sm:$0xf] }
  0xaa   :  { %1377 = vst [vmem:[#allocation6 + $0x34] sm:$0xf] %v1376_v5  ;;  %1379 = vst [vmem:[#allocation6 + $0x38] sm:$0xf] %v1378_v6  ;;  %v1382_v8 = vld [vmem:[%s7664_s6 + $0x38] sm:$0xf] }
  0xab   :  { %1381 = vst [vmem:[#allocation6 + $0x3c] sm:$0xf] %v1380_v7  ;;  %v1384_v9 = vld [vmem:[%s7664_s6 + $0x44] sm:$0xff]   ;;  %v1388_v10 = vld [vmem:[%s7664_s6 + $0x54] sm:$0xf]  ;;  %v1396_v14 = vld [vmem:[%s7664_s6 + $0x5c] sm:$0xff]  }
  0xac   :  { %1383 = vst [vmem:[#allocation6 + $0x40] sm:$0xf] %v1382_v8  ;;  %1385 = vst [vmem:[#allocation6 + $0x44] sm:$0xff] %v1384_v9   ;;  %v1390_v11 = vld [vmem:[%s7664_s6 + $0x4c] sm:$0xf]  ;;  %v1408_v19 = vld [vmem:[%s7664_s6 + $0x74] sm:$0xff]  }
  0xad   :  { %1389 = vst [vmem:[#allocation6 + $0x4c] sm:$0xf] %v1388_v10  ;;  %v1392_v12 = vld [vmem:[%s7664_s6 + $0x58] sm:$0xf]  ;;  %v1394_v13 = vld [vmem:[%s7664_s6 + $0x50] sm:$0xf] }
  0xae   :  { %1391 = vst [vmem:[#allocation6 + $0x50] sm:$0xf] %v1390_v11  ;;  %1393 = vst [vmem:[#allocation6 + $0x54] sm:$0xf] %v1392_v12  ;;  %v1400_v15 = vld [vmem:[%s7664_s6 + $0x6c] sm:$0xf] }
  0xaf   :  { %1395 = vst [vmem:[#allocation6 + $0x58] sm:$0xf] %v1394_v13  ;;  %v1402_v16 = vld [vmem:[%s7664_s6 + $0x64] sm:$0xf]  ;;  %1397 = vst [vmem:[#allocation6 + $0x5c] sm:$0xff] %v1396_v14   ;;  %v1420_v24 = vld [vmem:[%s7664_s6 + $0x8c] sm:$0xff]  }
  0xb0   :  { %1401 = vst [vmem:[#allocation6 + $0x64] sm:$0xf] %v1400_v15  ;;  %1403 = vst [vmem:[#allocation6 + $0x68] sm:$0xf] %v1402_v16  ;;  %v1404_v17 = vld [vmem:[%s7664_s6 + $0x70] sm:$0xf] }
  0xb1   :  { %v1406_v18 = vld [vmem:[%s7664_s6 + $0x68] sm:$0xf]  ;;  %1405 = vst [vmem:[#allocation6 + $0x6c] sm:$0xf] %v1404_v17  ;;  %1409 = vst [vmem:[#allocation6 + $0x74] sm:$0xff] %v1408_v19   ;;  %v1444_v34 = vld [vmem:[%s7664_s6 + $0xbc] sm:$0xff]  }
  0xb2   :  { %1407 = vst [vmem:[#allocation6 + $0x70] sm:$0xf] %v1406_v18  ;;  %v1412_v20 = vld [vmem:[%s7664_s6 + $0x84] sm:$0xf]  ;;  %v1414_v21 = vld [vmem:[%s7664_s6 + $0x7c] sm:$0xf] }
  0xb3   :  { %v1416_v22 = vld [vmem:[%s7664_s6 + $0x88] sm:$0xf]  ;;  %1413 = vst [vmem:[#allocation6 + $0x7c] sm:$0xf] %v1412_v20  ;;  %1415 = vst [vmem:[#allocation6 + $0x80] sm:$0xf] %v1414_v21 }
  0xb4   :  { %1417 = vst [vmem:[#allocation6 + $0x84] sm:$0xf] %v1416_v22  ;;  %v1418_v23 = vld [vmem:[%s7664_s6 + $0x80] sm:$0xf]  ;;  %v1424_v25 = vld [vmem:[%s7664_s6 + $0x9c] sm:$0xf] }
  0xb5   :  { %1419 = vst [vmem:[#allocation6 + $0x88] sm:$0xf] %v1418_v23  ;;  %1421 = vst [vmem:[#allocation6 + $0x8c] sm:$0xff] %v1420_v24   ;;  %v1426_v26 = vld [vmem:[%s7664_s6 + $0x94] sm:$0xf]  ;;  %v1432_v29 = vld [vmem:[%s7664_s6 + $0xa4] sm:$0xff]  }
  0xb6   :  { %1425 = vst [vmem:[#allocation6 + $0x94] sm:$0xf] %v1424_v25  ;;  %v1428_v27 = vld [vmem:[%s7664_s6 + $0xa0] sm:$0xf]  ;;  %v1430_v28 = vld [vmem:[%s7664_s6 + $0x98] sm:$0xf] }
  0xb7   :  { %1427 = vst [vmem:[#allocation6 + $0x98] sm:$0xf] %v1426_v26  ;;  %1429 = vst [vmem:[#allocation6 + $0x9c] sm:$0xf] %v1428_v27  ;;  %v1436_v30 = vld [vmem:[%s7664_s6 + $0xb4] sm:$0xf] }
  0xb8   :  { %1431 = vst [vmem:[#allocation6 + $0xa0] sm:$0xf] %v1430_v28  ;;  %v1438_v31 = vld [vmem:[%s7664_s6 + $0xac] sm:$0xf]  ;;  %1433 = vst [vmem:[#allocation6 + $0xa4] sm:$0xff] %v1432_v29   ;;  %v1456_v39 = vld [vmem:[%s7664_s6 + $0xd4] sm:$0xff]  }
  0xb9   :  { %1437 = vst [vmem:[#allocation6 + $0xac] sm:$0xf] %v1436_v30  ;;  %1439 = vst [vmem:[#allocation6 + $0xb0] sm:$0xf] %v1438_v31  ;;  %v1440_v32 = vld [vmem:[%s7664_s6 + $0xb8] sm:$0xf] }
  0xba   :  { %v1442_v33 = vld [vmem:[%s7664_s6 + $0xb0] sm:$0xf]  ;;  %1441 = vst [vmem:[#allocation6 + $0xb4] sm:$0xf] %v1440_v32  ;;  %1445 = vst [vmem:[#allocation6 + $0xbc] sm:$0xff] %v1444_v34   ;;  %v1480_v49 = vld [vmem:[%s7664_s6 + $0x104] sm:$0xff]  }
  0xbb   :  { %1443 = vst [vmem:[#allocation6 + $0xb8] sm:$0xf] %v1442_v33  ;;  %v1448_v35 = vld [vmem:[%s7664_s6 + $0xcc] sm:$0xf]  ;;  %v1450_v36 = vld [vmem:[%s7664_s6 + $0xc4] sm:$0xf] }
  0xbc   :  { %v1452_v37 = vld [vmem:[%s7664_s6 + $0xd0] sm:$0xf]  ;;  %1449 = vst [vmem:[#allocation6 + $0xc4] sm:$0xf] %v1448_v35  ;;  %1451 = vst [vmem:[#allocation6 + $0xc8] sm:$0xf] %v1450_v36 }
  0xbd   :  { %1453 = vst [vmem:[#allocation6 + $0xcc] sm:$0xf] %v1452_v37  ;;  %v1454_v38 = vld [vmem:[%s7664_s6 + $0xc8] sm:$0xf]  ;;  %v1460_v40 = vld [vmem:[%s7664_s6 + $0xe4] sm:$0xf] }
  0xbe   :  { %1455 = vst [vmem:[#allocation6 + $0xd0] sm:$0xf] %v1454_v38  ;;  %1457 = vst [vmem:[#allocation6 + $0xd4] sm:$0xff] %v1456_v39   ;;  %v1462_v41 = vld [vmem:[%s7664_s6 + $0xdc] sm:$0xf]  ;;  %v1468_v44 = vld [vmem:[%s7664_s6 + $0xec] sm:$0xff]  }
  0xbf   :  { %1461 = vst [vmem:[#allocation6 + $0xdc] sm:$0xf] %v1460_v40  ;;  %v1464_v42 = vld [vmem:[%s7664_s6 + $0xe8] sm:$0xf]  ;;  %v1466_v43 = vld [vmem:[%s7664_s6 + $0xe0] sm:$0xf] }
  0xc0   :  { %1463 = vst [vmem:[#allocation6 + $0xe0] sm:$0xf] %v1462_v41  ;;  %1465 = vst [vmem:[#allocation6 + $0xe4] sm:$0xf] %v1464_v42  ;;  %v1472_v45 = vld [vmem:[%s7664_s6 + $0xfc] sm:$0xf] }
  0xc1   :  { %1467 = vst [vmem:[#allocation6 + $0xe8] sm:$0xf] %v1466_v43  ;;  %v1474_v46 = vld [vmem:[%s7664_s6 + $0xf4] sm:$0xf]  ;;  %1469 = vst [vmem:[#allocation6 + $0xec] sm:$0xff] %v1468_v44   ;;  %v1492_v54 = vld [vmem:[%s7664_s6 + $0x11c] sm:$0xff]  }
  0xc2   :  { %1473 = vst [vmem:[#allocation6 + $0xf4] sm:$0xf] %v1472_v45  ;;  %1475 = vst [vmem:[#allocation6 + $0xf8] sm:$0xf] %v1474_v46  ;;  %v1476_v47 = vld [vmem:[%s7664_s6 + $0x100] sm:$0xf] }
  0xc3   :  { %v1478_v48 = vld [vmem:[%s7664_s6 + $0xf8] sm:$0xf]  ;;  %1477 = vst [vmem:[#allocation6 + $0xfc] sm:$0xf] %v1476_v47  ;;  %1481 = vst [vmem:[#allocation6 + $0x104] sm:$0xff] %v1480_v49   ;;  %v1516_v0 = vld [vmem:[%s7664_s6 + $0x14c] sm:$0xff]  }
  0xc4   :  { %1479 = vst [vmem:[#allocation6 + $0x100] sm:$0xf] %v1478_v48  ;;  %v1484_v50 = vld [vmem:[%s7664_s6 + $0x114] sm:$0xf]  ;;  %v1486_v51 = vld [vmem:[%s7664_s6 + $0x10c] sm:$0xf] }
  0xc5   :  { %v1488_v52 = vld [vmem:[%s7664_s6 + $0x118] sm:$0xf]  ;;  %1485 = vst [vmem:[#allocation6 + $0x10c] sm:$0xf] %v1484_v50  ;;  %1487 = vst [vmem:[#allocation6 + $0x110] sm:$0xf] %v1486_v51 }
  0xc6   :  { %1489 = vst [vmem:[#allocation6 + $0x114] sm:$0xf] %v1488_v52  ;;  %v1490_v53 = vld [vmem:[%s7664_s6 + $0x110] sm:$0xf]  ;;  %v1496_v55 = vld [vmem:[%s7664_s6 + $0x12c] sm:$0xf] }
  0xc7   :  { %1491 = vst [vmem:[#allocation6 + $0x118] sm:$0xf] %v1490_v53  ;;  %1493 = vst [vmem:[#allocation6 + $0x11c] sm:$0xff] %v1492_v54   ;;  %v1498_v56 = vld [vmem:[%s7664_s6 + $0x124] sm:$0xf]  ;;  %v1504_v59 = vld [vmem:[%s7664_s6 + $0x134] sm:$0xff]  }
  0xc8   :  { %1497 = vst [vmem:[#allocation6 + $0x124] sm:$0xf] %v1496_v55  ;;  %v1500_v57 = vld [vmem:[%s7664_s6 + $0x130] sm:$0xf]  ;;  %v1502_v58 = vld [vmem:[%s7664_s6 + $0x128] sm:$0xf] }
  0xc9   :  { %1499 = vst [vmem:[#allocation6 + $0x128] sm:$0xf] %v1498_v56  ;;  %1501 = vst [vmem:[#allocation6 + $0x12c] sm:$0xf] %v1500_v57  ;;  %v1508_v60 = vld [vmem:[%s7664_s6 + $0x144] sm:$0xf] }
  0xca   :  { %1503 = vst [vmem:[#allocation6 + $0x130] sm:$0xf] %v1502_v58  ;;  %v1510_v61 = vld [vmem:[%s7664_s6 + $0x13c] sm:$0xf]  ;;  %1505 = vst [vmem:[#allocation6 + $0x134] sm:$0xff] %v1504_v59   ;;  %v1528_v5 = vld [vmem:[%s7664_s6 + $0x164] sm:$0xff]  }
  0xcb   :  { %1509 = vst [vmem:[#allocation6 + $0x13c] sm:$0xf] %v1508_v60  ;;  %1511 = vst [vmem:[#allocation6 + $0x140] sm:$0xf] %v1510_v61  ;;  %v1512_v62 = vld [vmem:[%s7664_s6 + $0x148] sm:$0xf] }
  0xcc   :  { %v1514_v63 = vld [vmem:[%s7664_s6 + $0x140] sm:$0xf]  ;;  %1513 = vst [vmem:[#allocation6 + $0x144] sm:$0xf] %v1512_v62  ;;  %1517 = vst [vmem:[#allocation6 + $0x14c] sm:$0xff] %v1516_v0   ;;  %v1552_v15 = vld [vmem:[%s7664_s6 + $0x194] sm:$0xff]  }
  0xcd   :  { %1515 = vst [vmem:[#allocation6 + $0x148] sm:$0xf] %v1514_v63  ;;  %v1520_v1 = vld [vmem:[%s7664_s6 + $0x15c] sm:$0xf]  ;;  %v1522_v2 = vld [vmem:[%s7664_s6 + $0x154] sm:$0xf] }
  0xce   :  { %v1524_v3 = vld [vmem:[%s7664_s6 + $0x160] sm:$0xf]  ;;  %1521 = vst [vmem:[#allocation6 + $0x154] sm:$0xf] %v1520_v1  ;;  %1523 = vst [vmem:[#allocation6 + $0x158] sm:$0xf] %v1522_v2 }
  0xcf   :  { %1525 = vst [vmem:[#allocation6 + $0x15c] sm:$0xf] %v1524_v3  ;;  %v1526_v4 = vld [vmem:[%s7664_s6 + $0x158] sm:$0xf]  ;;  %v1532_v6 = vld [vmem:[%s7664_s6 + $0x174] sm:$0xf] }
  0xd0   :  { %1527 = vst [vmem:[#allocation6 + $0x160] sm:$0xf] %v1526_v4  ;;  %1529 = vst [vmem:[#allocation6 + $0x164] sm:$0xff] %v1528_v5   ;;  %v1534_v7 = vld [vmem:[%s7664_s6 + $0x16c] sm:$0xf]  ;;  %v1540_v10 = vld [vmem:[%s7664_s6 + $0x17c] sm:$0xff]  }
  0xd1   :  { %1533 = vst [vmem:[#allocation6 + $0x16c] sm:$0xf] %v1532_v6  ;;  %v1536_v8 = vld [vmem:[%s7664_s6 + $0x178] sm:$0xf]  ;;  %v1538_v9 = vld [vmem:[%s7664_s6 + $0x170] sm:$0xf] }
  0xd2   :  { %1535 = vst [vmem:[#allocation6 + $0x170] sm:$0xf] %v1534_v7  ;;  %1537 = vst [vmem:[#allocation6 + $0x174] sm:$0xf] %v1536_v8  ;;  %v1544_v11 = vld [vmem:[%s7664_s6 + $0x18c] sm:$0xf] }
  0xd3   :  { %1539 = vst [vmem:[#allocation6 + $0x178] sm:$0xf] %v1538_v9  ;;  %v1546_v12 = vld [vmem:[%s7664_s6 + $0x184] sm:$0xf]  ;;  %1541 = vst [vmem:[#allocation6 + $0x17c] sm:$0xff] %v1540_v10   ;;  %v1564_v20 = vld [vmem:[%s7664_s6 + $0x1ac] sm:$0xff]  }
  0xd4   :  { %1545 = vst [vmem:[#allocation6 + $0x184] sm:$0xf] %v1544_v11  ;;  %1547 = vst [vmem:[#allocation6 + $0x188] sm:$0xf] %v1546_v12  ;;  %v1548_v13 = vld [vmem:[%s7664_s6 + $0x190] sm:$0xf] }
  0xd5   :  { %v1550_v14 = vld [vmem:[%s7664_s6 + $0x188] sm:$0xf]  ;;  %1549 = vst [vmem:[#allocation6 + $0x18c] sm:$0xf] %v1548_v13  ;;  %1553 = vst [vmem:[#allocation6 + $0x194] sm:$0xff] %v1552_v15   ;;  %v1588_v30 = vld [vmem:[%s7664_s6 + $0x1dc] sm:$0xff]  }
  0xd6   :  { %1551 = vst [vmem:[#allocation6 + $0x190] sm:$0xf] %v1550_v14  ;;  %v1556_v16 = vld [vmem:[%s7664_s6 + $0x1a4] sm:$0xf]  ;;  %v1558_v17 = vld [vmem:[%s7664_s6 + $0x19c] sm:$0xf] }
  0xd7   :  { %v1560_v18 = vld [vmem:[%s7664_s6 + $0x1a8] sm:$0xf]  ;;  %1557 = vst [vmem:[#allocation6 + $0x19c] sm:$0xf] %v1556_v16  ;;  %1559 = vst [vmem:[#allocation6 + $0x1a0] sm:$0xf] %v1558_v17 }
  0xd8   :  { %1561 = vst [vmem:[#allocation6 + $0x1a4] sm:$0xf] %v1560_v18  ;;  %v1562_v19 = vld [vmem:[%s7664_s6 + $0x1a0] sm:$0xf]  ;;  %v1568_v21 = vld [vmem:[%s7664_s6 + $0x1bc] sm:$0xf] }
  0xd9   :  { %1563 = vst [vmem:[#allocation6 + $0x1a8] sm:$0xf] %v1562_v19  ;;  %1565 = vst [vmem:[#allocation6 + $0x1ac] sm:$0xff] %v1564_v20   ;;  %v1570_v22 = vld [vmem:[%s7664_s6 + $0x1b4] sm:$0xf]  ;;  %v1576_v25 = vld [vmem:[%s7664_s6 + $0x1c4] sm:$0xff]  }
  0xda   :  { %1569 = vst [vmem:[#allocation6 + $0x1b4] sm:$0xf] %v1568_v21  ;;  %v1572_v23 = vld [vmem:[%s7664_s6 + $0x1c0] sm:$0xf]  ;;  %v1574_v24 = vld [vmem:[%s7664_s6 + $0x1b8] sm:$0xf] }
  0xdb   :  { %1571 = vst [vmem:[#allocation6 + $0x1b8] sm:$0xf] %v1570_v22  ;;  %1573 = vst [vmem:[#allocation6 + $0x1bc] sm:$0xf] %v1572_v23  ;;  %v1580_v26 = vld [vmem:[%s7664_s6 + $0x1d4] sm:$0xf] }
  0xdc   :  { %1575 = vst [vmem:[#allocation6 + $0x1c0] sm:$0xf] %v1574_v24  ;;  %v1582_v27 = vld [vmem:[%s7664_s6 + $0x1cc] sm:$0xf]  ;;  %1577 = vst [vmem:[#allocation6 + $0x1c4] sm:$0xff] %v1576_v25   ;;  %v1600_v35 = vld [vmem:[%s7664_s6 + $0x1f4] sm:$0xff]  }
  0xdd   :  { %1581 = vst [vmem:[#allocation6 + $0x1cc] sm:$0xf] %v1580_v26  ;;  %1583 = vst [vmem:[#allocation6 + $0x1d0] sm:$0xf] %v1582_v27  ;;  %v1584_v28 = vld [vmem:[%s7664_s6 + $0x1d8] sm:$0xf] }
  0xde   :  { %v1586_v29 = vld [vmem:[%s7664_s6 + $0x1d0] sm:$0xf]  ;;  %1585 = vst [vmem:[#allocation6 + $0x1d4] sm:$0xf] %v1584_v28  ;;  %1589 = vst [vmem:[#allocation6 + $0x1dc] sm:$0xff] %v1588_v30   ;;  %v1624_v45 = vld [vmem:[%s7664_s6 + $0x224] sm:$0xff]  }
  0xdf   :  { %1587 = vst [vmem:[#allocation6 + $0x1d8] sm:$0xf] %v1586_v29  ;;  %v1592_v31 = vld [vmem:[%s7664_s6 + $0x1ec] sm:$0xf]  ;;  %v1594_v32 = vld [vmem:[%s7664_s6 + $0x1e4] sm:$0xf] }
  0xe0   :  { %v1596_v33 = vld [vmem:[%s7664_s6 + $0x1f0] sm:$0xf]  ;;  %1593 = vst [vmem:[#allocation6 + $0x1e4] sm:$0xf] %v1592_v31  ;;  %1595 = vst [vmem:[#allocation6 + $0x1e8] sm:$0xf] %v1594_v32 }
  0xe1   :  { %1597 = vst [vmem:[#allocation6 + $0x1ec] sm:$0xf] %v1596_v33  ;;  %v1598_v34 = vld [vmem:[%s7664_s6 + $0x1e8] sm:$0xf]  ;;  %v1604_v36 = vld [vmem:[%s7664_s6 + $0x204] sm:$0xf] }
  0xe2   :  { %1599 = vst [vmem:[#allocation6 + $0x1f0] sm:$0xf] %v1598_v34  ;;  %1601 = vst [vmem:[#allocation6 + $0x1f4] sm:$0xff] %v1600_v35   ;;  %v1606_v37 = vld [vmem:[%s7664_s6 + $0x1fc] sm:$0xf]  ;;  %v1612_v40 = vld [vmem:[%s7664_s6 + $0x20c] sm:$0xff]  }
  0xe3   :  { %1605 = vst [vmem:[#allocation6 + $0x1fc] sm:$0xf] %v1604_v36  ;;  %v1608_v38 = vld [vmem:[%s7664_s6 + $0x208] sm:$0xf]  ;;  %v1610_v39 = vld [vmem:[%s7664_s6 + $0x200] sm:$0xf] }
  0xe4   :  { %1607 = vst [vmem:[#allocation6 + $0x200] sm:$0xf] %v1606_v37  ;;  %1609 = vst [vmem:[#allocation6 + $0x204] sm:$0xf] %v1608_v38  ;;  %v1616_v41 = vld [vmem:[%s7664_s6 + $0x21c] sm:$0xf] }
  0xe5   :  { %1611 = vst [vmem:[#allocation6 + $0x208] sm:$0xf] %v1610_v39  ;;  %v1618_v42 = vld [vmem:[%s7664_s6 + $0x214] sm:$0xf]  ;;  %1613 = vst [vmem:[#allocation6 + $0x20c] sm:$0xff] %v1612_v40   ;;  %v1636_v50 = vld [vmem:[%s7664_s6 + $0x23c] sm:$0xff]  }
  0xe6   :  { %1617 = vst [vmem:[#allocation6 + $0x214] sm:$0xf] %v1616_v41  ;;  %1619 = vst [vmem:[#allocation6 + $0x218] sm:$0xf] %v1618_v42  ;;  %v1620_v43 = vld [vmem:[%s7664_s6 + $0x220] sm:$0xf] }
  0xe7   :  { %v1622_v44 = vld [vmem:[%s7664_s6 + $0x218] sm:$0xf]  ;;  %1621 = vst [vmem:[#allocation6 + $0x21c] sm:$0xf] %v1620_v43  ;;  %1625 = vst [vmem:[#allocation6 + $0x224] sm:$0xff] %v1624_v45   ;;  %v1660_v60 = vld [vmem:[%s7664_s6 + $0x26c] sm:$0xff]  }
  0xe8   :  { %1623 = vst [vmem:[#allocation6 + $0x220] sm:$0xf] %v1622_v44  ;;  %v1628_v46 = vld [vmem:[%s7664_s6 + $0x234] sm:$0xf]  ;;  %v1630_v47 = vld [vmem:[%s7664_s6 + $0x22c] sm:$0xf] }
  0xe9   :  { %v1632_v48 = vld [vmem:[%s7664_s6 + $0x238] sm:$0xf]  ;;  %1629 = vst [vmem:[#allocation6 + $0x22c] sm:$0xf] %v1628_v46  ;;  %1631 = vst [vmem:[#allocation6 + $0x230] sm:$0xf] %v1630_v47 }
  0xea   :  { %1633 = vst [vmem:[#allocation6 + $0x234] sm:$0xf] %v1632_v48  ;;  %v1634_v49 = vld [vmem:[%s7664_s6 + $0x230] sm:$0xf]  ;;  %v1640_v51 = vld [vmem:[%s7664_s6 + $0x24c] sm:$0xf] }
  0xeb   :  { %1635 = vst [vmem:[#allocation6 + $0x238] sm:$0xf] %v1634_v49  ;;  %1637 = vst [vmem:[#allocation6 + $0x23c] sm:$0xff] %v1636_v50   ;;  %v1642_v52 = vld [vmem:[%s7664_s6 + $0x244] sm:$0xf]  ;;  %v1648_v55 = vld [vmem:[%s7664_s6 + $0x254] sm:$0xff]  }
  0xec   :  { %1641 = vst [vmem:[#allocation6 + $0x244] sm:$0xf] %v1640_v51  ;;  %v1644_v53 = vld [vmem:[%s7664_s6 + $0x250] sm:$0xf]  ;;  %v1646_v54 = vld [vmem:[%s7664_s6 + $0x248] sm:$0xf] }
  0xed   :  { %1643 = vst [vmem:[#allocation6 + $0x248] sm:$0xf] %v1642_v52  ;;  %1645 = vst [vmem:[#allocation6 + $0x24c] sm:$0xf] %v1644_v53  ;;  %v1652_v56 = vld [vmem:[%s7664_s6 + $0x264] sm:$0xf] }
  0xee   :  { %1647 = vst [vmem:[#allocation6 + $0x250] sm:$0xf] %v1646_v54  ;;  %v1654_v57 = vld [vmem:[%s7664_s6 + $0x25c] sm:$0xf]  ;;  %1649 = vst [vmem:[#allocation6 + $0x254] sm:$0xff] %v1648_v55   ;;  %v1672_v1 = vld [vmem:[%s7664_s6 + $0x284] sm:$0xff]  }
  0xef   :  { %1653 = vst [vmem:[#allocation6 + $0x25c] sm:$0xf] %v1652_v56  ;;  %1655 = vst [vmem:[#allocation6 + $0x260] sm:$0xf] %v1654_v57  ;;  %v1656_v58 = vld [vmem:[%s7664_s6 + $0x268] sm:$0xf] }
  0xf0   :  { %v1658_v59 = vld [vmem:[%s7664_s6 + $0x260] sm:$0xf]  ;;  %1657 = vst [vmem:[#allocation6 + $0x264] sm:$0xf] %v1656_v58  ;;  %1661 = vst [vmem:[#allocation6 + $0x26c] sm:$0xff] %v1660_v60   ;;  %v1696_v11 = vld [vmem:[%s7664_s6 + $0x2b4] sm:$0xff]  }
  0xf1   :  { %1659 = vst [vmem:[#allocation6 + $0x268] sm:$0xf] %v1658_v59  ;;  %v1664_v61 = vld [vmem:[%s7664_s6 + $0x27c] sm:$0xf]  ;;  %v1666_v62 = vld [vmem:[%s7664_s6 + $0x274] sm:$0xf] }
  0xf2   :  { %v1668_v63 = vld [vmem:[%s7664_s6 + $0x280] sm:$0xf]  ;;  %1665 = vst [vmem:[#allocation6 + $0x274] sm:$0xf] %v1664_v61  ;;  %1667 = vst [vmem:[#allocation6 + $0x278] sm:$0xf] %v1666_v62 }
  0xf3   :  { %1669 = vst [vmem:[#allocation6 + $0x27c] sm:$0xf] %v1668_v63  ;;  %v1670_v0 = vld [vmem:[%s7664_s6 + $0x278] sm:$0xf]  ;;  %v1676_v2 = vld [vmem:[%s7664_s6 + $0x294] sm:$0xf] }
  0xf4   :  { %1671 = vst [vmem:[#allocation6 + $0x280] sm:$0xf] %v1670_v0  ;;  %1673 = vst [vmem:[#allocation6 + $0x284] sm:$0xff] %v1672_v1   ;;  %v1678_v3 = vld [vmem:[%s7664_s6 + $0x28c] sm:$0xf]  ;;  %v1684_v6 = vld [vmem:[%s7664_s6 + $0x29c] sm:$0xff]  }
  0xf5   :  { %1677 = vst [vmem:[#allocation6 + $0x28c] sm:$0xf] %v1676_v2  ;;  %v1680_v4 = vld [vmem:[%s7664_s6 + $0x298] sm:$0xf]  ;;  %v1682_v5 = vld [vmem:[%s7664_s6 + $0x290] sm:$0xf] }
  0xf6   :  { %1679 = vst [vmem:[#allocation6 + $0x290] sm:$0xf] %v1678_v3  ;;  %1681 = vst [vmem:[#allocation6 + $0x294] sm:$0xf] %v1680_v4  ;;  %v1688_v7 = vld [vmem:[%s7664_s6 + $0x2ac] sm:$0xf] }
  0xf7   :  { %1683 = vst [vmem:[#allocation6 + $0x298] sm:$0xf] %v1682_v5  ;;  %v1690_v8 = vld [vmem:[%s7664_s6 + $0x2a4] sm:$0xf]  ;;  %1685 = vst [vmem:[#allocation6 + $0x29c] sm:$0xff] %v1684_v6   ;;  %v1708_v16 = vld [vmem:[%s7664_s6 + $0x2cc] sm:$0xff]  }
  0xf8   :  { %1689 = vst [vmem:[#allocation6 + $0x2a4] sm:$0xf] %v1688_v7  ;;  %1691 = vst [vmem:[#allocation6 + $0x2a8] sm:$0xf] %v1690_v8  ;;  %v1692_v9 = vld [vmem:[%s7664_s6 + $0x2b0] sm:$0xf] }
  0xf9   :  { %v1694_v10 = vld [vmem:[%s7664_s6 + $0x2a8] sm:$0xf]  ;;  %1693 = vst [vmem:[#allocation6 + $0x2ac] sm:$0xf] %v1692_v9  ;;  %1697 = vst [vmem:[#allocation6 + $0x2b4] sm:$0xff] %v1696_v11   ;;  %v1732_v26 = vld [vmem:[%s7664_s6 + $0x2fc] sm:$0xff]  }
  0xfa   :  { %1695 = vst [vmem:[#allocation6 + $0x2b0] sm:$0xf] %v1694_v10  ;;  %v1700_v12 = vld [vmem:[%s7664_s6 + $0x2c4] sm:$0xf]  ;;  %v1702_v13 = vld [vmem:[%s7664_s6 + $0x2bc] sm:$0xf] }
  0xfb   :  { %v1704_v14 = vld [vmem:[%s7664_s6 + $0x2c8] sm:$0xf]  ;;  %1701 = vst [vmem:[#allocation6 + $0x2bc] sm:$0xf] %v1700_v12  ;;  %1703 = vst [vmem:[#allocation6 + $0x2c0] sm:$0xf] %v1702_v13 }
  0xfc   :  { %1705 = vst [vmem:[#allocation6 + $0x2c4] sm:$0xf] %v1704_v14  ;;  %v1706_v15 = vld [vmem:[%s7664_s6 + $0x2c0] sm:$0xf]  ;;  %v1712_v17 = vld [vmem:[%s7664_s6 + $0x2dc] sm:$0xf] }
  0xfd   :  { %1707 = vst [vmem:[#allocation6 + $0x2c8] sm:$0xf] %v1706_v15  ;;  %1709 = vst [vmem:[#allocation6 + $0x2cc] sm:$0xff] %v1708_v16   ;;  %v1714_v18 = vld [vmem:[%s7664_s6 + $0x2d4] sm:$0xf]  ;;  %v1720_v21 = vld [vmem:[%s7664_s6 + $0x2e4] sm:$0xff]  }
  0xfe   :  { %1713 = vst [vmem:[#allocation6 + $0x2d4] sm:$0xf] %v1712_v17  ;;  %v1716_v19 = vld [vmem:[%s7664_s6 + $0x2e0] sm:$0xf]  ;;  %v1718_v20 = vld [vmem:[%s7664_s6 + $0x2d8] sm:$0xf] }
  0xff   :  { %1715 = vst [vmem:[#allocation6 + $0x2d8] sm:$0xf] %v1714_v18  ;;  %1717 = vst [vmem:[#allocation6 + $0x2dc] sm:$0xf] %v1716_v19  ;;  %v1724_v22 = vld [vmem:[%s7664_s6 + $0x2f4] sm:$0xf] }
 0x100   :  { %1719 = vst [vmem:[#allocation6 + $0x2e0] sm:$0xf] %v1718_v20  ;;  %v1726_v23 = vld [vmem:[%s7664_s6 + $0x2ec] sm:$0xf]  ;;  %1721 = vst [vmem:[#allocation6 + $0x2e4] sm:$0xff] %v1720_v21   ;;  %v1744_v31 = vld [vmem:[%s7664_s6 + $0x314] sm:$0xff]  }
 0x101   :  { %1725 = vst [vmem:[#allocation6 + $0x2ec] sm:$0xf] %v1724_v22  ;;  %1727 = vst [vmem:[#allocation6 + $0x2f0] sm:$0xf] %v1726_v23  ;;  %v1728_v24 = vld [vmem:[%s7664_s6 + $0x2f8] sm:$0xf] }
 0x102   :  { %v1730_v25 = vld [vmem:[%s7664_s6 + $0x2f0] sm:$0xf]  ;;  %1729 = vst [vmem:[#allocation6 + $0x2f4] sm:$0xf] %v1728_v24  ;;  %1733 = vst [vmem:[#allocation6 + $0x2fc] sm:$0xff] %v1732_v26   ;;  %v1768_v41 = vld [vmem:[%s7664_s6 + $0x344] sm:$0xff]  }
 0x103   :  { %1731 = vst [vmem:[#allocation6 + $0x2f8] sm:$0xf] %v1730_v25  ;;  %v1736_v27 = vld [vmem:[%s7664_s6 + $0x30c] sm:$0xf]  ;;  %v1738_v28 = vld [vmem:[%s7664_s6 + $0x304] sm:$0xf] }
 0x104   :  { %v1740_v29 = vld [vmem:[%s7664_s6 + $0x310] sm:$0xf]  ;;  %1737 = vst [vmem:[#allocation6 + $0x304] sm:$0xf] %v1736_v27  ;;  %1739 = vst [vmem:[#allocation6 + $0x308] sm:$0xf] %v1738_v28 }
 0x105   :  { %1741 = vst [vmem:[#allocation6 + $0x30c] sm:$0xf] %v1740_v29  ;;  %v1742_v30 = vld [vmem:[%s7664_s6 + $0x308] sm:$0xf]  ;;  %v1748_v32 = vld [vmem:[%s7664_s6 + $0x324] sm:$0xf] }
 0x106   :  { %1743 = vst [vmem:[#allocation6 + $0x310] sm:$0xf] %v1742_v30  ;;  %1745 = vst [vmem:[#allocation6 + $0x314] sm:$0xff] %v1744_v31   ;;  %v1750_v33 = vld [vmem:[%s7664_s6 + $0x31c] sm:$0xf]  ;;  %v1756_v36 = vld [vmem:[%s7664_s6 + $0x32c] sm:$0xff]  }
 0x107   :  { %1749 = vst [vmem:[#allocation6 + $0x31c] sm:$0xf] %v1748_v32  ;;  %v1752_v34 = vld [vmem:[%s7664_s6 + $0x328] sm:$0xf]  ;;  %v1754_v35 = vld [vmem:[%s7664_s6 + $0x320] sm:$0xf] }
 0x108   :  { %1751 = vst [vmem:[#allocation6 + $0x320] sm:$0xf] %v1750_v33  ;;  %1753 = vst [vmem:[#allocation6 + $0x324] sm:$0xf] %v1752_v34  ;;  %v1760_v37 = vld [vmem:[%s7664_s6 + $0x33c] sm:$0xf] }
 0x109   :  { %1755 = vst [vmem:[#allocation6 + $0x328] sm:$0xf] %v1754_v35  ;;  %v1762_v38 = vld [vmem:[%s7664_s6 + $0x334] sm:$0xf]  ;;  %1757 = vst [vmem:[#allocation6 + $0x32c] sm:$0xff] %v1756_v36   ;;  %v1780_v46 = vld [vmem:[%s7664_s6 + $0x35c] sm:$0xff]  }
 0x10a   :  { %1761 = vst [vmem:[#allocation6 + $0x334] sm:$0xf] %v1760_v37  ;;  %1763 = vst [vmem:[#allocation6 + $0x338] sm:$0xf] %v1762_v38  ;;  %v1764_v39 = vld [vmem:[%s7664_s6 + $0x340] sm:$0xf] }
 0x10b   :  { %v1766_v40 = vld [vmem:[%s7664_s6 + $0x338] sm:$0xf]  ;;  %1765 = vst [vmem:[#allocation6 + $0x33c] sm:$0xf] %v1764_v39  ;;  %1769 = vst [vmem:[#allocation6 + $0x344] sm:$0xff] %v1768_v41   ;;  %v1804_v56 = vld [vmem:[%s7664_s6 + $0x38c] sm:$0xff]  }
 0x10c   :  { %1767 = vst [vmem:[#allocation6 + $0x340] sm:$0xf] %v1766_v40  ;;  %v1772_v42 = vld [vmem:[%s7664_s6 + $0x354] sm:$0xf]  ;;  %v1774_v43 = vld [vmem:[%s7664_s6 + $0x34c] sm:$0xf] }
 0x10d   :  { %v1776_v44 = vld [vmem:[%s7664_s6 + $0x358] sm:$0xf]  ;;  %1773 = vst [vmem:[#allocation6 + $0x34c] sm:$0xf] %v1772_v42  ;;  %1775 = vst [vmem:[#allocation6 + $0x350] sm:$0xf] %v1774_v43 }
 0x10e   :  { %1777 = vst [vmem:[#allocation6 + $0x354] sm:$0xf] %v1776_v44  ;;  %v1778_v45 = vld [vmem:[%s7664_s6 + $0x350] sm:$0xf]  ;;  %v1784_v47 = vld [vmem:[%s7664_s6 + $0x36c] sm:$0xf] }
 0x10f   :  { %1779 = vst [vmem:[#allocation6 + $0x358] sm:$0xf] %v1778_v45  ;;  %1781 = vst [vmem:[#allocation6 + $0x35c] sm:$0xff] %v1780_v46   ;;  %v1786_v48 = vld [vmem:[%s7664_s6 + $0x364] sm:$0xf]  ;;  %v1792_v51 = vld [vmem:[%s7664_s6 + $0x374] sm:$0xff]  }
 0x110   :  { %1785 = vst [vmem:[#allocation6 + $0x364] sm:$0xf] %v1784_v47  ;;  %v1788_v49 = vld [vmem:[%s7664_s6 + $0x370] sm:$0xf]  ;;  %v1790_v50 = vld [vmem:[%s7664_s6 + $0x368] sm:$0xf] }
 0x111   :  { %1787 = vst [vmem:[#allocation6 + $0x368] sm:$0xf] %v1786_v48  ;;  %1789 = vst [vmem:[#allocation6 + $0x36c] sm:$0xf] %v1788_v49  ;;  %v1796_v52 = vld [vmem:[%s7664_s6 + $0x384] sm:$0xf] }
 0x112   :  { %1791 = vst [vmem:[#allocation6 + $0x370] sm:$0xf] %v1790_v50  ;;  %v1798_v53 = vld [vmem:[%s7664_s6 + $0x37c] sm:$0xf]  ;;  %1793 = vst [vmem:[#allocation6 + $0x374] sm:$0xff] %v1792_v51   ;;  %v1816_v61 = vld [vmem:[%s7664_s6 + $0x3a4] sm:$0xff]  }
 0x113   :  { %1797 = vst [vmem:[#allocation6 + $0x37c] sm:$0xf] %v1796_v52  ;;  %1799 = vst [vmem:[#allocation6 + $0x380] sm:$0xf] %v1798_v53  ;;  %v1800_v54 = vld [vmem:[%s7664_s6 + $0x388] sm:$0xf] }
 0x114   :  { %v1802_v55 = vld [vmem:[%s7664_s6 + $0x380] sm:$0xf]  ;;  %1801 = vst [vmem:[#allocation6 + $0x384] sm:$0xf] %v1800_v54  ;;  %1805 = vst [vmem:[#allocation6 + $0x38c] sm:$0xff] %v1804_v56  }
 0x115   :  { %1803 = vst [vmem:[#allocation6 + $0x388] sm:$0xf] %v1802_v55  ;;  %v1808_v57 = vld [vmem:[%s7664_s6 + $0x39c] sm:$0xf]  ;;  %v1810_v58 = vld [vmem:[%s7664_s6 + $0x394] sm:$0xf] }
 0x116   :  { %v1812_v59 = vld [vmem:[%s7664_s6 + $0x3a0] sm:$0xf]  ;;  %1809 = vst [vmem:[#allocation6 + $0x394] sm:$0xf] %v1808_v57  ;;  %1811 = vst [vmem:[#allocation6 + $0x398] sm:$0xf] %v1810_v58 }
 0x117   :  { %1813 = vst [vmem:[#allocation6 + $0x39c] sm:$0xf] %v1812_v59  ;;  %v1814_v60 = vld [vmem:[%s7664_s6 + $0x398] sm:$0xf]  ;;  %v1820_v62 = vld [vmem:[%s7664_s6 + $0x3b4] sm:$0xf] }
 0x118   :  { %1815 = vst [vmem:[#allocation6 + $0x3a0] sm:$0xf] %v1814_v60  ;;  %1817 = vst [vmem:[#allocation6 + $0x3a4] sm:$0xff] %v1816_v61   ;;  %v1822_v63 = vld [vmem:[%s7664_s6 + $0x3ac] sm:$0xf] }
 0x119   :  { %1821 = vst [vmem:[#allocation6 + $0x3ac] sm:$0xf] %v1820_v62  ;;  %v1824_v0 = vld [vmem:[%s7664_s6 + $0x3b8] sm:$0xf]  ;;  %v1826_v1 = vld [vmem:[%s7664_s6 + $0x3b0] sm:$0xf] }
 0x11a   :  { %1823 = vst [vmem:[#allocation6 + $0x3b0] sm:$0xf] %v1822_v63  ;;  %1825 = vst [vmem:[#allocation6 + $0x3b4] sm:$0xf] %v1824_v0  ;;  %v1828_v2 = vld [vmem:[%s7664_s6 + $0x3bc] sm:$0xf] }
 0x11b   :  { %1827 = vst [vmem:[#allocation6 + $0x3b8] sm:$0xf] %v1826_v1  ;;  %1829 = vst [vmem:[#allocation6 + $0x3bc] sm:$0xf] %v1828_v2 }
 0x11c   :  { %2340 = vsyncadd [#allocation10 + $0x4], 15360  ;;  %v2359_v3 = vld [vmem:[%s7665_s7] sm:$0xf]  ;;  %v2361_v4 = vld [vmem:[%s7665_s7 + $0x8] sm:$0xf] }
 0x11d   :  { %2360 = vst [vmem:[#allocation7] sm:$0xf] %v2359_v3  ;;  %2362 = vst [vmem:[#allocation7 + $0x4] sm:$0xf] %v2361_v4  ;;  %v2363_v5 = vld [vmem:[%s7665_s7 + $0x4] sm:$0xf] }
 0x11e   :  { %v2365_v6 = vld [vmem:[%s7665_s7 + $0xc] sm:$0xff]   ;;  %v2369_v7 = vld [vmem:[%s7665_s7 + $0x18] sm:$0xf]  ;;  %2364 = vst [vmem:[#allocation7 + $0x8] sm:$0xf] %v2363_v5  ;;  %v2373_v9 = vld [vmem:[%s7665_s7 + $0x1c] sm:$0xff]  }
 0x11f   :  { %2366 = vst [vmem:[#allocation7 + $0xc] sm:$0xff] %v2365_v6   ;;  %2370 = vst [vmem:[#allocation7 + $0x14] sm:$0xf] %v2369_v7  ;;  %v2371_v8 = vld [vmem:[%s7665_s7 + $0x14] sm:$0xf]  ;;  %v2381_v12 = vld [vmem:[%s7665_s7 + $0x2c] sm:$0xff]  }
 0x120   :  { %v2377_v10 = vld [vmem:[%s7665_s7 + $0x28] sm:$0xf]  ;;  %2372 = vst [vmem:[#allocation7 + $0x18] sm:$0xf] %v2371_v8  ;;  %2374 = vst [vmem:[#allocation7 + $0x1c] sm:$0xff] %v2373_v9   ;;  %v2389_v15 = vld [vmem:[%s7665_s7 + $0x3c] sm:$0xff]  }
 0x121   :  { %2378 = vst [vmem:[#allocation7 + $0x24] sm:$0xf] %v2377_v10  ;;  %v2379_v11 = vld [vmem:[%s7665_s7 + $0x24] sm:$0xf]  ;;  %v2385_v13 = vld [vmem:[%s7665_s7 + $0x38] sm:$0xf] }
 0x122   :  { %2380 = vst [vmem:[#allocation7 + $0x28] sm:$0xf] %v2379_v11  ;;  %2382 = vst [vmem:[#allocation7 + $0x2c] sm:$0xff] %v2381_v12   ;;  %v2387_v14 = vld [vmem:[%s7665_s7 + $0x34] sm:$0xf]  ;;  %v2397_v18 = vld [vmem:[%s7665_s7 + $0x4c] sm:$0xff]  }
 0x123   :  { %2386 = vst [vmem:[#allocation7 + $0x34] sm:$0xf] %v2385_v13  ;;  %v2393_v16 = vld [vmem:[%s7665_s7 + $0x48] sm:$0xf]  ;;  %2388 = vst [vmem:[#allocation7 + $0x38] sm:$0xf] %v2387_v14 }
 0x124   :  { %2390 = vst [vmem:[#allocation7 + $0x3c] sm:$0xff] %v2389_v15   ;;  %2394 = vst [vmem:[#allocation7 + $0x44] sm:$0xf] %v2393_v16  ;;  %v2395_v17 = vld [vmem:[%s7665_s7 + $0x44] sm:$0xf]  ;;  %v2405_v21 = vld [vmem:[%s7665_s7 + $0x5c] sm:$0xff]  }
 0x125   :  { %v2401_v19 = vld [vmem:[%s7665_s7 + $0x58] sm:$0xf]  ;;  %2396 = vst [vmem:[#allocation7 + $0x48] sm:$0xf] %v2395_v17  ;;  %2398 = vst [vmem:[#allocation7 + $0x4c] sm:$0xff] %v2397_v18   ;;  %v2413_v24 = vld [vmem:[%s7665_s7 + $0x6c] sm:$0xff]  }
 0x126   :  { %2402 = vst [vmem:[#allocation7 + $0x54] sm:$0xf] %v2401_v19  ;;  %v2403_v20 = vld [vmem:[%s7665_s7 + $0x54] sm:$0xf]  ;;  %v2409_v22 = vld [vmem:[%s7665_s7 + $0x68] sm:$0xf] }
 0x127   :  { %2404 = vst [vmem:[#allocation7 + $0x58] sm:$0xf] %v2403_v20  ;;  %2406 = vst [vmem:[#allocation7 + $0x5c] sm:$0xff] %v2405_v21   ;;  %v2411_v23 = vld [vmem:[%s7665_s7 + $0x64] sm:$0xf]  ;;  %v2421_v27 = vld [vmem:[%s7665_s7 + $0x7c] sm:$0xff]  }
 0x128   :  { %2410 = vst [vmem:[#allocation7 + $0x64] sm:$0xf] %v2409_v22  ;;  %v2417_v25 = vld [vmem:[%s7665_s7 + $0x78] sm:$0xf]  ;;  %2412 = vst [vmem:[#allocation7 + $0x68] sm:$0xf] %v2411_v23 }
 0x129   :  { %2414 = vst [vmem:[#allocation7 + $0x6c] sm:$0xff] %v2413_v24   ;;  %2418 = vst [vmem:[#allocation7 + $0x74] sm:$0xf] %v2417_v25  ;;  %v2419_v26 = vld [vmem:[%s7665_s7 + $0x74] sm:$0xf]  ;;  %v2429_v30 = vld [vmem:[%s7665_s7 + $0x8c] sm:$0xff]  }
 0x12a   :  { %v2425_v28 = vld [vmem:[%s7665_s7 + $0x88] sm:$0xf]  ;;  %2420 = vst [vmem:[#allocation7 + $0x78] sm:$0xf] %v2419_v26  ;;  %2422 = vst [vmem:[#allocation7 + $0x7c] sm:$0xff] %v2421_v27   ;;  %v2437_v33 = vld [vmem:[%s7665_s7 + $0x9c] sm:$0xff]  }
 0x12b   :  { %2426 = vst [vmem:[#allocation7 + $0x84] sm:$0xf] %v2425_v28  ;;  %v2427_v29 = vld [vmem:[%s7665_s7 + $0x84] sm:$0xf]  ;;  %v2433_v31 = vld [vmem:[%s7665_s7 + $0x98] sm:$0xf] }
 0x12c   :  { %2428 = vst [vmem:[#allocation7 + $0x88] sm:$0xf] %v2427_v29  ;;  %2430 = vst [vmem:[#allocation7 + $0x8c] sm:$0xff] %v2429_v30   ;;  %v2435_v32 = vld [vmem:[%s7665_s7 + $0x94] sm:$0xf]  ;;  %v2445_v36 = vld [vmem:[%s7665_s7 + $0xac] sm:$0xff]  }
 0x12d   :  { %2434 = vst [vmem:[#allocation7 + $0x94] sm:$0xf] %v2433_v31  ;;  %v2441_v34 = vld [vmem:[%s7665_s7 + $0xa8] sm:$0xf]  ;;  %2436 = vst [vmem:[#allocation7 + $0x98] sm:$0xf] %v2435_v32 }
 0x12e   :  { %2438 = vst [vmem:[#allocation7 + $0x9c] sm:$0xff] %v2437_v33   ;;  %2442 = vst [vmem:[#allocation7 + $0xa4] sm:$0xf] %v2441_v34  ;;  %v2443_v35 = vld [vmem:[%s7665_s7 + $0xa4] sm:$0xf]  ;;  %v2453_v39 = vld [vmem:[%s7665_s7 + $0xbc] sm:$0xff]  }
 0x12f   :  { %v2449_v37 = vld [vmem:[%s7665_s7 + $0xb8] sm:$0xf]  ;;  %2444 = vst [vmem:[#allocation7 + $0xa8] sm:$0xf] %v2443_v35  ;;  %2446 = vst [vmem:[#allocation7 + $0xac] sm:$0xff] %v2445_v36   ;;  %v2461_v42 = vld [vmem:[%s7665_s7 + $0xcc] sm:$0xff]  }
 0x130   :  { %2450 = vst [vmem:[#allocation7 + $0xb4] sm:$0xf] %v2449_v37  ;;  %v2451_v38 = vld [vmem:[%s7665_s7 + $0xb4] sm:$0xf]  ;;  %v2457_v40 = vld [vmem:[%s7665_s7 + $0xc8] sm:$0xf] }
 0x131   :  { %2452 = vst [vmem:[#allocation7 + $0xb8] sm:$0xf] %v2451_v38  ;;  %2454 = vst [vmem:[#allocation7 + $0xbc] sm:$0xff] %v2453_v39   ;;  %v2459_v41 = vld [vmem:[%s7665_s7 + $0xc4] sm:$0xf]  ;;  %v2469_v45 = vld [vmem:[%s7665_s7 + $0xdc] sm:$0xff]  }
 0x132   :  { %2458 = vst [vmem:[#allocation7 + $0xc4] sm:$0xf] %v2457_v40  ;;  %v2465_v43 = vld [vmem:[%s7665_s7 + $0xd8] sm:$0xf]  ;;  %2460 = vst [vmem:[#allocation7 + $0xc8] sm:$0xf] %v2459_v41 }
 0x133   :  { %2462 = vst [vmem:[#allocation7 + $0xcc] sm:$0xff] %v2461_v42   ;;  %2466 = vst [vmem:[#allocation7 + $0xd4] sm:$0xf] %v2465_v43  ;;  %v2467_v44 = vld [vmem:[%s7665_s7 + $0xd4] sm:$0xf]  ;;  %v2477_v48 = vld [vmem:[%s7665_s7 + $0xec] sm:$0xff]  }
 0x134   :  { %v2473_v46 = vld [vmem:[%s7665_s7 + $0xe8] sm:$0xf]  ;;  %2468 = vst [vmem:[#allocation7 + $0xd8] sm:$0xf] %v2467_v44  ;;  %2470 = vst [vmem:[#allocation7 + $0xdc] sm:$0xff] %v2469_v45   ;;  %v2485_v51 = vld [vmem:[%s7665_s7 + $0xfc] sm:$0xff]  }
 0x135   :  { %2474 = vst [vmem:[#allocation7 + $0xe4] sm:$0xf] %v2473_v46  ;;  %v2475_v47 = vld [vmem:[%s7665_s7 + $0xe4] sm:$0xf]  ;;  %v2481_v49 = vld [vmem:[%s7665_s7 + $0xf8] sm:$0xf] }
 0x136   :  { %2476 = vst [vmem:[#allocation7 + $0xe8] sm:$0xf] %v2475_v47  ;;  %2478 = vst [vmem:[#allocation7 + $0xec] sm:$0xff] %v2477_v48   ;;  %v2483_v50 = vld [vmem:[%s7665_s7 + $0xf4] sm:$0xf]  ;;  %v2493_v54 = vld [vmem:[%s7665_s7 + $0x10c] sm:$0xff]  }
 0x137   :  { %2482 = vst [vmem:[#allocation7 + $0xf4] sm:$0xf] %v2481_v49  ;;  %v2489_v52 = vld [vmem:[%s7665_s7 + $0x108] sm:$0xf]  ;;  %2484 = vst [vmem:[#allocation7 + $0xf8] sm:$0xf] %v2483_v50 }
 0x138   :  { %2486 = vst [vmem:[#allocation7 + $0xfc] sm:$0xff] %v2485_v51   ;;  %2490 = vst [vmem:[#allocation7 + $0x104] sm:$0xf] %v2489_v52  ;;  %v2491_v53 = vld [vmem:[%s7665_s7 + $0x104] sm:$0xf]  ;;  %v2501_v57 = vld [vmem:[%s7665_s7 + $0x11c] sm:$0xff]  }
 0x139   :  { %v2497_v55 = vld [vmem:[%s7665_s7 + $0x118] sm:$0xf]  ;;  %2492 = vst [vmem:[#allocation7 + $0x108] sm:$0xf] %v2491_v53  ;;  %2494 = vst [vmem:[#allocation7 + $0x10c] sm:$0xff] %v2493_v54   ;;  %v2509_v60 = vld [vmem:[%s7665_s7 + $0x12c] sm:$0xff]  }
 0x13a   :  { %2498 = vst [vmem:[#allocation7 + $0x114] sm:$0xf] %v2497_v55  ;;  %v2499_v56 = vld [vmem:[%s7665_s7 + $0x114] sm:$0xf]  ;;  %v2505_v58 = vld [vmem:[%s7665_s7 + $0x128] sm:$0xf] }
 0x13b   :  { %2500 = vst [vmem:[#allocation7 + $0x118] sm:$0xf] %v2499_v56  ;;  %2502 = vst [vmem:[#allocation7 + $0x11c] sm:$0xff] %v2501_v57   ;;  %v2507_v59 = vld [vmem:[%s7665_s7 + $0x124] sm:$0xf] }
 0x13c   :  { %2506 = vst [vmem:[#allocation7 + $0x124] sm:$0xf] %v2505_v58  ;;  %v2513_v61 = vld [vmem:[%s7665_s7 + $0x138] sm:$0xf]  ;;  %2508 = vst [vmem:[#allocation7 + $0x128] sm:$0xf] %v2507_v59 }
 0x13d   :  { %2510 = vst [vmem:[#allocation7 + $0x12c] sm:$0xff] %v2509_v60   ;;  %2514 = vst [vmem:[#allocation7 + $0x134] sm:$0xf] %v2513_v61  ;;  %v2515_v62 = vld [vmem:[%s7665_s7 + $0x134] sm:$0xf] }
 0x13e   :  { %v2517_v63 = vld [vmem:[%s7665_s7 + $0x13c] sm:$0xf]  ;;  %2516 = vst [vmem:[#allocation7 + $0x138] sm:$0xf] %v2515_v62 }
 0x13f   :  { %2518 = vst [vmem:[#allocation7 + $0x13c] sm:$0xf] %v2517_v63 }
 0x140   :  { %2709 = vsyncadd [#allocation10 + $0x5], 5120  ;;  %v7150_v0 = vld [vmem:[%s7666_s8] sm:$0xff]  ;;  %v7155_v1 = vld [vmem:[%s7666_s8 + $0x8] sm:$0xff] }
 0x141   :  { %v7160_v2 = vld [vmem:[%s7666_s8 + $0x10] sm:$0xff]  ;;  %v7165_v3 = vld [vmem:[%s7666_s8 + $0x18] sm:$0xff]  ;;  %v7170_v4 = vld [vmem:[%s7666_s8 + $0x20] sm:$0xff] }
 0x142   :  { %v7175_v5 = vld [vmem:[%s7666_s8 + $0x28] sm:$0xff]  ;;  %v7180_v6 = vld [vmem:[%s7666_s8 + $0x30] sm:$0xff]  ;;  %v7185_v7 = vld [vmem:[%s7666_s8 + $0x38] sm:$0xff] }
 0x143   :  { %v7190_v8 = vld [vmem:[%s7666_s8 + $0x40] sm:$0xff]  ;;  %v7195_v9 = vld [vmem:[%s7666_s8 + $0x48] sm:$0xff] }
 0x144   :  { %2770 = vsyncadd [#allocation10 + $0x6], 1280  ;;  %v7200_v10 = vld [vmem:[%s7667_s9] sm:$0xff]  ;;  %v7205_v11 = vld [vmem:[%s7667_s9 + $0x8] sm:$0xff] }
 0x145   :  { %7673 = vst [vmem:[#allocation30_spill] sm:$0xff] %v7205_v11  ;;  %v7210_v12 = vld [vmem:[%s7667_s9 + $0x10] sm:$0xff]  ;;  %v7215_v13 = vld [vmem:[%s7667_s9 + $0x18] sm:$0xff]  ;;  %v7220_v14 = vld [vmem:[%s7667_s9 + $0x20] sm:$0xff] }
 0x146   :  { %7674 = vst [vmem:[#allocation31_spill] sm:$0xff] %v7210_v12  ;;  %7675 = vst [vmem:[#allocation32_spill] sm:$0xff] %v7215_v13 }
 0x147   :  { %7676 = vst [vmem:[#allocation33_spill] sm:$0xff] %v7220_v14 }
 0x148   :  { %2821 = vsyncadd [#allocation10 + $0x7], 640  ;;  %v2822_v15 = vld [vmem:[%s7658_s0] sm:$0xff]  ;;  %vm2833_vm0 = vcmask 244736   ;;  %v7228_v16 = vld [vmem:[%s7659_s1 + $0x8] sm:$0xff]  ;;  %v2866_v45 = vlaneseq }
 0x149   :  { %v7233_v17 = vld [vmem:[%s7659_s1 + $0x28] sm:$0xff]  ;;  %v7238_v18 = vld [vmem:[%s7659_s1 + $0x30] sm:$0xff]  ;;  %v2834_v19 = vsel %vm2833_vm0, %v2822_v15, 0.0  ;;  %v2842_v20 = vmul.f32 %v2822_v15, %v2822_v15  ;;  %v7244_v21 = vld [vmem:[%s7659_s1 + $0x38] sm:$0xff]  ;;  %v2861_v56 = vpack.c.bf16 %v2822_v15, %v2822_v15 }
 0x14a   :  { %v7249_v22 = vld [vmem:[%s7659_s1 + $0x40] sm:$0xff]  ;;  %v7254_v23 = vld [vmem:[%s7659_s1 + $0x48] sm:$0xff]  ;;  %v2835_v24 = vrot.slane %v2834_v19, 4  ;;  %v7259_v25 = vld [vmem:[%s7659_s1 + $0x50] sm:$0xff]  ;;  %v7278_v49 = vshrl.u32 %v2866_v45, 7 }
 0x14b   :  { %v7264_v26 = vld [vmem:[%s7659_s1 + $0x58] sm:$0xff]  ;;  %v7269_v27 = vld [vmem:[%s7659_s1 + $0x60] sm:$0xff]  ;;  %v2843_v28 = vsel %vm2833_vm0, %v2842_v20, 0.0 }
 0x14c   :  { %v2836_v29 = vadd.f32 %v2835_v24, %v2834_v19  ;;  %v2844_v30 = vrot.slane %v2843_v28, 4  ;;  %v7275_v46 = vld [vmem:[%s7659_s1] sm:$0xff]  ;;  %v7281_v54 = vsub.s32 0, %v7278_v49 }
 0x14e   :  { %v2837_v31 = vrot.slane %v2836_v29, 2  ;;  %v2845_v32 = vadd.f32 %v2844_v30, %v2843_v28 }
 0x150   :  { %v2838_v33 = vadd.f32 %v2837_v31, %v2836_v29  ;;  %v2846_v34 = vrot.slane %v2845_v32, 2 }
 0x152   :  { %v2839_v35 = vrot.slane %v2838_v33, 1  ;;  %v2847_v36 = vadd.f32 %v2846_v34, %v2845_v32 }
 0x154   :  { %v2840_v37 = vadd.f32 %v2839_v35, %v2838_v33  ;;  %v2848_v38 = vrot.slane %v2847_v36, 1 }
 0x156   :  { %v2841_v39 = vmul.f32 0.125, %v2840_v37  ;;  %v2849_v40 = vadd.f32 %v2848_v38, %v2847_v36 }
 0x158   :  { %v2850_v41 = vmul.f32 0.125, %v2849_v40  ;;  %v2851_v42 = vmul.f32 %v2841_v39, %v2841_v39 }
 0x15a   :  { %v2852_v43 = vsub.f32 %v2850_v41, %v2851_v42 }
 0x15c   :  { %v2853_v44 = vadd.f32 1e-05, %v2852_v43 }
 0x15e   :  { %5440 = vrsqrt.f32 %v2853_v44 }
 0x168   :  { %v5441_v47 = vpop.eup %5440 }
 0x169   :  { %v2855_v48 = vmul.f32 %v5441_v47, %v7275_v46 }
 0x16b   :  { %v2856_v50 = vmul.f32 %v2855_v48, %v2841_v39  ;;  %v2862_v51 = vpack.c.bf16 %v2855_v48, %v2855_v48 }
 0x16d   :  { %v2858_v52 = vrot.slane %v2856_v50, 7  ;;  %v2864_v53 = vpack.i.b16 %v2862_v51, %v2862_v51 }
 0x16f   :  { %v2860_v55 = vsub.f32 %v7275_v46, %v2858_v52  ;;  %v2869_v57 = vrot.slane %v2864_v53, %v7281_v54 }
 0x171   :  { %v2871_v58 = vpack.c.bf16 %v2860_v55, %v2860_v55  ;;  %v2870_v60 = vmul.bf16 %v2869_v57, %v2861_v56 }
 0x173   :  { %v2873_v59 = vshrl.u32 %v2871_v58, 16 }
 0x175   :  { %v2874_v61 = vpack.i.b16 %v2873_v59, %v2873_v59 }
 0x177   :  { %v2879_v62 = vrot.slane %v2874_v61, %v7281_v54 }
 0x179   :  { %v2880_v63 = vadd.bf16 %v2879_v62, %v2870_v60 }
 0x17a   :  { %5534 = dma.done.wait [#allocation10], 256 }
 0x17b   :  { %5535 = vsyncadd [#allocation10], 4294967040  ;;  %v7671_v19 = vmov 0.0   ;;  %vm5553_vm1 = vmmov 0   ;;  %v5442_v20 = vld [vmem:[#allocation2] sm:$0xff]   ;;  %vm2907_vm2 = vcmask 1046528  }
 0x17c   :  { %5354 = vmatprep.subr.bf16.mxu0 %v7671_v19  ;;  %5358 = vmatprep.mubr.msk.bf16.mxu0 %vm5553_vm1, %v7671_v19  ;;  %v5443_v15 = vld [vmem:[#allocation2 + $0x8] sm:$0x7f]   ;;  %v7292_v28 = vsub.s32 2, %v7278_v49  ;;  %vm2959_vm4 = vcmask 654336  }
 0x17d   :  { %5355 = vmatpush3.bf16.msra.mxu0 %v5442_v20  ;;  %v2909_v24 = vsel %vm2907_vm2, %v5443_v15, 0 }
 0x17e   :  { %5356 = vmatprep.subr.bf16.mxu0 %v7671_v19  ;;  %v2892_v29 = vrot.slane %v7275_v46, %v7292_v28 }
 0x181   :  { %5357 = vmatpush3.bf16.msra.mxu0 %v2909_v24 }
 0x184   :  { %5359 = vmatmul.mubr.msk.bf16.vlgmr.msra.gmra.mrb[0].mxu0 %vm2833_vm0, %v2880_v63 }
 0x257   :  { %v2945_v30 = vpop.f32.mrb[0].mxu0 }
 0x258   :  { %v2946_v31 = vadd.f32 %v2945_v30, %v2892_v29  ;;  %v5360_v32 = vpop.f32.mrb[1].mxu0 }
 0x259   :  { %v2948_v33 = vpop.f32.mrb[2].mxu0 }
 0x25a   :  { %v2951_v34 = vmin.f32 %v2946_v31, 0.0  ;;  %v5361_v35 = vpop.f32.mrb[3].mxu0  ;;  %vm2956_vm3 = vcmp.gt.f32.partialorder %v2946_v31, 0.0  ;;  %v7300_v33 = vsub.s32 1, %v7278_v49 }
 0x25c   :  { %v2952_v36 = vmul.f32 1.442695, %v2951_v34 }
 0x25e   :  { %5444 = vpow2.f32 %v2952_v36 }
 0x268   :  { %v5445_v37 = vpop.eup %5444 }
 0x269   :  { %v5231_v38 = vadd.f32 -1.0, %v5445_v37 }
 0x26b   :  { %v2955_v39 = vmul.f32 1.6732632, %v5231_v38 }
 0x26d   :  { %v2957_v40 = vsel %vm2956_vm3, %v2946_v31, %v2955_v39 }
 0x26e   :  { %v2958_v41 = vmul.f32 1.050701, %v2957_v40 }
 0x270   :  { %v2960_v42 = vsel %vm2959_vm4, %v2958_v41, 0.0  ;;  %v2968_v43 = vmul.f32 %v2958_v41, %v2958_v41  ;;  %v2987_v38 = vpack.c.bf16 %v2958_v41, %v2958_v41 }
 0x271   :  { %v2961_v44 = vrot.slane %v2960_v42, 4 }
 0x272   :  { %v2969_v45 = vsel %vm2959_vm4, %v2968_v43, 0.0 }
 0x273   :  { %v2962_v47 = vadd.f32 %v2961_v44, %v2960_v42  ;;  %v2970_v48 = vrot.slane %v2969_v45, 4 }
 0x275   :  { %v2963_v50 = vrot.slane %v2962_v47, 2  ;;  %v2971_v51 = vadd.f32 %v2970_v48, %v2969_v45 }
 0x277   :  { %v2964_v52 = vadd.f32 %v2963_v50, %v2962_v47  ;;  %v2972_v53 = vrot.slane %v2971_v51, 2 }
 0x279   :  { %v2965_v55 = vrot.slane %v2964_v52, 1  ;;  %v2973_v56 = vadd.f32 %v2972_v53, %v2971_v51 }
 0x27b   :  { %v2966_v57 = vadd.f32 %v2965_v55, %v2964_v52  ;;  %v2974_v58 = vrot.slane %v2973_v56, 1 }
 0x27d   :  { %v2967_v59 = vmul.f32 0.125, %v2966_v57  ;;  %v2975_v60 = vadd.f32 %v2974_v58, %v2973_v56 }
 0x27f   :  { %v2976_v61 = vmul.f32 0.125, %v2975_v60  ;;  %v2977_v62 = vmul.f32 %v2967_v59, %v2967_v59 }
 0x281   :  { %v2978_v63 = vsub.f32 %v2976_v61, %v2977_v62 }
 0x283   :  { %v2979_v20 = vadd.f32 1e-05, %v2978_v63 }
 0x285   :  { %5446 = vrsqrt.f32 %v2979_v20 }
 0x28f   :  { %v5447_v15 = vpop.eup %5446 }
 0x290   :  { %v2981_v24 = vmul.f32 %v5447_v15, %v7275_v46 }
 0x292   :  { %v2982_v29 = vmul.f32 %v2981_v24, %v2967_v59  ;;  %v2988_v30 = vpack.c.bf16 %v2981_v24, %v2981_v24 }
 0x294   :  { %v2984_v31 = vrot.slane %v2982_v29, 7  ;;  %v2990_v32 = vshrl.u32 %v2988_v30, 16 }
 0x296   :  { %v2986_v34 = vsub.f32 %v7275_v46, %v2984_v31  ;;  %v2991_v35 = vpack.i.b16 %v2990_v32, %v2990_v32 }
 0x298   :  { %v2996_v36 = vrot.slane %v2991_v35, %v7300_v33  ;;  %v2998_v37 = vpack.c.bf16 %v2986_v34, %v2986_v34 }
 0x29a   :  { %v3000_v39 = vpack.i.b16 %v2998_v37, %v2998_v37  ;;  %v2997_v40 = vmul.bf16 %v2996_v36, %v2987_v38 }
 0x29c   :  { %v3005_v42 = vrot.slane %v3000_v39, %v7292_v28 }
 0x29e   :  { %v3006_v43 = vadd.bf16 %v3005_v42, %v2997_v40 }
 0x29f   :  { %5536 = dma.done.wait [#allocation10 + $0x1], 1280 }
 0x2a0   :  { %5537 = vsyncadd [#allocation10 + $0x1], 4294966016  ;;  %v7669_v44 = vmov 0   ;;  %v3012_v45 = vld [vmem:[#allocation3 + $0x8] sm:$0xff]  ;;  %v3011_v47 = vld [vmem:[#allocation3] sm:$0xff]  ;;  %v3023_v57 = vsub.s32 5, %v7278_v49 }
 0x2a1   :  { %3064 = vmatprep.mubr.bf16.mxu1 %v7669_v44  ;;  %v3014_v48 = vld [vmem:[#allocation3 + $0x18] sm:$0xff]  ;;  %3032 = vmatprep.subr.bf16.mxu1 %v3012_v45  ;;  %v3013_v50 = vld [vmem:[#allocation3 + $0x10] sm:$0xff]  ;;  %v3016_v51 = vld [vmem:[#allocation3 + $0x28] sm:$0xff]  ;;  %vm3095_vm7 = vcmask 261120  }
 0x2a2   :  { %3033 = vmatpush1.bf16.msra.mxu1 %v3011_v47  ;;  %v3015_v41 = vld [vmem:[#allocation3 + $0x20] sm:$0xff]  ;;  %v3018_v52 = vld [vmem:[#allocation3 + $0x38] sm:$0xff]  ;;  %v3017_v53 = vld [vmem:[#allocation3 + $0x30] sm:$0xff]  ;;  %v3024_v58 = vrot.slane %v7275_v46, %v3023_v57  ;;  %v3028_v59 = vrot.slane %v7228_v16, %v3023_v57 }
 0x2a3   :  { %3034 = vmatprep.subr.bf16.mxu1 %v3014_v48  ;;  %v3020_v55 = vld [vmem:[#allocation3 + $0x48] sm:$0xff]  ;;  %v3019_v56 = vld [vmem:[#allocation3 + $0x40] sm:$0xff] }
 0x2a6   :  { %3035 = vmatpush1.bf16.msra.mxu1 %v3013_v50 }
 0x2a7   :  { %3036 = vmatprep.subr.bf16.mxu1 %v3016_v51 }
 0x2aa   :  { %3037 = vmatpush1.bf16.msra.mxu1 %v3015_v41 }
 0x2ab   :  { %3038 = vmatprep.subr.bf16.mxu1 %v3018_v52 }
 0x2ae   :  { %3039 = vmatpush1.bf16.msra.mxu1 %v3017_v53 }
 0x2af   :  { %3040 = vmatprep.subr.bf16.mxu1 %v3020_v55 }
 0x2b2   :  { %3041 = vmatpush1.bf16.msra.mxu1 %v3019_v56 }
 0x2b5   :  { %5232 = vmatmul.mubr.msk.bf16.vlgmr.msra.gmra.mrb[0].mxu1 %vm2959_vm4, %v3006_v43 }
 0x388   :  { %v3066_v60 = vpop.f32.mrb[0].mxu1 }
 0x389   :  { %v3067_v61 = vadd.f32 %v3066_v60, %v3024_v58  ;;  %v3068_v62 = vpop.f32.mrb[1].mxu1 }
 0x38a   :  { %v3069_v63 = vadd.f32 %v3068_v62, %v3028_v59  ;;  %v3070_v20 = vpop.f32.mrb[2].mxu1 }
 0x38b   :  { %v3073_v15 = vmin.f32 %v3067_v61, 0.0  ;;  %v3071_v24 = vpop.f32.mrb[3].mxu1  ;;  %vm3083_vm5 = vcmp.gt.f32.partialorder %v3067_v61, 0.0 }
 0x38c   :  { %v3074_v29 = vmin.f32 %v3069_v63, 0.0  ;;  %vm3084_vm6 = vcmp.gt.f32.partialorder %v3069_v63, 0.0 }
 0x38d   :  { %v3075_v30 = vmul.f32 1.442695, %v3073_v15 }
 0x38e   :  { %v3077_v31 = vmul.f32 1.442695, %v3074_v29 }
 0x38f   :  { %5448 = vpow2.f32 %v3075_v30 }
 0x390   :  { %5450 = vpow2.f32 %v3077_v31 }
 0x399   :  { %v5449_v32 = vpop.eup %5448 }
 0x39a   :  { %v5451_v34 = vpop.eup %5450  ;;  %v5233_v35 = vadd.f32 -1.0, %v5449_v32 }
 0x39b   :  { %v5234_v36 = vadd.f32 -1.0, %v5451_v34 }
 0x39c   :  { %v3081_v37 = vmul.f32 1.6732632, %v5233_v35 }
 0x39d   :  { %v3082_v38 = vmul.f32 1.6732632, %v5234_v36 }
 0x39e   :  { %v3085_v39 = vsel %vm3083_vm5, %v3067_v61, %v3081_v37 }
 0x39f   :  { %v7310_v40 = vmul.f32 1.050701, %v3085_v39  ;;  %v3086_v42 = vsel %vm3084_vm6, %v3069_v63, %v3082_v38 }
 0x3a0   :  { %v7312_v43 = vmul.f32 1.050701, %v3086_v42 }
 0x3a1   :  { %v3089_v45 = vrot.slane %v7310_v40, 4  ;;  %v3105_v47 = vmul.f32 %v7310_v40, %v7310_v40 }
 0x3a2   :  { %v3096_v48 = vsel %vm3095_vm7, %v7312_v43, 0.0  ;;  %v3106_v50 = vmul.f32 %v7312_v43, %v7312_v43 }
 0x3a3   :  { %v3090_v51 = vadd.f32 %v3089_v45, %v7310_v40  ;;  %v3107_v41 = vrot.slane %v3105_v47, 4  ;;  %v3097_v52 = vrot.slane %v3096_v48, 4 }
 0x3a4   :  { %v3113_v53 = vsel %vm3095_vm7, %v3106_v50, 0.0 }
 0x3a5   :  { %v3091_v55 = vrot.slane %v3090_v51, 2  ;;  %v3108_v56 = vadd.f32 %v3107_v41, %v3105_v47  ;;  %v3098_v57 = vadd.f32 %v3097_v52, %v3096_v48  ;;  %v3114_v58 = vrot.slane %v3113_v53, 4 }
 0x3a7   :  { %v3092_v59 = vadd.f32 %v3091_v55, %v3090_v51  ;;  %v3109_v60 = vrot.slane %v3108_v56, 2  ;;  %v3099_v61 = vrot.slane %v3098_v57, 2  ;;  %v3115_v62 = vadd.f32 %v3114_v58, %v3113_v53 }
 0x3a9   :  { %v3093_v63 = vrot.slane %v3092_v59, 1  ;;  %v3110_v20 = vadd.f32 %v3109_v60, %v3108_v56  ;;  %v3100_v15 = vadd.f32 %v3099_v61, %v3098_v57  ;;  %v3116_v24 = vrot.slane %v3115_v62, 2 }
 0x3ab   :  { %v3094_v29 = vadd.f32 %v3093_v63, %v3092_v59  ;;  %v3111_v30 = vrot.slane %v3110_v20, 1  ;;  %v3101_v31 = vrot.slane %v3100_v15, 1  ;;  %v3117_v32 = vadd.f32 %v3116_v24, %v3115_v62 }
 0x3ad   :  { %v3103_v34 = vmul.f32 0.125, %v3094_v29  ;;  %v3112_v35 = vadd.f32 %v3111_v30, %v3110_v20  ;;  %v3102_v36 = vadd.f32 %v3101_v31, %v3100_v15  ;;  %v3118_v37 = vrot.slane %v3117_v32, 1 }
 0x3ae   :  { %v7327_v15 = vsub.s32 3, %v7278_v49 }
 0x3af   :  { %v3120_v38 = vmul.f32 0.125, %v3112_v35  ;;  %v3122_v39 = vmul.f32 %v3103_v34, %v3103_v34  ;;  %v3104_v42 = vmul.f32 0.125, %v3102_v36  ;;  %v3119_v45 = vadd.f32 %v3118_v37, %v3117_v32 }
 0x3b0   :  { %v3142_v36 = vpack.c.bf16 %v7310_v40, %v7310_v40 }
 0x3b1   :  { %v3124_v47 = vsub.f32 %v3120_v38, %v3122_v39  ;;  %v3121_v48 = vmul.f32 0.125, %v3119_v45  ;;  %v3123_v50 = vmul.f32 %v3104_v42, %v3104_v42  ;;  %v3143_v45 = vpack.c.bf16 %v7312_v43, %v7312_v43 }
 0x3b3   :  { %v3126_v51 = vadd.f32 1e-05, %v3124_v47  ;;  %v3125_v41 = vsub.f32 %v3121_v48, %v3123_v50 }
 0x3b5   :  { %5452 = vrsqrt.f32 %v3126_v51  ;;  %v3127_v52 = vadd.f32 1e-05, %v3125_v41 }
 0x3b7   :  { %5454 = vrsqrt.f32 %v3127_v52 }
 0x3bf   :  { %v5453_v53 = vpop.eup %5452 }
 0x3c0   :  { %v3130_v55 = vmul.f32 %v5453_v53, %v7275_v46 }
 0x3c1   :  { %v5455_v56 = vpop.eup %5454 }
 0x3c2   :  { %v3132_v57 = vmul.f32 %v3130_v55, %v3103_v34  ;;  %v3144_v58 = vpack.c.bf16 %v3130_v55, %v3130_v55  ;;  %v3131_v59 = vmul.f32 %v5455_v56, %v7228_v16 }
 0x3c4   :  { %v3136_v60 = vrot.slane %v3132_v57, 7  ;;  %v3133_v61 = vmul.f32 %v3131_v59, %v3104_v42  ;;  %v3145_v62 = vpack.c.bf16 %v3131_v59, %v3131_v59  ;;  %v3147_v20 = vpack.i.b16 %v3144_v58, %v3144_v58 }
 0x3c6   :  { %v3140_v63 = vsub.f32 %v7275_v46, %v3136_v60  ;;  %v3137_v24 = vrot.slane %v3133_v61, 7  ;;  %v3154_v31 = vpack.i.b16 %v3145_v62, %v3145_v62  ;;  %v3152_v32 = vrot.slane %v3147_v20, %v7327_v15 }
 0x3c8   :  { %v3162_v29 = vpack.c.bf16 %v3140_v63, %v3140_v63  ;;  %v3141_v30 = vsub.f32 %v7228_v16, %v3137_v24  ;;  %v3159_v38 = vrot.slane %v3154_v31, %v7327_v15  ;;  %v3160_v39 = vmul.bf16 %v3152_v32, %v3142_v36 }
 0x3ca   :  { %v3165_v34 = vshrl.u32 %v3162_v29, 16  ;;  %v3163_v35 = vpack.c.bf16 %v3141_v30, %v3141_v30  ;;  %v3161_v48 = vmul.bf16 %v3159_v38, %v3143_v45 }
 0x3cc   :  { %v3166_v37 = vpack.i.b16 %v3165_v34, %v3165_v34  ;;  %v3173_v46 = vshrl.u32 %v3163_v35, 16 }
 0x3ce   :  { %v3171_v42 = vrot.slane %v3166_v37, %v7327_v15  ;;  %v3174_v47 = vpack.i.b16 %v3173_v46, %v3173_v46 }
 0x3d0   :  { %v7337_v16 = vadd.bf16 %v3171_v42, %v3160_v39  ;;  %v3179_v50 = vrot.slane %v3174_v47, %v7327_v15 }
 0x3d2   :  { %v3181_v51 = vadd.bf16 %v3179_v50, %v3161_v48 }
 0x3d3   :  { %5538 = dma.done.wait [#allocation10 + $0x2], 3840 }
 0x3d4   :  { %5539 = vsyncadd [#allocation10 + $0x2], 4294963456  ;;  %3272 = vmatprep.subr.bf16.mxu1 %v7669_v44  ;;  %5236 = vmatprep.mubr.msk.bf16.mxu1 %vm3095_vm7, %v3181_v51  ;;  %v3187_v40 = vld [vmem:[#allocation4 + $0x8] sm:$0xff]  ;;  %v3188_v41 = vld [vmem:[#allocation4 + $0x10] sm:$0xff]  ;;  %v3227_v48 = vrot.slane %v7244_v21, %v7281_v54  ;;  %v3219_v50 = vrot.slane %v7233_v17, %v7281_v54  ;;  %vm3348_vm9 = vcmask 523264  }
 0x3d5   :  { %5235 = vmatprep.mubr.msk.bf16.mxu0 %vm3095_vm7, %v3181_v51  ;;  %v3186_v52 = vld [vmem:[#allocation4] sm:$0xff]  ;;  %3231 = vmatprep.subr.bf16.mxu0 %v3187_v40  ;;  %v3191_v53 = vld [vmem:[#allocation4 + $0x28] sm:$0xff]  ;;  %v3189_v55 = vld [vmem:[#allocation4 + $0x18] sm:$0xff]  ;;  %v3223_v51 = vrot.slane %v7238_v18, %v7281_v54 }
 0x3d6   :  { %3273 = vmatpush1.bf16.msra.mxu1 %v3188_v41  ;;  %v3190_v43 = vld [vmem:[#allocation4 + $0x20] sm:$0xff]  ;;  %3232 = vmatpush1.bf16.msra.mxu0 %v3186_v52  ;;  %v3193_v56 = vld [vmem:[#allocation4 + $0x38] sm:$0xff]  ;;  %v3192_v58 = vld [vmem:[#allocation4 + $0x30] sm:$0xff] }
 0x3d7   :  { %3274 = vmatprep.subr.bf16.mxu1 %v7669_v44  ;;  %3233 = vmatprep.subr.bf16.mxu0 %v3190_v43  ;;  %v3194_v57 = vld [vmem:[#allocation4 + $0x40] sm:$0xff]  ;;  %v3196_v59 = vld [vmem:[#allocation4 + $0x50] sm:$0xff]  ;;  %v3197_v60 = vld [vmem:[#allocation4 + $0x58] sm:$0xff] }
 0x3d8   :  { %v3195_v61 = vld [vmem:[#allocation4 + $0x48] sm:$0xff]  ;;  %v3200_v63 = vld [vmem:[#allocation4 + $0x70] sm:$0xff]  ;;  %v3198_v20 = vld [vmem:[#allocation4 + $0x60] sm:$0xff] }
 0x3d9   :  { %v3199_v62 = vld [vmem:[#allocation4 + $0x68] sm:$0xff]  ;;  %v3202_v24 = vld [vmem:[#allocation4 + $0x80] sm:$0xff]  ;;  %v3201_v30 = vld [vmem:[#allocation4 + $0x78] sm:$0xff] }
 0x3da   :  { %3275 = vmatpush1.bf16.msra.mxu1 %v3191_v53  ;;  %3234 = vmatpush1.bf16.msra.mxu0 %v3189_v55  ;;  %v3203_v29 = vld [vmem:[#allocation4 + $0x88] sm:$0xff]  ;;  %v3205_v31 = vld [vmem:[#allocation4 + $0x98] sm:$0xff]  ;;  %v3206_v32 = vld [vmem:[#allocation4 + $0xa0] sm:$0xff] }
 0x3db   :  { %3276 = vmatprep.subr.bf16.mxu1 %v7669_v44  ;;  %3235 = vmatprep.subr.bf16.mxu0 %v3193_v56  ;;  %v3204_v34 = vld [vmem:[#allocation4 + $0x90] sm:$0xff]  ;;  %v3209_v36 = vld [vmem:[#allocation4 + $0xb8] sm:$0xff]  ;;  %v3207_v37 = vld [vmem:[#allocation4 + $0xa8] sm:$0xff] }
 0x3dc   :  { %v3208_v35 = vld [vmem:[#allocation4 + $0xb0] sm:$0xff]  ;;  %v3211_v38 = vld [vmem:[#allocation4 + $0xc8] sm:$0xff]  ;;  %v3210_v39 = vld [vmem:[#allocation4 + $0xc0] sm:$0xff] }
 0x3dd   :  { %v3212_v46 = vld [vmem:[#allocation4 + $0xd0] sm:$0xff]  ;;  %v3214_v42 = vld [vmem:[#allocation4 + $0xe0] sm:$0xff]  ;;  %v3215_v45 = vld [vmem:[#allocation4 + $0xe8] sm:$0xff] }
 0x3de   :  { %3277 = vmatpush1.bf16.msra.mxu1 %v3194_v57  ;;  %3236 = vmatpush1.bf16.msra.mxu0 %v3192_v58  ;;  %v3213_v47 = vld [vmem:[#allocation4 + $0xd8] sm:$0xff] }
 0x3df   :  { %3278 = vmatprep.subr.bf16.mxu1 %v7669_v44  ;;  %3237 = vmatprep.subr.bf16.mxu0 %v3196_v59 }
 0x3e2   :  { %3279 = vmatpush1.bf16.msra.mxu1 %v3197_v60  ;;  %3238 = vmatpush1.bf16.msra.mxu0 %v3195_v61 }
 0x3e3   :  { %3280 = vmatprep.subr.bf16.mxu1 %v7669_v44  ;;  %3239 = vmatprep.subr.bf16.mxu0 %v3199_v62 }
 0x3e6   :  { %3281 = vmatpush1.bf16.msra.mxu1 %v3200_v63  ;;  %3240 = vmatpush1.bf16.msra.mxu0 %v3198_v20 }
 0x3e7   :  { %3282 = vmatprep.subr.bf16.mxu1 %v7669_v44  ;;  %3241 = vmatprep.subr.bf16.mxu0 %v3202_v24 }
 0x3ea   :  { %3283 = vmatpush1.bf16.msra.mxu1 %v3203_v29  ;;  %3242 = vmatpush1.bf16.msra.mxu0 %v3201_v30 }
 0x3eb   :  { %3284 = vmatprep.subr.bf16.mxu1 %v7669_v44  ;;  %3243 = vmatprep.subr.bf16.mxu0 %v3205_v31 }
 0x3ee   :  { %3285 = vmatpush1.bf16.msra.mxu1 %v3206_v32  ;;  %3244 = vmatpush1.bf16.msra.mxu0 %v3204_v34 }
 0x3ef   :  { %3286 = vmatprep.subr.bf16.mxu1 %v7669_v44  ;;  %3245 = vmatprep.subr.bf16.mxu0 %v3208_v35 }
 0x3f2   :  { %3287 = vmatpush1.bf16.msra.mxu1 %v3209_v36  ;;  %3246 = vmatpush1.bf16.msra.mxu0 %v3207_v37 }
 0x3f3   :  { %3288 = vmatprep.subr.bf16.mxu1 %v7669_v44  ;;  %3247 = vmatprep.subr.bf16.mxu0 %v3211_v38 }
 0x3f6   :  { %3289 = vmatpush1.bf16.msra.mxu1 %v3212_v46  ;;  %3248 = vmatpush1.bf16.msra.mxu0 %v3210_v39 }
 0x3f7   :  { %3290 = vmatprep.subr.bf16.mxu1 %v7669_v44  ;;  %3249 = vmatprep.subr.bf16.mxu0 %v3214_v42 }
 0x3fa   :  { %3291 = vmatpush1.bf16.msra.mxu1 %v3215_v45  ;;  %3250 = vmatpush1.bf16.msra.mxu0 %v3213_v47 }
 0x3fd   :  { %3305 = vmatmul.mubr.bf16.vlgmr.msra.gmra.mrb[4].mxu1 %v7337_v16  ;;  %3264 = vmatmul.mubr.bf16.vlgmr.msra.gmra.mrb[4].mxu0 %v7337_v16 }
 0x4d0   :  { %v3306_v40 = vpop.f32.mrb[4].mxu1  ;;  %v3265_v52 = vpop.f32.mrb[4].mxu0 }
 0x4d1   :  { %v3307_v41 = vadd.f32 %v3306_v40, %v3227_v48  ;;  %v3308_v43 = vpop.f32.mrb[5].mxu1  ;;  %v3266_v53 = vadd.f32 %v3265_v52, %v3219_v50  ;;  %v3267_v55 = vpop.f32.mrb[5].mxu0 }
 0x4d2   :  { %v3309_v56 = vpop.f32.mrb[6].mxu1  ;;  %v3268_v58 = vadd.f32 %v3267_v55, %v3223_v51  ;;  %v3269_v59 = vpop.f32.mrb[6].mxu0 }
 0x4d3   :  { %v3314_v57 = vmin.f32 %v3307_v41, 0.0  ;;  %v3310_v16 = vpop.f32.mrb[7].mxu1  ;;  %v3312_v60 = vmin.f32 %v3266_v53, 0.0  ;;  %v3270_v61 = vpop.f32.mrb[7].mxu0  ;;  %vm3329_vm8 = vcmp.gt.f32.partialorder %v3307_v41, 0.0  ;;  %vm3327_vm10 = vcmp.gt.f32.partialorder %v3266_v53, 0.0 }
 0x4d4   :  { %v3313_v63 = vmin.f32 %v3268_v58, 0.0  ;;  %vm3328_vm11 = vcmp.gt.f32.partialorder %v3268_v58, 0.0 }
 0x4d5   :  { %v3319_v62 = vmul.f32 1.442695, %v3314_v57  ;;  %v3315_v20 = vmul.f32 1.442695, %v3312_v60 }
 0x4d6   :  { %v3317_v24 = vmul.f32 1.442695, %v3313_v63 }
 0x4d7   :  { %5456 = vpow2.f32 %v3319_v62 }
 0x4d8   :  { %5458 = vpow2.f32 %v3315_v20 }
 0x4d9   :  { %5460 = vpow2.f32 %v3317_v24 }
 0x4e1   :  { %v5457_v29 = vpop.eup %5456 }
 0x4e2   :  { %v5459_v30 = vpop.eup %5458  ;;  %v5239_v31 = vadd.f32 -1.0, %v5457_v29 }
 0x4e3   :  { %v5461_v32 = vpop.eup %5460  ;;  %v5237_v34 = vadd.f32 -1.0, %v5459_v30 }
 0x4e4   :  { %v3326_v35 = vmul.f32 1.6732632, %v5239_v31  ;;  %v5238_v36 = vadd.f32 -1.0, %v5461_v32 }
 0x4e5   :  { %v3324_v37 = vmul.f32 1.6732632, %v5237_v34 }
 0x4e6   :  { %v3332_v38 = vsel %vm3329_vm8, %v3307_v41, %v3326_v35  ;;  %v3325_v46 = vmul.f32 1.6732632, %v5238_v36 }
 0x4e7   :  { %v7360_v39 = vmul.f32 1.050701, %v3332_v38  ;;  %v3330_v42 = vsel %vm3327_vm10, %v3266_v53, %v3324_v37 }
 0x4e8   :  { %v7362_v45 = vmul.f32 1.050701, %v3330_v42  ;;  %v3331_v47 = vsel %vm3328_vm11, %v3268_v58, %v3325_v46 }
 0x4e9   :  { %v3349_v48 = vsel %vm3348_vm9, %v7360_v39, 0.0  ;;  %v3361_v50 = vmul.f32 %v7360_v39, %v7360_v39  ;;  %v7368_v51 = vmul.f32 1.050701, %v3331_v47 }
 0x4ea   :  { %v3350_v40 = vrot.slane %v3349_v48, 4  ;;  %v3336_v41 = vrot.slane %v7362_v45, 4  ;;  %v3359_v52 = vmul.f32 %v7362_v45, %v7362_v45 }
 0x4eb   :  { %v3374_v43 = vsel %vm3348_vm9, %v3361_v50, 0.0  ;;  %v3342_v53 = vrot.slane %v7368_v51, 4  ;;  %v3360_v55 = vmul.f32 %v7368_v51, %v7368_v51 }
 0x4ec   :  { %v3351_v56 = vadd.f32 %v3350_v40, %v3349_v48  ;;  %v3375_v57 = vrot.slane %v3374_v43, 4  ;;  %v3337_v58 = vadd.f32 %v3336_v41, %v7362_v45  ;;  %v3362_v59 = vrot.slane %v3359_v52, 4 }
 0x4ed   :  { %v3343_v16 = vadd.f32 %v3342_v53, %v7368_v51  ;;  %v3368_v60 = vrot.slane %v3360_v55, 4 }
 0x4ee   :  { %v3352_v61 = vrot.slane %v3351_v56, 2  ;;  %v3376_v62 = vadd.f32 %v3375_v57, %v3374_v43  ;;  %v3338_v63 = vrot.slane %v3337_v58, 2  ;;  %v3363_v20 = vadd.f32 %v3362_v59, %v3359_v52 }
 0x4ef   :  { %v3344_v24 = vrot.slane %v3343_v16, 2  ;;  %v3369_v29 = vadd.f32 %v3368_v60, %v3360_v55 }
 0x4f0   :  { %v3353_v30 = vadd.f32 %v3352_v61, %v3351_v56  ;;  %v3377_v31 = vrot.slane %v3376_v62, 2  ;;  %v3339_v32 = vadd.f32 %v3338_v63, %v3337_v58  ;;  %v3364_v34 = vrot.slane %v3363_v20, 2 }
 0x4f1   :  { %v3345_v35 = vadd.f32 %v3344_v24, %v3343_v16  ;;  %v3370_v36 = vrot.slane %v3369_v29, 2 }
 0x4f2   :  { %v3354_v37 = vrot.slane %v3353_v30, 1  ;;  %v3378_v38 = vadd.f32 %v3377_v31, %v3376_v62  ;;  %v3340_v46 = vrot.slane %v3339_v32, 1  ;;  %v3365_v42 = vadd.f32 %v3364_v34, %v3363_v20 }
 0x4f3   :  { %v3346_v47 = vrot.slane %v3345_v35, 1  ;;  %v3371_v48 = vadd.f32 %v3370_v36, %v3369_v29 }
 0x4f4   :  { %v3355_v50 = vadd.f32 %v3354_v37, %v3353_v30  ;;  %v3379_v40 = vrot.slane %v3378_v38, 1  ;;  %v3341_v41 = vadd.f32 %v3340_v46, %v3339_v32  ;;  %v3366_v43 = vrot.slane %v3365_v42, 1 }
 0x4f5   :  { %v3347_v53 = vadd.f32 %v3346_v47, %v3345_v35  ;;  %v3372_v52 = vrot.slane %v3371_v48, 1 }
 0x4f6   :  { %v3358_v57 = vmul.f32 0.125, %v3355_v50  ;;  %v3380_v55 = vadd.f32 %v3379_v40, %v3378_v38  ;;  %v3356_v56 = vmul.f32 0.125, %v3341_v41  ;;  %v3367_v59 = vadd.f32 %v3366_v43, %v3365_v42 }
 0x4f7   :  { %v3357_v58 = vmul.f32 0.125, %v3347_v53  ;;  %v3373_v60 = vadd.f32 %v3372_v52, %v3371_v48 }
 0x4f8   :  { %v3383_v16 = vmul.f32 0.125, %v3380_v55  ;;  %v3386_v61 = vmul.f32 %v3358_v57, %v3358_v57  ;;  %v3381_v63 = vmul.f32 0.125, %v3367_v59  ;;  %v3384_v62 = vmul.f32 %v3356_v56, %v3356_v56 }
 0x4f9   :  { %v3382_v24 = vmul.f32 0.125, %v3373_v60  ;;  %v3385_v20 = vmul.f32 %v3357_v58, %v3357_v58 }
 0x4fa   :  { %v3389_v31 = vsub.f32 %v3383_v16, %v3386_v61  ;;  %v3387_v29 = vsub.f32 %v3381_v63, %v3384_v62 }
 0x4fb   :  { %v3388_v30 = vsub.f32 %v3382_v24, %v3385_v20 }
 0x4fc   :  { %v3392_v34 = vadd.f32 1e-05, %v3389_v31  ;;  %v3390_v32 = vadd.f32 1e-05, %v3387_v29 }
 0x4fd   :  { %v3391_v36 = vadd.f32 1e-05, %v3388_v30 }
 0x4fe   :  { %5462 = vrsqrt.f32 %v3392_v34  ;;  %v3416_v34 = vpack.c.bf16 %v7360_v39, %v7360_v39 }
 0x4ff   :  { %5464 = vrsqrt.f32 %v3390_v32 }
 0x500   :  { %5466 = vrsqrt.f32 %v3391_v36 }
 0x508   :  { %v5463_v35 = vpop.eup %5462 }
 0x509   :  { %v5465_v37 = vpop.eup %5464  ;;  %v3398_v38 = vmul.f32 %v5463_v35, %v7244_v21 }
 0x50a   :  { %v5467_v46 = vpop.eup %5466  ;;  %v3396_v42 = vmul.f32 %v5465_v37, %v7233_v17  ;;  %v3414_v37 = vpack.c.bf16 %v7362_v45, %v7362_v45 }
 0x50b   :  { %v3401_v47 = vmul.f32 %v3398_v38, %v3358_v57  ;;  %v3419_v48 = vpack.c.bf16 %v3398_v38, %v3398_v38  ;;  %v3397_v50 = vmul.f32 %v5467_v46, %v7238_v18 }
 0x50c   :  { %v3399_v40 = vmul.f32 %v3396_v42, %v3356_v56  ;;  %v3417_v41 = vpack.c.bf16 %v3396_v42, %v3396_v42 }
 0x50d   :  { %v3407_v43 = vrot.slane %v3401_v47, 7  ;;  %v3437_v53 = vshrl.u32 %v3419_v48, 16  ;;  %v3400_v52 = vmul.f32 %v3397_v50, %v3357_v58  ;;  %v3418_v55 = vpack.c.bf16 %v3397_v50, %v3397_v50 }
 0x50e   :  { %v3405_v59 = vrot.slane %v3399_v40, 7  ;;  %v3421_v60 = vshrl.u32 %v3417_v41, 16  ;;  %v3415_v47 = vpack.c.bf16 %v7368_v51, %v7368_v51 }
 0x50f   :  { %v3413_v16 = vsub.f32 %v7244_v21, %v3407_v43  ;;  %v3438_v61 = vpack.i.b16 %v3437_v53, %v3437_v53  ;;  %v3406_v63 = vrot.slane %v3400_v52, 7  ;;  %v3429_v62 = vshrl.u32 %v3418_v55, 16 }
 0x510   :  { %v3411_v24 = vsub.f32 %v7233_v17, %v3405_v59  ;;  %v3422_v20 = vpack.i.b16 %v3421_v60, %v3421_v60 }
 0x511   :  { %v3443_v57 = vrot.slane %v3438_v61, %v7281_v54  ;;  %v3449_v31 = vpack.c.bf16 %v3413_v16, %v3413_v16  ;;  %v3412_v56 = vsub.f32 %v7238_v18, %v3406_v63  ;;  %v3430_v29 = vpack.i.b16 %v3429_v62, %v3429_v62 }
 0x512   :  { %v3427_v30 = vrot.slane %v3422_v20, %v7281_v54  ;;  %v3447_v58 = vpack.c.bf16 %v3411_v24, %v3411_v24 }
 0x513   :  { %v3465_v32 = vpack.i.b16 %v3449_v31, %v3449_v31  ;;  %v3435_v36 = vrot.slane %v3430_v29, %v7281_v54  ;;  %v3448_v35 = vpack.c.bf16 %v3412_v56, %v3412_v56  ;;  %v3446_v46 = vmul.bf16 %v3443_v57, %v3416_v34 }
 0x514   :  { %v3451_v38 = vpack.i.b16 %v3447_v58, %v3447_v58  ;;  %v3444_v50 = vmul.bf16 %v3427_v30, %v3414_v37 }
 0x515   :  { %v3470_v42 = vrot.slane %v3465_v32, %v7300_v33  ;;  %v3458_v48 = vpack.i.b16 %v3448_v35, %v3448_v35  ;;  %v3445_v39 = vmul.bf16 %v3435_v36, %v3415_v47 }
 0x516   :  { %v3456_v40 = vrot.slane %v3451_v38, %v7300_v33 }
 0x517   :  { %v7396_v41 = vadd.bf16 %v3470_v42, %v3446_v46  ;;  %v3463_v43 = vrot.slane %v3458_v48, %v7300_v33 }
 0x518   :  { %v7399_v53 = vadd.bf16 %v3456_v40, %v3444_v50 }
 0x519   :  { %v7401_v52 = vadd.bf16 %v3463_v43, %v3445_v39 }
 0x51a   :  { %5540 = dma.done.wait [#allocation10 + $0x3], 12800 }
 0x51b   :  { %5541 = vsyncadd [#allocation10 + $0x3], 4294954496  ;;  %3633 = vmatprep.mubr.bf16.mxu0 %v7401_v52  ;;  %3715 = vmatprep.mubr.bf16.mxu1 %v7401_v52  ;;  %v3479_v45 = vld [vmem:[#allocation5 + $0x8] sm:$0xff]  ;;  %v3481_v51 = vld [vmem:[#allocation5 + $0x18] sm:$0xff] }
 0x51c   :  { %v3478_v55 = vld [vmem:[#allocation5] sm:$0xff]  ;;  %3601 = vmatprep.subr.bf16.mxu0 %v3479_v45  ;;  %3683 = vmatprep.subr.bf16.mxu1 %v3481_v51  ;;  %v3480_v59 = vld [vmem:[#allocation5 + $0x10] sm:$0xff]  ;;  %v3483_v61 = vld [vmem:[#allocation5 + $0x28] sm:$0xff] }
 0x51d   :  { %v3484_v60 = vld [vmem:[#allocation5 + $0x30] sm:$0xff]  ;;  %v3486_v16 = vld [vmem:[#allocation5 + $0x40] sm:$0xff]  ;;  %3602 = vmatpush1.bf16.msra.mxu0 %v3478_v55  ;;  %3684 = vmatpush1.bf16.msra.mxu1 %v3480_v59  ;;  %v3485_v63 = vld [vmem:[#allocation5 + $0x38] sm:$0xff] }
 0x51e   :  { %3603 = vmatprep.subr.bf16.mxu0 %v3484_v60  ;;  %3685 = vmatprep.subr.bf16.mxu1 %v3486_v16  ;;  %v3489_v62 = vld [vmem:[#allocation5 + $0x58] sm:$0xff]  ;;  %v3491_v24 = vld [vmem:[#allocation5 + $0x68] sm:$0xff]  ;;  %v3488_v20 = vld [vmem:[#allocation5 + $0x50] sm:$0xff] }
 0x51f   :  { %v3490_v57 = vld [vmem:[#allocation5 + $0x60] sm:$0xff]  ;;  %v3496_v56 = vld [vmem:[#allocation5 + $0x90] sm:$0xff]  ;;  %v3493_v29 = vld [vmem:[#allocation5 + $0x78] sm:$0xff] }
 0x520   :  { %v3494_v31 = vld [vmem:[#allocation5 + $0x80] sm:$0xff]  ;;  %v3495_v30 = vld [vmem:[#allocation5 + $0x88] sm:$0xff]  ;;  %v3501_v34 = vld [vmem:[#allocation5 + $0xb8] sm:$0xff] }
 0x521   :  { %3604 = vmatpush1.bf16.msra.mxu0 %v3483_v61  ;;  %3686 = vmatpush1.bf16.msra.mxu1 %v3485_v63  ;;  %v3499_v58 = vld [vmem:[#allocation5 + $0xa8] sm:$0xff]  ;;  %v3498_v32 = vld [vmem:[#allocation5 + $0xa0] sm:$0xff]  ;;  %v3500_v36 = vld [vmem:[#allocation5 + $0xb0] sm:$0xff] }
 0x522   :  { %3605 = vmatprep.subr.bf16.mxu0 %v3489_v62  ;;  %3687 = vmatprep.subr.bf16.mxu1 %v3491_v24  ;;  %v3504_v35 = vld [vmem:[#allocation5 + $0xd0] sm:$0xff]  ;;  %v3506_v37 = vld [vmem:[#allocation5 + $0xe0] sm:$0xff]  ;;  %v3503_v38 = vld [vmem:[#allocation5 + $0xc8] sm:$0xff] }
 0x523   :  { %v3505_v46 = vld [vmem:[#allocation5 + $0xd8] sm:$0xff]  ;;  %v3511_v47 = vld [vmem:[#allocation5 + $0x108] sm:$0xff]  ;;  %v3508_v48 = vld [vmem:[#allocation5 + $0xf0] sm:$0xff] }
 0x524   :  { %v3509_v42 = vld [vmem:[#allocation5 + $0xf8] sm:$0xff]  ;;  %v3510_v50 = vld [vmem:[#allocation5 + $0x100] sm:$0xff]  ;;  %v3516_v39 = vld [vmem:[#allocation5 + $0x130] sm:$0xff] }
 0x525   :  { %3606 = vmatpush1.bf16.msra.mxu0 %v3488_v20  ;;  %3688 = vmatpush1.bf16.msra.mxu1 %v3490_v57  ;;  %v3514_v40 = vld [vmem:[#allocation5 + $0x120] sm:$0xff]  ;;  %v3513_v43 = vld [vmem:[#allocation5 + $0x118] sm:$0xff]  ;;  %v3515_v45 = vld [vmem:[#allocation5 + $0x128] sm:$0xff] }
 0x526   :  { %3607 = vmatprep.subr.bf16.mxu0 %v3494_v31  ;;  %3689 = vmatprep.subr.bf16.mxu1 %v3496_v56  ;;  %v3519_v51 = vld [vmem:[#allocation5 + $0x148] sm:$0xff]  ;;  %v3521_v55 = vld [vmem:[#allocation5 + $0x158] sm:$0xff]  ;;  %v3518_v59 = vld [vmem:[#allocation5 + $0x140] sm:$0xff] }
 0x527   :  { %v3520_v60 = vld [vmem:[#allocation5 + $0x150] sm:$0xff]  ;;  %v3526_v61 = vld [vmem:[#allocation5 + $0x180] sm:$0xff]  ;;  %v3523_v63 = vld [vmem:[#allocation5 + $0x168] sm:$0xff] }
 0x528   :  { %v3524_v16 = vld [vmem:[#allocation5 + $0x170] sm:$0xff]  ;;  %v3525_v62 = vld [vmem:[#allocation5 + $0x178] sm:$0xff]  ;;  %v3531_v20 = vld [vmem:[#allocation5 + $0x1a8] sm:$0xff] }
 0x529   :  { %3608 = vmatpush1.bf16.msra.mxu0 %v3493_v29  ;;  %3690 = vmatpush1.bf16.msra.mxu1 %v3495_v30  ;;  %v3529_v24 = vld [vmem:[#allocation5 + $0x198] sm:$0xff]  ;;  %v3528_v57 = vld [vmem:[#allocation5 + $0x190] sm:$0xff]  ;;  %v3530_v31 = vld [vmem:[#allocation5 + $0x1a0] sm:$0xff] }
 0x52a   :  { %3609 = vmatprep.subr.bf16.mxu0 %v3499_v58  ;;  %3691 = vmatprep.subr.bf16.mxu1 %v3501_v34  ;;  %v3534_v56 = vld [vmem:[#allocation5 + $0x1c0] sm:$0xff]  ;;  %v3536_v29 = vld [vmem:[#allocation5 + $0x1d0] sm:$0xff]  ;;  %v3533_v30 = vld [vmem:[#allocation5 + $0x1b8] sm:$0xff] }
 0x52b   :  { %v3535_v58 = vld [vmem:[#allocation5 + $0x1c8] sm:$0xff] }
 0x52c   :  { %v3539_v34 = vld [vmem:[#allocation5 + $0x1e8] sm:$0xff] }
 0x52d   :  { %3610 = vmatpush1.bf16.msra.mxu0 %v3498_v32  ;;  %3692 = vmatpush1.bf16.msra.mxu1 %v3500_v36  ;;  %v3541_v32 = vld [vmem:[#allocation5 + $0x1f8] sm:$0xff]  ;;  %v3538_v36 = vld [vmem:[#allocation5 + $0x1e0] sm:$0xff] }
 0x52e   :  { %3611 = vmatprep.subr.bf16.mxu0 %v3504_v35  ;;  %3693 = vmatprep.subr.bf16.mxu1 %v3506_v37  ;;  %v3540_v35 = vld [vmem:[#allocation5 + $0x1f0] sm:$0xff] }
 0x52f   :  { %v3544_v37 = vld [vmem:[#allocation5 + $0x210] sm:$0xff] }
 0x531   :  { %3612 = vmatpush1.bf16.msra.mxu0 %v3503_v38  ;;  %3694 = vmatpush1.bf16.msra.mxu1 %v3505_v46  ;;  %v3546_v38 = vld [vmem:[#allocation5 + $0x220] sm:$0xff]  ;;  %v3543_v46 = vld [vmem:[#allocation5 + $0x208] sm:$0xff] }
 0x532   :  { %3613 = vmatprep.subr.bf16.mxu0 %v3509_v42  ;;  %3695 = vmatprep.subr.bf16.mxu1 %v3511_v47  ;;  %v3545_v42 = vld [vmem:[#allocation5 + $0x218] sm:$0xff] }
 0x533   :  { %v3549_v47 = vld [vmem:[#allocation5 + $0x238] sm:$0xff] }
 0x535   :  { %3614 = vmatpush1.bf16.msra.mxu0 %v3508_v48  ;;  %3696 = vmatpush1.bf16.msra.mxu1 %v3510_v50  ;;  %v3551_v48 = vld [vmem:[#allocation5 + $0x248] sm:$0xff]  ;;  %v3548_v50 = vld [vmem:[#allocation5 + $0x230] sm:$0xff] }
 0x536   :  { %3615 = vmatprep.subr.bf16.mxu0 %v3514_v40  ;;  %3697 = vmatprep.subr.bf16.mxu1 %v3516_v39  ;;  %v3550_v40 = vld [vmem:[#allocation5 + $0x240] sm:$0xff] }
 0x537   :  { %v3554_v39 = vld [vmem:[#allocation5 + $0x260] sm:$0xff] }
 0x539   :  { %3616 = vmatpush1.bf16.msra.mxu0 %v3513_v43  ;;  %3698 = vmatpush1.bf16.msra.mxu1 %v3515_v45  ;;  %v3556_v43 = vld [vmem:[#allocation5 + $0x270] sm:$0xff]  ;;  %v3553_v45 = vld [vmem:[#allocation5 + $0x258] sm:$0xff] }
 0x53a   :  { %3617 = vmatprep.subr.bf16.mxu0 %v3519_v51  ;;  %3699 = vmatprep.subr.bf16.mxu1 %v3521_v55  ;;  %v3555_v51 = vld [vmem:[#allocation5 + $0x268] sm:$0xff] }
 0x53b   :  { %v3559_v55 = vld [vmem:[#allocation5 + $0x288] sm:$0xff] }
 0x53d   :  { %3618 = vmatpush1.bf16.msra.mxu0 %v3518_v59  ;;  %3700 = vmatpush1.bf16.msra.mxu1 %v3520_v60  ;;  %v3561_v59 = vld [vmem:[#allocation5 + $0x298] sm:$0xff]  ;;  %v3558_v60 = vld [vmem:[#allocation5 + $0x280] sm:$0xff] }
 0x53e   :  { %3619 = vmatprep.subr.bf16.mxu0 %v3524_v16  ;;  %3701 = vmatprep.subr.bf16.mxu1 %v3526_v61  ;;  %v3560_v16 = vld [vmem:[#allocation5 + $0x290] sm:$0xff] }
 0x53f   :  { %v3564_v61 = vld [vmem:[#allocation5 + $0x2b0] sm:$0xff] }
 0x541   :  { %3620 = vmatpush1.bf16.msra.mxu0 %v3523_v63  ;;  %3702 = vmatpush1.bf16.msra.mxu1 %v3525_v62  ;;  %v3566_v63 = vld [vmem:[#allocation5 + $0x2c0] sm:$0xff]  ;;  %v3563_v62 = vld [vmem:[#allocation5 + $0x2a8] sm:$0xff] }
 0x542   :  { %3621 = vmatprep.subr.bf16.mxu0 %v3529_v24  ;;  %3703 = vmatprep.subr.bf16.mxu1 %v3531_v20  ;;  %v3565_v24 = vld [vmem:[#allocation5 + $0x2b8] sm:$0xff] }
 0x543   :  { %v3569_v20 = vld [vmem:[#allocation5 + $0x2d8] sm:$0xff] }
 0x545   :  { %3622 = vmatpush1.bf16.msra.mxu0 %v3528_v57  ;;  %3704 = vmatpush1.bf16.msra.mxu1 %v3530_v31  ;;  %v3571_v57 = vld [vmem:[#allocation5 + $0x2e8] sm:$0xff]  ;;  %v3568_v31 = vld [vmem:[#allocation5 + $0x2d0] sm:$0xff] }
 0x546   :  { %3623 = vmatprep.subr.bf16.mxu0 %v3534_v56  ;;  %3705 = vmatprep.subr.bf16.mxu1 %v3536_v29  ;;  %v3570_v56 = vld [vmem:[#allocation5 + $0x2e0] sm:$0xff] }
 0x547   :  { %v3574_v29 = vld [vmem:[#allocation5 + $0x300] sm:$0xff] }
 0x549   :  { %3624 = vmatpush1.bf16.msra.mxu0 %v3533_v30  ;;  %3706 = vmatpush1.bf16.msra.mxu1 %v3535_v58  ;;  %v3576_v30 = vld [vmem:[#allocation5 + $0x310] sm:$0xff]  ;;  %v3573_v58 = vld [vmem:[#allocation5 + $0x2f8] sm:$0xff] }
 0x54a   :  { %3625 = vmatprep.subr.bf16.mxu0 %v3539_v34  ;;  %3707 = vmatprep.subr.bf16.mxu1 %v3541_v32  ;;  %v3575_v34 = vld [vmem:[#allocation5 + $0x308] sm:$0xff]  ;;  %v3522_v32 = vld [vmem:[#allocation5 + $0x160] sm:$0xff] }
 0x54d   :  { %3626 = vmatpush1.bf16.msra.mxu0 %v3538_v36  ;;  %3708 = vmatpush1.bf16.msra.mxu1 %v3540_v35  ;;  %v3482_v36 = vld [vmem:[#allocation5 + $0x20] sm:$0xff] }
 0x54e   :  { %3627 = vmatprep.subr.bf16.mxu0 %v3544_v37  ;;  %3709 = vmatprep.subr.bf16.mxu1 %v3546_v38  ;;  %v3562_v35 = vld [vmem:[#allocation5 + $0x2a0] sm:$0xff]  ;;  %v3527_v37 = vld [vmem:[#allocation5 + $0x188] sm:$0xff] }
 0x54f   :  { %v3487_v38 = vld [vmem:[#allocation5 + $0x48] sm:$0xff] }
 0x551   :  { %3628 = vmatpush1.bf16.msra.mxu0 %v3543_v46  ;;  %3710 = vmatpush1.bf16.msra.mxu1 %v3545_v42  ;;  %v3567_v46 = vld [vmem:[#allocation5 + $0x2c8] sm:$0xff]  ;;  %v3532_v42 = vld [vmem:[#allocation5 + $0x1b0] sm:$0xff] }
 0x552   :  { %3629 = vmatprep.subr.bf16.mxu0 %v3549_v47  ;;  %3711 = vmatprep.subr.bf16.mxu1 %v3551_v48  ;;  %v3492_v47 = vld [vmem:[#allocation5 + $0x70] sm:$0xff] }
 0x553   :  { %v3572_v48 = vld [vmem:[#allocation5 + $0x2f0] sm:$0xff] }
 0x555   :  { %3630 = vmatpush1.bf16.msra.mxu0 %v3548_v50  ;;  %3712 = vmatpush1.bf16.msra.mxu1 %v3550_v40  ;;  %v3537_v50 = vld [vmem:[#allocation5 + $0x1d8] sm:$0xff] }
 0x556   :  { %3631 = vmatprep.subr.bf16.mxu0 %v3554_v39  ;;  %3713 = vmatprep.subr.bf16.mxu1 %v3556_v43  ;;  %v3497_v40 = vld [vmem:[#allocation5 + $0x98] sm:$0xff]  ;;  %v3542_v43 = vld [vmem:[#allocation5 + $0x200] sm:$0xff] }
 0x557   :  { %v3577_v39 = vld [vmem:[#allocation5 + $0x318] sm:$0xff] }
 0x559   :  { %3632 = vmatpush1.bf16.msra.mxu0 %v3553_v45  ;;  %3714 = vmatpush1.bf16.msra.mxu1 %v3555_v51  ;;  %v3547_v45 = vld [vmem:[#allocation5 + $0x228] sm:$0xff] }
 0x55a   :  { %3642 = vmatprep.subr.bf16.mxu0 %v3559_v55  ;;  %3724 = vmatprep.subr.bf16.mxu1 %v3561_v59  ;;  %v3507_v51 = vld [vmem:[#allocation5 + $0xe8] sm:$0xff]  ;;  %v3552_v55 = vld [vmem:[#allocation5 + $0x250] sm:$0xff] }
 0x55b   :  { %v3512_v59 = vld [vmem:[#allocation5 + $0x110] sm:$0xff] }
 0x55c   :  { %3634 = vmatmul.mubr.bf16.vlgmr.msra.gmra.mrb[8].mxu0 %v7399_v53  ;;  %3716 = vmatmul.mubr.bf16.vlgmr.msra.gmra.mrb[8].mxu1 %v7399_v53 }
 0x55d   :  { %3643 = vmatpush1.bf16.msra.mxu0 %v3558_v60  ;;  %3725 = vmatpush1.bf16.msra.mxu1 %v3560_v16  ;;  %v3557_v60 = vld [vmem:[#allocation5 + $0x278] sm:$0xff] }
 0x55e   :  { %3644 = vmatprep.subr.bf16.mxu0 %v3564_v61  ;;  %3726 = vmatprep.subr.bf16.mxu1 %v3566_v63  ;;  %v3517_v16 = vld [vmem:[#allocation5 + $0x138] sm:$0xff]  ;;  %v3581_v61 = vrot.slane %v7233_v17, %v7327_v15  ;;  %v3585_v63 = vrot.slane %v7238_v18, %v7327_v15 }
 0x55f   :  { %3674 = vmatprep.mubr.bf16.mxu0 %v7669_v44  ;;  %3756 = vmatprep.mubr.bf16.mxu1 %v7669_v44 }
 0x561   :  { %3645 = vmatpush1.bf16.msra.mxu0 %v3563_v62  ;;  %3727 = vmatpush1.bf16.msra.mxu1 %v3565_v24  ;;  %v3593_v62 = vrot.slane %v7249_v22, %v7327_v15 }
 0x562   :  { %3646 = vmatprep.subr.bf16.mxu0 %v3569_v20  ;;  %3728 = vmatprep.subr.bf16.mxu1 %v3571_v57 }
 0x565   :  { %3647 = vmatpush1.bf16.msra.mxu0 %v3568_v31  ;;  %3729 = vmatpush1.bf16.msra.mxu1 %v3570_v56 }
 0x566   :  { %3648 = vmatprep.subr.bf16.mxu0 %v3574_v29  ;;  %3730 = vmatprep.subr.bf16.mxu1 %v3576_v30 }
 0x569   :  { %3649 = vmatpush1.bf16.msra.mxu0 %v3573_v58  ;;  %3731 = vmatpush1.bf16.msra.mxu1 %v3575_v34 }
 0x56a   :  { %5268 = vmatprep.subr.bf16.mxu0 %v3522_v32  ;;  %5362 = vmatprep.subr.bf16.mxu1 %v7671_v19 }
 0x56c   :  { %5240 = vmatmul.mubr.msk.bf16.vlgmr.msra.gmra.mrb[8].mxu0 %vm3348_vm9, %v7396_v41  ;;  %5241 = vmatmul.mubr.msk.bf16.vlgmr.msra.gmra.mrb[8].mxu1 %vm3348_vm9, %v7396_v41 }
 0x56d   :  { %5269 = vmatpush3.bf16.msra.mxu0 %v3482_v36  ;;  %5363 = vmatpush3.bf16.msra.mxu1 %v3562_v35 }
 0x56e   :  { %5270 = vmatprep.subr.bf16.mxu0 %v3527_v37  ;;  %5364 = vmatprep.subr.bf16.mxu1 %v7671_v19 }
 0x56f   :  { %3797 = vmatprep.mubr.bf16.mxu0 %v7401_v52  ;;  %5370 = vmatprep.mubr.msk.bf16.mxu1 %vm5553_vm1, %v7671_v19  ;;  %v3502_v52 = vld [vmem:[#allocation5 + $0xc0] sm:$0xff] }
 0x571   :  { %5271 = vmatpush3.bf16.msra.mxu0 %v3487_v38  ;;  %5365 = vmatpush3.bf16.msra.mxu1 %v3567_v46 }
 0x572   :  { %5272 = vmatprep.subr.bf16.mxu0 %v3532_v42  ;;  %5366 = vmatprep.subr.bf16.mxu1 %v7671_v19 }
 0x575   :  { %5273 = vmatpush3.bf16.msra.mxu0 %v3492_v47  ;;  %5367 = vmatpush3.bf16.msra.mxu1 %v3572_v48 }
 0x576   :  { %5274 = vmatprep.subr.bf16.mxu0 %v3537_v50  ;;  %5368 = vmatprep.subr.bf16.mxu1 %v7671_v19 }
 0x579   :  { %5275 = vmatpush3.bf16.msra.mxu0 %v3497_v40  ;;  %5369 = vmatpush3.bf16.msra.mxu1 %v3577_v39 }
 0x57a   :  { %5276 = vmatprep.subr.bf16.mxu0 %v3542_v43 }
 0x57c   :  { %5371 = vmatmul.mubr.msk.bf16.vlgmr.msra.gmra.mrb[12].mxu1 %vm3348_vm9, %v7396_v41  ;;  %v3589_v41 = vrot.slane %v7244_v21, %v7327_v15 }
 0x57d   :  { %5277 = vmatpush3.bf16.msra.mxu0 %v3502_v52 }
 0x57e   :  { %5278 = vmatprep.subr.bf16.mxu0 %v3547_v45 }
 0x581   :  { %5279 = vmatpush3.bf16.msra.mxu0 %v3507_v51 }
 0x582   :  { %5280 = vmatprep.subr.bf16.mxu0 %v3552_v55 }
 0x585   :  { %5281 = vmatpush3.bf16.msra.mxu0 %v3512_v59 }
 0x586   :  { %5282 = vmatprep.subr.bf16.mxu0 %v3557_v60 }
 0x589   :  { %5283 = vmatpush3.bf16.msra.mxu0 %v3517_v16 }
 0x58c   :  { %3798 = vmatmul.mubr.bf16.vlgmr.msra.gmra.mrb[12].mxu0 %v7399_v53 }
 0x63f   :  { %v3676_v24 = vpop.f32.mrb[8].mxu0  ;;  %v3758_v20 = vpop.f32.mrb[8].mxu1 }
 0x640   :  { %v5408_v57 = vadd.f32 %v3676_v24, %v3581_v61  ;;  %v5410_v31 = vadd.f32 %v3758_v20, %v3589_v41  ;;  %v3678_v56 = vpop.f32.mrb[9].mxu0  ;;  %v3760_v29 = vpop.f32.mrb[9].mxu1 }
 0x641   :  { %v5409_v30 = vadd.f32 %v3678_v56, %v3585_v63  ;;  %v5411_v53 = vadd.f32 %v3760_v29, %v3593_v62  ;;  %v3680_v58 = vpop.f32.mrb[10].mxu0  ;;  %v3762_v34 = vpop.f32.mrb[10].mxu1 }
 0x642   :  { %v3845_v32 = vmin.f32 %v5408_v57, 0.0  ;;  %v3847_v36 = vmin.f32 %v5410_v31, 0.0  ;;  %v3681_v35 = vpop.f32.mrb[11].mxu0  ;;  %v3763_v37 = vpop.f32.mrb[11].mxu1  ;;  %vm3870_vm12 = vcmp.gt.f32.partialorder %v5408_v57, 0.0  ;;  %vm3872_vm13 = vcmp.gt.f32.partialorder %v5410_v31, 0.0 }
 0x643   :  { %v3846_v38 = vmin.f32 %v5409_v30, 0.0  ;;  %v3848_v46 = vmin.f32 %v5411_v53, 0.0  ;;  %vm3871_vm14 = vcmp.gt.f32.partialorder %v5409_v30, 0.0  ;;  %vm3873_vm15 = vcmp.gt.f32.partialorder %v5411_v53, 0.0 }
 0x644   :  { %v3850_v42 = vmul.f32 1.442695, %v3845_v32  ;;  %v3854_v47 = vmul.f32 1.442695, %v3847_v36 }
 0x645   :  { %v3852_v48 = vmul.f32 1.442695, %v3846_v38  ;;  %v3856_v50 = vmul.f32 1.442695, %v3848_v46 }
 0x646   :  { %5468 = vpow2.f32 %v3850_v42 }
 0x647   :  { %5470 = vpow2.f32 %v3854_v47 }
 0x648   :  { %5472 = vpow2.f32 %v3852_v48 }
 0x649   :  { %5474 = vpow2.f32 %v3856_v50 }
 0x64f   :  { %v7431_v40 = vpop.f32.mrb[12].mxu1 }
 0x650   :  { %v5469_v39 = vpop.eup %5468  ;;  %v5372_v43 = vpop.f32.mrb[13].mxu1 }
 0x651   :  { %v5471_v52 = vpop.eup %5470  ;;  %v5243_v45 = vadd.f32 -1.0, %v5469_v39  ;;  %v3842_v51 = vpop.f32.mrb[14].mxu1 }
 0x652   :  { %v5473_v55 = vpop.eup %5472  ;;  %v5245_v59 = vadd.f32 -1.0, %v5471_v52  ;;  %v5373_v60 = vpop.f32.mrb[15].mxu1 }
 0x653   :  { %v5475_v16 = vpop.eup %5474  ;;  %v3865_v61 = vmul.f32 1.6732632, %v5243_v45  ;;  %v5244_v41 = vadd.f32 -1.0, %v5473_v55 }
 0x654   :  { %v3867_v63 = vmul.f32 1.6732632, %v5245_v59  ;;  %v5246_v62 = vadd.f32 -1.0, %v5475_v16 }
 0x655   :  { %v3875_v24 = vsel %vm3870_vm12, %v5408_v57, %v3865_v61  ;;  %v3866_v20 = vmul.f32 1.6732632, %v5244_v41 }
 0x656   :  { %v7433_v56 = vmul.f32 1.050701, %v3875_v24  ;;  %v3877_v29 = vsel %vm3872_vm13, %v5410_v31, %v3867_v63  ;;  %v3868_v58 = vmul.f32 1.6732632, %v5246_v62 }
 0x657   :  { %v7435_v34 = vmul.f32 1.050701, %v3877_v29  ;;  %v3876_v32 = vsel %vm3871_vm14, %v5409_v30, %v3866_v20 }
 0x658   :  { %v3885_v36 = vrot.slane %v7433_v56, 4  ;;  %v3920_v35 = vmul.f32 %v7433_v56, %v7433_v56  ;;  %v7440_v37 = vmul.f32 1.050701, %v3876_v32  ;;  %v3878_v46 = vsel %vm3873_vm15, %v5411_v53, %v3868_v58 }
 0x659   :  { %v3897_v57 = vrot.slane %v7435_v34, 4  ;;  %v3922_v38 = vmul.f32 %v7435_v34, %v7435_v34  ;;  %v7450_v39 = vmul.f32 1.050701, %v3878_v46 }
 0x65a   :  { %v3886_v31 = vadd.f32 %v3885_v36, %v7433_v56  ;;  %v3925_v42 = vrot.slane %v3920_v35, 4  ;;  %v3891_v47 = vrot.slane %v7440_v37, 4  ;;  %v3921_v30 = vmul.f32 %v7440_v37, %v7440_v37 }
 0x65b   :  { %v3898_v48 = vadd.f32 %v3897_v57, %v7435_v34  ;;  %v3937_v50 = vrot.slane %v3922_v38, 4  ;;  %v3903_v60 = vrot.slane %v7450_v39, 4  ;;  %v3923_v16 = vmul.f32 %v7450_v39, %v7450_v39 }
 0x65c   :  { %v3887_v52 = vrot.slane %v3886_v31, 2  ;;  %v3926_v45 = vadd.f32 %v3925_v42, %v3920_v35  ;;  %v3892_v53 = vadd.f32 %v3891_v47, %v7440_v37  ;;  %v3931_v51 = vrot.slane %v3921_v30, 4 }
 0x65d   :  { %v3899_v55 = vrot.slane %v3898_v48, 2  ;;  %v3938_v59 = vadd.f32 %v3937_v50, %v3922_v38  ;;  %v3904_v29 = vadd.f32 %v3903_v60, %v7450_v39  ;;  %v3943_v58 = vrot.slane %v3923_v16, 4 }
 0x65e   :  { %v3888_v61 = vadd.f32 %v3887_v52, %v3886_v31  ;;  %v3927_v41 = vrot.slane %v3926_v45, 2  ;;  %v3893_v63 = vrot.slane %v3892_v53, 2  ;;  %v3932_v62 = vadd.f32 %v3931_v51, %v3921_v30 }
 0x65f   :  { %v3900_v24 = vadd.f32 %v3899_v55, %v3898_v48  ;;  %v3939_v20 = vrot.slane %v3938_v59, 2  ;;  %v5284_v32 = vpop.f32.mrb[12].mxu0  ;;  %v3905_v50 = vrot.slane %v3904_v29, 2  ;;  %v3944_v44 = vadd.f32 %v3943_v58, %v3923_v16 }
 0x660   :  { %v3889_v36 = vrot.slane %v3888_v61, 1  ;;  %v3928_v35 = vadd.f32 %v3927_v41, %v3926_v45  ;;  %v3894_v57 = vadd.f32 %v3893_v63, %v3892_v53  ;;  %v3933_v46 = vrot.slane %v3932_v62, 2  ;;  %v5285_v38 = vpop.f32.mrb[13].mxu0 }
 0x661   :  { %v3901_v42 = vrot.slane %v3900_v24, 1  ;;  %v3940_v47 = vadd.f32 %v3939_v20, %v3938_v59  ;;  %v5287_v19 = vpop.f32.mrb[14].mxu0  ;;  %v3906_v60 = vadd.f32 %v3905_v50, %v3904_v29  ;;  %v3945_v14 = vrot.slane %v3944_v44, 2 }
 0x662   :  { %v3890_v31 = vadd.f32 %v3889_v36, %v3888_v61  ;;  %v3929_v52 = vrot.slane %v3928_v35, 1  ;;  %v3895_v43 = vrot.slane %v3894_v57, 1  ;;  %v3934_v30 = vadd.f32 %v3933_v46, %v3932_v62  ;;  %v5288_v48 = vpop.f32.mrb[15].mxu0 }
 0x663   :  { %v3902_v51 = vadd.f32 %v3901_v42, %v3900_v24  ;;  %v3941_v55 = vrot.slane %v3940_v47, 1  ;;  %v3907_v11 = vrot.slane %v3906_v60, 1  ;;  %v3946_v59 = vadd.f32 %v3945_v14, %v3944_v44 }
 0x664   :  { %v3915_v13 = vmul.f32 0.125, %v3890_v31  ;;  %v3930_v12 = vadd.f32 %v3929_v52, %v3928_v35  ;;  %v3896_v45 = vadd.f32 %v3895_v43, %v3894_v57  ;;  %v3935_v53 = vrot.slane %v3934_v30, 1 }
 0x665   :  { %v3917_v41 = vmul.f32 0.125, %v3902_v51  ;;  %v3942_v63 = vadd.f32 %v3941_v55, %v3940_v47  ;;  %v3908_v62 = vadd.f32 %v3907_v11, %v3906_v60  ;;  %v3947_v46 = vrot.slane %v3946_v59, 1 }
 0x666   :  { %v3955_v20 = vmul.f32 0.125, %v3930_v12  ;;  %v3960_v16 = vmul.f32 %v3915_v13, %v3915_v13  ;;  %v3916_v19 = vmul.f32 0.125, %v3896_v45  ;;  %v3936_v61 = vadd.f32 %v3935_v53, %v3934_v30 }
 0x667   :  { %v3957_v58 = vmul.f32 0.125, %v3942_v63  ;;  %v3962_v36 = vmul.f32 %v3917_v41, %v3917_v41  ;;  %v3918_v31 = vmul.f32 0.125, %v3908_v62  ;;  %v3948_v35 = vadd.f32 %v3947_v46, %v3946_v59 }
 0x668   :  { %v3965_v24 = vsub.f32 %v3955_v20, %v3960_v16  ;;  %v3956_v42 = vmul.f32 0.125, %v3936_v61  ;;  %v3961_v29 = vmul.f32 %v3916_v19, %v3916_v19  ;;  %v5286_v43 = vadd.f32 %v5285_v38, %v5284_v32 }
 0x669   :  { %v3967_v50 = vsub.f32 %v3957_v58, %v3962_v36  ;;  %v3958_v48 = vmul.f32 0.125, %v3948_v35  ;;  %v3963_v14 = vmul.f32 %v3918_v31, %v3918_v31  ;;  %v7677_v12 = vrot.slane %v7254_v23, %v7327_v15 }
 0x66a   :  { %v3970_v57 = vadd.f32 1e-05, %v3965_v24  ;;  %v3966_v52 = vsub.f32 %v3956_v42, %v3961_v29 }
 0x66b   :  { %v3972_v47 = vadd.f32 1e-05, %v3967_v50  ;;  %v3800_v44 = vadd.f32 %v5286_v43, %v7677_v12  ;;  %v3968_v11 = vsub.f32 %v3958_v48, %v3963_v14 }
 0x66c   :  { %5476 = vrsqrt.f32 %v3970_v57  ;;  %v3971_v30 = vadd.f32 1e-05, %v3966_v52 }
 0x66d   :  { %5478 = vrsqrt.f32 %v3972_v47  ;;  %v3840_v51 = vadd.f32 %v7431_v40, %v3800_v44  ;;  %v3973_v55 = vadd.f32 1e-05, %v3968_v11 }
 0x66e   :  { %5480 = vrsqrt.f32 %v3971_v30  ;;  %v4012_v30 = vpack.c.bf16 %v7435_v34, %v7435_v34 }
 0x66f   :  { %v3849_v60 = vmin.f32 %v3840_v51, 0.0  ;;  %5482 = vrsqrt.f32 %v3973_v55  ;;  %vm3874_vm2 = vcmp.gt.f32.partialorder %v3840_v51, 0.0 }
 0x671   :  { %v3858_v32 = vmul.f32 1.442695, %v3849_v60 }
 0x673   :  { %5484 = vpow2.f32 %v3858_v32 }
 0x676   :  { %v5477_v38 = vpop.eup %5476 }
 0x677   :  { %v5479_v45 = vpop.eup %5478  ;;  %v3980_v53 = vmul.f32 %v5477_v38, %v7233_v17 }
 0x678   :  { %v5481_v63 = vpop.eup %5480  ;;  %v3982_v59 = vmul.f32 %v5479_v45, %v7244_v21 }
 0x679   :  { %v3985_v20 = vmul.f32 %v3980_v53, %v3915_v13  ;;  %v4015_v16 = vpack.c.bf16 %v3980_v53, %v3980_v53  ;;  %v3981_v61 = vmul.f32 %v5481_v63, %v7238_v18  ;;  %v5483_v40 = vpop.eup %5482 }
 0x67a   :  { %v3987_v58 = vmul.f32 %v3982_v59, %v3917_v41  ;;  %v4017_v36 = vpack.c.bf16 %v3982_v59, %v3982_v59  ;;  %v3983_v50 = vmul.f32 %v5483_v40, %v7249_v22  ;;  %v4010_v41 = vpack.c.bf16 %v7433_v56, %v7433_v56 }
 0x67b   :  { %v3995_v62 = vrot.slane %v3985_v20, 7  ;;  %v3986_v46 = vmul.f32 %v3981_v61, %v3916_v19  ;;  %v4016_v24 = vpack.c.bf16 %v3981_v61, %v3981_v61  ;;  %v4021_v42 = vpack.i.b16 %v4015_v16, %v4015_v16 }
 0x67c   :  { %v3997_v29 = vrot.slane %v3987_v58, 7  ;;  %v4035_v43 = vpack.i.b16 %v4017_v36, %v4017_v36  ;;  %v3988_v47 = vmul.f32 %v3983_v50, %v3918_v31  ;;  %v4018_v48 = vpack.c.bf16 %v3983_v50, %v3983_v50 }
 0x67d   :  { %v4005_v35 = vsub.f32 %v7233_v17, %v3995_v62  ;;  %v3996_v57 = vrot.slane %v3986_v46, 7  ;;  %v5485_v52 = vpop.eup %5484  ;;  %v4028_v12 = vpack.i.b16 %v4016_v24, %v4016_v24  ;;  %v4026_v44 = vrot.slane %v4021_v42, %v7292_v28 }
 0x67e   :  { %v4007_v13 = vsub.f32 %v7244_v21, %v3997_v29  ;;  %v3998_v55 = vrot.slane %v3988_v47, 7  ;;  %v4040_v32 = vrot.slane %v4035_v43, %v7292_v28  ;;  %v5247_v31 = vadd.f32 -1.0, %v5485_v52 }
 0x67f   :  { %v4060_v14 = vpack.c.bf16 %v4005_v35, %v4005_v35  ;;  %v4006_v19 = vsub.f32 %v7238_v18, %v3996_v57  ;;  %v4011_v56 = vpack.c.bf16 %v7440_v37, %v7440_v37  ;;  %v4042_v63 = vpack.i.b16 %v4018_v48, %v4018_v48 }
 0x680   :  { %v4062_v11 = vpack.c.bf16 %v4007_v13, %v4007_v13  ;;  %v4008_v53 = vsub.f32 %v7249_v22, %v3998_v55  ;;  %v4033_v20 = vrot.slane %v4028_v12, %v7292_v28  ;;  %v3869_v61 = vmul.f32 1.6732632, %v5247_v31 }
 0x681   :  { %v4066_v60 = vshrl.u32 %v4060_v14, 16  ;;  %v4061_v38 = vpack.c.bf16 %v4006_v19, %v4006_v19  ;;  %v4055_v34 = vmul.bf16 %v4026_v44, %v4010_v41  ;;  %v4057_v62 = vmul.bf16 %v4040_v32, %v4012_v30 }
 0x682   :  { %v4082_v45 = vshrl.u32 %v4062_v11, 16  ;;  %v4063_v36 = vpack.c.bf16 %v4008_v53, %v4008_v53  ;;  %v3879_v24 = vsel %vm3874_vm2, %v3840_v51, %v3869_v61  ;;  %v4047_v37 = vrot.slane %v4042_v63, %v7292_v28 }
 0x683   :  { %v4067_v59 = vpack.i.b16 %v4066_v60, %v4066_v60  ;;  %v4074_v16 = vshrl.u32 %v4061_v38, 16  ;;  %v3884_v29 = vmul.f32 1.050701, %v3879_v24  ;;  %v4056_v35 = vmul.bf16 %v4033_v20, %v4011_v56 }
 0x684   :  { %v4083_v58 = vpack.i.b16 %v4082_v45, %v4082_v45  ;;  %v4090_v22 = vshrl.u32 %v4063_v36, 16  ;;  %v4013_v57 = vpack.c.bf16 %v7450_v39, %v7450_v39 }
 0x685   :  { %v4072_v40 = vrot.slane %v4067_v59, %v7292_v28  ;;  %v4075_v46 = vpack.i.b16 %v4074_v16, %v4074_v16  ;;  %v3909_v47 = vrot.slane %v3884_v29, 4  ;;  %v3924_v48 = vmul.f32 %v3884_v29, %v3884_v29 }
 0x686   :  { %v4088_v42 = vrot.slane %v4083_v58, %v7292_v28  ;;  %v4091_v13 = vpack.i.b16 %v4090_v22, %v4090_v22  ;;  %v4058_v41 = vmul.bf16 %v4047_v37, %v4013_v57  ;;  %v4014_v37 = vpack.c.bf16 %v3884_v29, %v3884_v29 }
 0x687   :  { %v7483_v50 = vadd.bf16 %v4072_v40, %v4055_v34  ;;  %v4080_v43 = vrot.slane %v4075_v46, %v7292_v28  ;;  %v3910_v19 = vadd.f32 %v3909_v47, %v3884_v29  ;;  %v3949_v12 = vrot.slane %v3924_v48, 4 }
 0x688   :  { %v7488_v52 = vadd.bf16 %v4088_v42, %v4057_v62  ;;  %v4096_v14 = vrot.slane %v4091_v13, %v7292_v28 }
 0x689   :  { %v4106_v51 = vadd.bf16 %v4080_v43, %v4056_v35  ;;  %v3911_v30 = vrot.slane %v3910_v19, 2  ;;  %v3950_v11 = vadd.f32 %v3949_v12, %v3924_v48 }
 0x68a   :  { %v7491_v44 = vadd.bf16 %v4096_v14, %v4058_v41 }
 0x68b   :  { %v3912_v55 = vadd.f32 %v3911_v30, %v3910_v19  ;;  %v3951_v60 = vrot.slane %v3950_v11, 2 }
 0x68d   :  { %v3913_v32 = vrot.slane %v3912_v55, 1  ;;  %v3952_v38 = vadd.f32 %v3951_v60, %v3950_v11 }
 0x68f   :  { %v3914_v39 = vadd.f32 %v3913_v32, %v3912_v55  ;;  %v3953_v31 = vrot.slane %v3952_v38, 1 }
 0x691   :  { %v3919_v45 = vmul.f32 0.125, %v3914_v39  ;;  %v3954_v56 = vadd.f32 %v3953_v31, %v3952_v38 }
 0x693   :  { %v3959_v53 = vmul.f32 0.125, %v3954_v56  ;;  %v3964_v63 = vmul.f32 %v3919_v45, %v3919_v45 }
 0x695   :  { %v3969_v59 = vsub.f32 %v3959_v53, %v3964_v63 }
 0x697   :  { %v3974_v20 = vadd.f32 1e-05, %v3969_v59 }
 0x699   :  { %5486 = vrsqrt.f32 %v3974_v20 }
 0x6a3   :  { %v5487_v16 = vpop.eup %5486 }
 0x6a4   :  { %v3984_v61 = vmul.f32 %v5487_v16, %v7254_v23 }
 0x6a6   :  { %v3989_v34 = vmul.f32 %v3984_v61, %v3919_v45  ;;  %v4019_v58 = vpack.c.bf16 %v3984_v61, %v3984_v61 }
 0x6a8   :  { %v3999_v36 = vrot.slane %v3989_v34, 7  ;;  %v4049_v62 = vpack.i.b16 %v4019_v58, %v4019_v58 }
 0x6aa   :  { %v4009_v40 = vsub.f32 %v7254_v23, %v3999_v36  ;;  %v4054_v24 = vrot.slane %v4049_v62, %v7292_v28 }
 0x6ac   :  { %v4064_v46 = vpack.c.bf16 %v4009_v40, %v4009_v40  ;;  %v4059_v35 = vmul.bf16 %v4054_v24, %v4014_v37 }
 0x6ae   :  { %v4098_v42 = vshrl.u32 %v4064_v46, 16 }
 0x6b0   :  { %v4099_v22 = vpack.i.b16 %v4098_v42, %v4098_v42 }
 0x6b2   :  { %v4104_v43 = vrot.slane %v4099_v22, %v7292_v28 }
 0x6b4   :  { %v7497_v57 = vadd.bf16 %v4104_v43, %v4059_v35 }
 0x6b5   :  { %5542 = dma.done.wait [#allocation10 + $0x4], 15360 }
 0x6b6   :  { %5543 = vsyncadd [#allocation10 + $0x4], 4294951936  ;;  %4401 = vmatprep.mubr.bf16.mxu0 %v4106_v51  ;;  %4278 = vmatprep.mubr.bf16.mxu1 %v4106_v51  ;;  %v4115_v13 = vld [vmem:[#allocation6 + $0x8] sm:$0xff]  ;;  %v4140_v47 = vld [vmem:[#allocation6 + $0xd0] sm:$0xff] }
 0x6b7   :  { %v4114_v48 = vld [vmem:[#allocation6] sm:$0xff]  ;;  %4246 = vmatprep.subr.bf16.mxu1 %v4115_v13  ;;  %5295 = vmatprep.subr.bf16.mxu0 %v4140_v47  ;;  %v4116_v23 = vld [vmem:[#allocation6 + $0x10] sm:$0xff]  ;;  %v4143_v14 = vld [vmem:[#allocation6 + $0xe8] sm:$0xff] }
 0x6b8   :  { %v4118_v41 = vld [vmem:[#allocation6 + $0x20] sm:$0xff]  ;;  %4247 = vmatpush1.bf16.msra.mxu1 %v4114_v48  ;;  %5296 = vmatpush3.bf16.msra.mxu0 %v4116_v23  ;;  %v4117_v29 = vld [vmem:[#allocation6 + $0x18] sm:$0xff]  ;;  %v4119_v19 = vld [vmem:[#allocation6 + $0x28] sm:$0xff] }
 0x6b9   :  { %4248 = vmatprep.subr.bf16.mxu1 %v4118_v41  ;;  %5297 = vmatprep.subr.bf16.mxu0 %v4143_v14  ;;  %v4121_v12 = vld [vmem:[#allocation6 + $0x38] sm:$0xff]  ;;  %v4146_v30 = vld [vmem:[#allocation6 + $0x100] sm:$0xff]  ;;  %v4120_v51 = vld [vmem:[#allocation6 + $0x30] sm:$0xff] }
 0x6ba   :  { %v4122_v11 = vld [vmem:[#allocation6 + $0x40] sm:$0xff]  ;;  %v4124_v55 = vld [vmem:[#allocation6 + $0x50] sm:$0xff]  ;;  %v4149_v60 = vld [vmem:[#allocation6 + $0x118] sm:$0xff] }
 0x6bb   :  { %v4123_v32 = vld [vmem:[#allocation6 + $0x48] sm:$0xff]  ;;  %v4125_v38 = vld [vmem:[#allocation6 + $0x58] sm:$0xff]  ;;  %v4152_v31 = vld [vmem:[#allocation6 + $0x130] sm:$0xff] }
 0x6bc   :  { %4249 = vmatpush1.bf16.msra.mxu1 %v4117_v29  ;;  %5298 = vmatpush3.bf16.msra.mxu0 %v4119_v19  ;;  %v4127_v39 = vld [vmem:[#allocation6 + $0x68] sm:$0xff]  ;;  %v4126_v45 = vld [vmem:[#allocation6 + $0x60] sm:$0xff]  ;;  %v4128_v56 = vld [vmem:[#allocation6 + $0x70] sm:$0xff] }
 0x6bd   :  { %4250 = vmatprep.subr.bf16.mxu1 %v4121_v12  ;;  %5299 = vmatprep.subr.bf16.mxu0 %v4146_v30  ;;  %v4130_v53 = vld [vmem:[#allocation6 + $0x80] sm:$0xff]  ;;  %v4155_v63 = vld [vmem:[#allocation6 + $0x148] sm:$0xff]  ;;  %v4129_v59 = vld [vmem:[#allocation6 + $0x78] sm:$0xff] }
 0x6be   :  { %v4131_v20 = vld [vmem:[#allocation6 + $0x88] sm:$0xff]  ;;  %v4133_v16 = vld [vmem:[#allocation6 + $0x98] sm:$0xff]  ;;  %v4158_v61 = vld [vmem:[#allocation6 + $0x160] sm:$0xff] }
 0x6bf   :  { %v4132_v34 = vld [vmem:[#allocation6 + $0x90] sm:$0xff]  ;;  %v4134_v58 = vld [vmem:[#allocation6 + $0xa0] sm:$0xff]  ;;  %v4161_v40 = vld [vmem:[#allocation6 + $0x178] sm:$0xff] }
 0x6c0   :  { %4251 = vmatpush1.bf16.msra.mxu1 %v4120_v51  ;;  %5300 = vmatpush3.bf16.msra.mxu0 %v4122_v11  ;;  %v4136_v36 = vld [vmem:[#allocation6 + $0xb0] sm:$0xff]  ;;  %v4135_v62 = vld [vmem:[#allocation6 + $0xa8] sm:$0xff]  ;;  %v4137_v46 = vld [vmem:[#allocation6 + $0xb8] sm:$0xff] }
 0x6c1   :  { %4252 = vmatprep.subr.bf16.mxu1 %v4124_v55  ;;  %5301 = vmatprep.subr.bf16.mxu0 %v4149_v60  ;;  %v4139_v24 = vld [vmem:[#allocation6 + $0xc8] sm:$0xff]  ;;  %v4188_v42 = vld [vmem:[#allocation6 + $0x250] sm:$0xff]  ;;  %v4138_v37 = vld [vmem:[#allocation6 + $0xc0] sm:$0xff] }
 0x6c2   :  { %v4164_v22 = vld [vmem:[#allocation6 + $0x190] sm:$0xff]  ;;  %v4142_v35 = vld [vmem:[#allocation6 + $0xe0] sm:$0xff]  ;;  %v4191_v43 = vld [vmem:[#allocation6 + $0x268] sm:$0xff] }
 0x6c3   :  { %v4141_v13 = vld [vmem:[#allocation6 + $0xd8] sm:$0xff]  ;;  %v4167_v47 = vld [vmem:[#allocation6 + $0x1a8] sm:$0xff]  ;;  %v4194_v23 = vld [vmem:[#allocation6 + $0x280] sm:$0xff] }
 0x6c4   :  { %4253 = vmatpush1.bf16.msra.mxu1 %v4123_v32  ;;  %5302 = vmatpush3.bf16.msra.mxu0 %v4125_v38  ;;  %v4145_v48 = vld [vmem:[#allocation6 + $0xf8] sm:$0xff]  ;;  %v4144_v41 = vld [vmem:[#allocation6 + $0xf0] sm:$0xff]  ;;  %v4170_v14 = vld [vmem:[#allocation6 + $0x1c0] sm:$0xff] }
 0x6c5   :  { %4254 = vmatprep.subr.bf16.mxu1 %v4127_v39  ;;  %5303 = vmatprep.subr.bf16.mxu0 %v4152_v31  ;;  %v4148_v29 = vld [vmem:[#allocation6 + $0x110] sm:$0xff]  ;;  %v4197_v19 = vld [vmem:[#allocation6 + $0x298] sm:$0xff]  ;;  %v4147_v12 = vld [vmem:[#allocation6 + $0x108] sm:$0xff] }
 0x6c6   :  { %v4173_v30 = vld [vmem:[#allocation6 + $0x1d8] sm:$0xff]  ;;  %v4151_v51 = vld [vmem:[#allocation6 + $0x128] sm:$0xff]  ;;  %v4200_v11 = vld [vmem:[#allocation6 + $0x2b0] sm:$0xff] }
 0x6c7   :  { %v4150_v55 = vld [vmem:[#allocation6 + $0x120] sm:$0xff]  ;;  %v4176_v60 = vld [vmem:[#allocation6 + $0x1f0] sm:$0xff]  ;;  %v4203_v38 = vld [vmem:[#allocation6 + $0x2c8] sm:$0xff] }
 0x6c8   :  { %4255 = vmatpush1.bf16.msra.mxu1 %v4126_v45  ;;  %5304 = vmatpush3.bf16.msra.mxu0 %v4128_v56  ;;  %v4154_v32 = vld [vmem:[#allocation6 + $0x140] sm:$0xff]  ;;  %v4153_v39 = vld [vmem:[#allocation6 + $0x138] sm:$0xff]  ;;  %v4179_v31 = vld [vmem:[#allocation6 + $0x208] sm:$0xff] }
 0x6c9   :  { %4256 = vmatprep.subr.bf16.mxu1 %v4130_v53  ;;  %5305 = vmatprep.subr.bf16.mxu0 %v4155_v63  ;;  %v4157_v45 = vld [vmem:[#allocation6 + $0x158] sm:$0xff]  ;;  %v4206_v56 = vld [vmem:[#allocation6 + $0x2e0] sm:$0xff]  ;;  %v4156_v53 = vld [vmem:[#allocation6 + $0x150] sm:$0xff] }
 0x6ca   :  { %v4182_v63 = vld [vmem:[#allocation6 + $0x220] sm:$0xff] }
 0x6cc   :  { %4257 = vmatpush1.bf16.msra.mxu1 %v4129_v59  ;;  %5306 = vmatpush3.bf16.msra.mxu0 %v4131_v20  ;;  %v4160_v59 = vld [vmem:[#allocation6 + $0x170] sm:$0xff]  ;;  %v4209_v20 = vld [vmem:[#allocation6 + $0x2f8] sm:$0xff] }
 0x6cd   :  { %4258 = vmatprep.subr.bf16.mxu1 %v4133_v16  ;;  %5307 = vmatprep.subr.bf16.mxu0 %v4158_v61  ;;  %v4159_v16 = vld [vmem:[#allocation6 + $0x168] sm:$0xff]  ;;  %v4185_v61 = vld [vmem:[#allocation6 + $0x238] sm:$0xff] }
 0x6d0   :  { %4259 = vmatpush1.bf16.msra.mxu1 %v4132_v34  ;;  %5308 = vmatpush3.bf16.msra.mxu0 %v4134_v58  ;;  %v4163_v34 = vld [vmem:[#allocation6 + $0x188] sm:$0xff]  ;;  %v7678_v58 = vmov 0.0  }
 0x6d1   :  { %4260 = vmatprep.subr.bf16.mxu1 %v4136_v36  ;;  %5309 = vmatprep.subr.bf16.mxu0 %v4161_v40  ;;  %v4162_v36 = vld [vmem:[#allocation6 + $0x180] sm:$0xff]  ;;  %v4212_v40 = vld [vmem:[#allocation6 + $0x310] sm:$0xff] }
 0x6d4   :  { %4261 = vmatpush1.bf16.msra.mxu1 %v4135_v62  ;;  %5310 = vmatpush3.bf16.msra.mxu0 %v4137_v46  ;;  %v4166_v62 = vld [vmem:[#allocation6 + $0x1a0] sm:$0xff]  ;;  %v4165_v46 = vld [vmem:[#allocation6 + $0x198] sm:$0xff] }
 0x6d5   :  { %4262 = vmatprep.subr.bf16.mxu1 %v4139_v24  ;;  %5317 = vmatprep.subr.bf16.mxu0 %v4188_v42  ;;  %v4215_v24 = vld [vmem:[#allocation6 + $0x328] sm:$0xff]  ;;  %v4169_v42 = vld [vmem:[#allocation6 + $0x1b8] sm:$0xff] }
 0x6d7   :  { %4402 = vmatmul.mubr.bf16.vlgmr.msra.gmra.mrb[16].mxu0 %v7483_v50 }
 0x6d8   :  { %4263 = vmatpush1.bf16.msra.mxu1 %v4138_v37  ;;  %5318 = vmatpush3.bf16.msra.mxu0 %v4164_v22  ;;  %v4218_v37 = vld [vmem:[#allocation6 + $0x340] sm:$0xff]  ;;  %v4172_v22 = vld [vmem:[#allocation6 + $0x1d0] sm:$0xff] }
 0x6d9   :  { %4264 = vmatprep.subr.bf16.mxu1 %v4142_v35  ;;  %5319 = vmatprep.subr.bf16.mxu0 %v4191_v43  ;;  %v4171_v35 = vld [vmem:[#allocation6 + $0x1c8] sm:$0xff]  ;;  %v4221_v43 = vld [vmem:[#allocation6 + $0x358] sm:$0xff] }
 0x6da   :  { %4441 = vmatprep.mubr.bf16.mxu0 %v7491_v44 }
 0x6dc   :  { %4265 = vmatpush1.bf16.msra.mxu1 %v4141_v13  ;;  %5320 = vmatpush3.bf16.msra.mxu0 %v4167_v47  ;;  %v4175_v13 = vld [vmem:[#allocation6 + $0x1e8] sm:$0xff]  ;;  %v4224_v47 = vld [vmem:[#allocation6 + $0x370] sm:$0xff] }
 0x6dd   :  { %4266 = vmatprep.subr.bf16.mxu1 %v4145_v48  ;;  %5321 = vmatprep.subr.bf16.mxu0 %v4194_v23  ;;  %v4178_v48 = vld [vmem:[#allocation6 + $0x200] sm:$0xff]  ;;  %v4177_v23 = vld [vmem:[#allocation6 + $0x1f8] sm:$0xff] }
 0x6e0   :  { %4267 = vmatpush1.bf16.msra.mxu1 %v4144_v41  ;;  %5322 = vmatpush3.bf16.msra.mxu0 %v4170_v14  ;;  %v4227_v41 = vld [vmem:[#allocation6 + $0x388] sm:$0xff]  ;;  %v4181_v14 = vld [vmem:[#allocation6 + $0x218] sm:$0xff] }
 0x6e1   :  { %4268 = vmatprep.subr.bf16.mxu1 %v4148_v29  ;;  %5323 = vmatprep.subr.bf16.mxu0 %v4197_v19  ;;  %v4180_v29 = vld [vmem:[#allocation6 + $0x210] sm:$0xff]  ;;  %v4230_v19 = vld [vmem:[#allocation6 + $0x3a0] sm:$0xff] }
 0x6e4   :  { %4269 = vmatpush1.bf16.msra.mxu1 %v4147_v12  ;;  %5324 = vmatpush3.bf16.msra.mxu0 %v4173_v30  ;;  %v4184_v12 = vld [vmem:[#allocation6 + $0x230] sm:$0xff]  ;;  %v4183_v30 = vld [vmem:[#allocation6 + $0x228] sm:$0xff] }
 0x6e5   :  { %4270 = vmatprep.subr.bf16.mxu1 %v4151_v51  ;;  %5325 = vmatprep.subr.bf16.mxu0 %v4200_v11  ;;  %v4233_v51 = vld [vmem:[#allocation6 + $0x3b8] sm:$0xff]  ;;  %v4187_v11 = vld [vmem:[#allocation6 + $0x248] sm:$0xff] }
 0x6e8   :  { %4271 = vmatpush1.bf16.msra.mxu1 %v4150_v55  ;;  %5326 = vmatpush3.bf16.msra.mxu0 %v4176_v60  ;;  %v4186_v55 = vld [vmem:[#allocation6 + $0x240] sm:$0xff] }
 0x6e9   :  { %4272 = vmatprep.subr.bf16.mxu1 %v4154_v32  ;;  %5327 = vmatprep.subr.bf16.mxu0 %v4203_v38  ;;  %v4190_v60 = vld [vmem:[#allocation6 + $0x260] sm:$0xff]  ;;  %v4189_v32 = vld [vmem:[#allocation6 + $0x258] sm:$0xff] }
 0x6ea   :  { %v4193_v38 = vld [vmem:[#allocation6 + $0x278] sm:$0xff] }
 0x6ec   :  { %4273 = vmatpush1.bf16.msra.mxu1 %v4153_v39  ;;  %5328 = vmatpush3.bf16.msra.mxu0 %v4179_v31  ;;  %v4192_v39 = vld [vmem:[#allocation6 + $0x270] sm:$0xff] }
 0x6ed   :  { %4274 = vmatprep.subr.bf16.mxu1 %v4157_v45  ;;  %5329 = vmatprep.subr.bf16.mxu0 %v4206_v56  ;;  %v4196_v31 = vld [vmem:[#allocation6 + $0x290] sm:$0xff]  ;;  %v4195_v45 = vld [vmem:[#allocation6 + $0x288] sm:$0xff] }
 0x6ee   :  { %v4199_v56 = vld [vmem:[#allocation6 + $0x2a8] sm:$0xff] }
 0x6f0   :  { %4275 = vmatpush1.bf16.msra.mxu1 %v4156_v53  ;;  %5330 = vmatpush3.bf16.msra.mxu0 %v4182_v63  ;;  %v4198_v53 = vld [vmem:[#allocation6 + $0x2a0] sm:$0xff] }
 0x6f1   :  { %4276 = vmatprep.subr.bf16.mxu1 %v4160_v59  ;;  %5331 = vmatprep.subr.bf16.mxu0 %v4209_v20  ;;  %v4202_v63 = vld [vmem:[#allocation6 + $0x2c0] sm:$0xff]  ;;  %v4201_v59 = vld [vmem:[#allocation6 + $0x2b8] sm:$0xff] }
 0x6f2   :  { %v4205_v20 = vld [vmem:[#allocation6 + $0x2d8] sm:$0xff] }
 0x6f4   :  { %4277 = vmatpush1.bf16.msra.mxu1 %v4159_v16  ;;  %5332 = vmatpush3.bf16.msra.mxu0 %v4185_v61  ;;  %v4204_v16 = vld [vmem:[#allocation6 + $0x2d0] sm:$0xff] }
 0x6f5   :  { %4287 = vmatprep.subr.bf16.mxu1 %v4163_v34  ;;  %5374 = vmatprep.subr.bf16.mxu0 %v7678_v58  ;;  %v4208_v61 = vld [vmem:[#allocation6 + $0x2f0] sm:$0xff]  ;;  %v4207_v34 = vld [vmem:[#allocation6 + $0x2e8] sm:$0xff] }
 0x6f7   :  { %4279 = vmatmul.mubr.bf16.vlgmr.msra.gmra.mrb[16].mxu1 %v7483_v50  ;;  %4442 = vmatmul.mubr.bf16.vlgmr.msra.gmra.mrb[20].mxu0 %v7488_v52  ;;  %v4168_v50 = vld [vmem:[#allocation6 + $0x1b0] sm:$0xff] }
 0x6f8   :  { %4288 = vmatpush1.bf16.msra.mxu1 %v4162_v36  ;;  %5375 = vmatpush3.bf16.msra.mxu0 %v4212_v40  ;;  %v4211_v36 = vld [vmem:[#allocation6 + $0x308] sm:$0xff]  ;;  %v4210_v40 = vld [vmem:[#allocation6 + $0x300] sm:$0xff] }
 0x6f9   :  { %4289 = vmatprep.subr.bf16.mxu1 %v4166_v62  ;;  %5376 = vmatprep.subr.bf16.mxu0 %v7678_v58  ;;  %v4214_v62 = vld [vmem:[#allocation6 + $0x320] sm:$0xff] }
 0x6fa   :  { %5390 = vmatprep.mubr.msk.bf16.mxu0 %vm5553_vm1, %v7678_v58  ;;  %4319 = vmatprep.mubr.bf16.mxu1 %v7491_v44  ;;  %v4174_v44 = vld [vmem:[#allocation6 + $0x1e0] sm:$0xff] }
 0x6fc   :  { %4290 = vmatpush1.bf16.msra.mxu1 %v4165_v46  ;;  %5377 = vmatpush3.bf16.msra.mxu0 %v4215_v24  ;;  %v7679_v46 = vmov 0   ;;  %v4213_v24 = vld [vmem:[#allocation6 + $0x318] sm:$0xff] }
 0x6fd   :  { %4291 = vmatprep.subr.bf16.mxu1 %v4169_v42  ;;  %5378 = vmatprep.subr.bf16.mxu0 %v7678_v58  ;;  %v4217_v42 = vld [vmem:[#allocation6 + $0x338] sm:$0xff] }
 0x700   :  { %4292 = vmatpush1.bf16.msra.mxu1 %v4168_v50  ;;  %5379 = vmatpush3.bf16.msra.mxu0 %v4218_v37  ;;  %v4216_v50 = vld [vmem:[#allocation6 + $0x330] sm:$0xff] }
 0x701   :  { %4293 = vmatprep.subr.bf16.mxu1 %v4172_v22  ;;  %5380 = vmatprep.subr.bf16.mxu0 %v7678_v58  ;;  %v4220_v37 = vld [vmem:[#allocation6 + $0x350] sm:$0xff]  ;;  %v4219_v22 = vld [vmem:[#allocation6 + $0x348] sm:$0xff] }
 0x704   :  { %4294 = vmatpush1.bf16.msra.mxu1 %v4171_v35  ;;  %5381 = vmatpush3.bf16.msra.mxu0 %v4221_v43  ;;  %v4223_v35 = vld [vmem:[#allocation6 + $0x368] sm:$0xff]  ;;  %v4222_v43 = vld [vmem:[#allocation6 + $0x360] sm:$0xff] }
 0x705   :  { %4295 = vmatprep.subr.bf16.mxu1 %v4175_v13  ;;  %5382 = vmatprep.subr.bf16.mxu0 %v7678_v58  ;;  %v4226_v13 = vld [vmem:[#allocation6 + $0x380] sm:$0xff] }
 0x708   :  { %4296 = vmatpush1.bf16.msra.mxu1 %v4174_v44  ;;  %5383 = vmatpush3.bf16.msra.mxu0 %v4224_v47  ;;  %v4229_v44 = vld [vmem:[#allocation6 + $0x398] sm:$0xff]  ;;  %v4228_v47 = vld [vmem:[#allocation6 + $0x390] sm:$0xff] }
 0x709   :  { %4297 = vmatprep.subr.bf16.mxu1 %v4178_v48  ;;  %5384 = vmatprep.subr.bf16.mxu0 %v7678_v58  ;;  %v4232_v48 = vld [vmem:[#allocation6 + $0x3b0] sm:$0xff] }
 0x70c   :  { %4298 = vmatpush1.bf16.msra.mxu1 %v4177_v23  ;;  %5385 = vmatpush3.bf16.msra.mxu0 %v4227_v41  ;;  %v4231_v23 = vld [vmem:[#allocation6 + $0x3a8] sm:$0xff] }
 0x70d   :  { %4299 = vmatprep.subr.bf16.mxu1 %v4181_v14  ;;  %5386 = vmatprep.subr.bf16.mxu0 %v7678_v58 }
 0x710   :  { %4300 = vmatpush1.bf16.msra.mxu1 %v4180_v29  ;;  %5387 = vmatpush3.bf16.msra.mxu0 %v4230_v19 }
 0x711   :  { %4301 = vmatprep.subr.bf16.mxu1 %v4184_v12  ;;  %5388 = vmatprep.subr.bf16.mxu0 %v7678_v58 }
 0x714   :  { %4302 = vmatpush1.bf16.msra.mxu1 %v4183_v30  ;;  %5389 = vmatpush3.bf16.msra.mxu0 %v4233_v51  ;;  %v4236_v30 = vsub.s32 6, %v7278_v49 }
 0x715   :  { %4303 = vmatprep.subr.bf16.mxu1 %v4187_v11 }
 0x716   :  { %v4245_v51 = vrot.slane %v7244_v21, %v4236_v30 }
 0x717   :  { %5391 = vmatmul.mubr.bf16.vlgmr.msra.gmra.mrb[24].mxu0 %v7497_v57 }
 0x718   :  { %4304 = vmatpush1.bf16.msra.mxu1 %v4186_v55 }
 0x719   :  { %4305 = vmatprep.subr.bf16.mxu1 %v4190_v60 }
 0x71c   :  { %4306 = vmatpush1.bf16.msra.mxu1 %v4189_v32 }
 0x71d   :  { %4307 = vmatprep.subr.bf16.mxu1 %v4193_v38 }
 0x720   :  { %4308 = vmatpush1.bf16.msra.mxu1 %v4192_v39 }
 0x721   :  { %4309 = vmatprep.subr.bf16.mxu1 %v4196_v31 }
 0x724   :  { %4310 = vmatpush1.bf16.msra.mxu1 %v4195_v45 }
 0x725   :  { %4311 = vmatprep.subr.bf16.mxu1 %v4199_v56 }
 0x728   :  { %4312 = vmatpush1.bf16.msra.mxu1 %v4198_v53 }
 0x729   :  { %4313 = vmatprep.subr.bf16.mxu1 %v4202_v63 }
 0x72c   :  { %4314 = vmatpush1.bf16.msra.mxu1 %v4201_v59 }
 0x72d   :  { %4315 = vmatprep.subr.bf16.mxu1 %v4205_v20 }
 0x730   :  { %4316 = vmatpush1.bf16.msra.mxu1 %v4204_v16 }
 0x731   :  { %4317 = vmatprep.subr.bf16.mxu1 %v4208_v61 }
 0x734   :  { %4318 = vmatpush1.bf16.msra.mxu1 %v4207_v34 }
 0x735   :  { %4328 = vmatprep.subr.bf16.mxu1 %v4211_v36 }
 0x737   :  { %4320 = vmatmul.mubr.bf16.vlgmr.msra.gmra.mrb[16].mxu1 %v7488_v52  ;;  %v4225_v52 = vld [vmem:[#allocation6 + $0x378] sm:$0xff] }
 0x738   :  { %4329 = vmatpush1.bf16.msra.mxu1 %v4210_v40  ;;  %4360 = vmatprep.mubr.bf16.mxu1 %v7679_v46 }
 0x739   :  { %4330 = vmatprep.subr.bf16.mxu1 %v4214_v62 }
 0x73c   :  { %4331 = vmatpush1.bf16.msra.mxu1 %v4213_v24 }
 0x73d   :  { %4332 = vmatprep.subr.bf16.mxu1 %v4217_v42 }
 0x740   :  { %4333 = vmatpush1.bf16.msra.mxu1 %v4216_v50 }
 0x741   :  { %4334 = vmatprep.subr.bf16.mxu1 %v4220_v37 }
 0x744   :  { %4335 = vmatpush1.bf16.msra.mxu1 %v4219_v22 }
 0x745   :  { %4336 = vmatprep.subr.bf16.mxu1 %v4223_v35 }
 0x748   :  { %4337 = vmatpush1.bf16.msra.mxu1 %v4222_v43 }
 0x749   :  { %4338 = vmatprep.subr.bf16.mxu1 %v4226_v13 }
 0x74c   :  { %4339 = vmatpush1.bf16.msra.mxu1 %v4225_v52 }
 0x74d   :  { %4340 = vmatprep.subr.bf16.mxu1 %v4229_v44 }
 0x750   :  { %4341 = vmatpush1.bf16.msra.mxu1 %v4228_v47 }
 0x751   :  { %4342 = vmatprep.subr.bf16.mxu1 %v4232_v48 }
 0x754   :  { %4343 = vmatpush1.bf16.msra.mxu1 %v4231_v23 }
 0x757   :  { %4361 = vmatmul.mubr.bf16.vlgmr.msra.gmra.mrb[16].mxu1 %v7497_v57 }
 0x7aa   :  { %v5311_v41 = vpop.f32.mrb[16].mxu0 }
 0x7ab   :  { %v5312_v14 = vpop.f32.mrb[17].mxu0 }
 0x7ac   :  { %v5313_v29 = vadd.f32 %v5312_v14, %v5311_v41  ;;  %v5314_v19 = vpop.f32.mrb[18].mxu0 }
 0x7ad   :  { %v5315_v12 = vpop.f32.mrb[19].mxu0 }
 0x7ae   :  { %v4404_v11 = vadd.f32 %v5313_v29, %v4245_v51 }
 0x7ca   :  { %v5333_v55 = vpop.f32.mrb[20].mxu0 }
 0x7cb   :  { %v5334_v60 = vpop.f32.mrb[21].mxu0 }
 0x7cc   :  { %v5335_v32 = vadd.f32 %v5334_v60, %v5333_v55  ;;  %v5336_v38 = vpop.f32.mrb[22].mxu0 }
 0x7cd   :  { %v5337_v39 = vpop.f32.mrb[23].mxu0 }
 0x7ce   :  { %v4444_v31 = vadd.f32 %v5335_v32, %v4404_v11 }
 0x7ea   :  { %v4483_v45 = vpop.f32.mrb[24].mxu0 }
 0x7eb   :  { %v4484_v56 = vadd.f32 %v4483_v45, %v4444_v31  ;;  %v5392_v53 = vpop.f32.mrb[25].mxu0  ;;  %v4237_v31 = vrot.slane %v7233_v17, %v4236_v30  ;;  %v4241_v45 = vrot.slane %v7238_v18, %v4236_v30 }
 0x7ec   :  { %v4486_v57 = vpop.f32.mrb[26].mxu0 }
 0x7ed   :  { %v4491_v63 = vmin.f32 %v4484_v56, 0.0  ;;  %v5393_v59 = vpop.f32.mrb[27].mxu0  ;;  %vm4506_vm3 = vcmp.gt.f32.partialorder %v4484_v56, 0.0 }
 0x7ef   :  { %v4496_v20 = vmul.f32 1.442695, %v4491_v63 }
 0x7f1   :  { %5488 = vpow2.f32 %v4496_v20 }
 0x7fb   :  { %v5489_v16 = vpop.eup %5488 }
 0x7fc   :  { %v5250_v61 = vadd.f32 -1.0, %v5489_v16 }
 0x7fe   :  { %v4503_v34 = vmul.f32 1.6732632, %v5250_v61 }
 0x800   :  { %v4509_v36 = vsel %vm4506_vm3, %v4484_v56, %v4503_v34 }
 0x801   :  { %v4512_v40 = vmul.f32 1.050701, %v4509_v36 }
 0x803   :  { %v4525_v62 = vsel %vm3348_vm9, %v4512_v40, 0.0  ;;  %v4537_v24 = vmul.f32 %v4512_v40, %v4512_v40 }
 0x804   :  { %v4526_v42 = vrot.slane %v4525_v62, 4 }
 0x805   :  { %v4550_v50 = vsel %vm3348_vm9, %v4537_v24, 0.0 }
 0x806   :  { %v4527_v37 = vadd.f32 %v4526_v42, %v4525_v62  ;;  %v4551_v22 = vrot.slane %v4550_v50, 4 }
 0x808   :  { %v4528_v35 = vrot.slane %v4527_v37, 2  ;;  %v4552_v43 = vadd.f32 %v4551_v22, %v4550_v50 }
 0x80a   :  { %v4529_v13 = vadd.f32 %v4528_v35, %v4527_v37  ;;  %v4553_v52 = vrot.slane %v4552_v43, 2 }
 0x80c   :  { %v4530_v44 = vrot.slane %v4529_v13, 1  ;;  %v4554_v47 = vadd.f32 %v4553_v52, %v4552_v43 }
 0x80e   :  { %v4531_v48 = vadd.f32 %v4530_v44, %v4529_v13  ;;  %v4555_v23 = vrot.slane %v4554_v47, 1 }
 0x810   :  { %v4534_v41 = vmul.f32 0.125, %v4531_v48  ;;  %v4556_v14 = vadd.f32 %v4555_v23, %v4554_v47 }
 0x812   :  { %v4559_v29 = vmul.f32 0.125, %v4556_v14  ;;  %v4562_v19 = vmul.f32 %v4534_v41, %v4534_v41 }
 0x814   :  { %v4565_v12 = vsub.f32 %v4559_v29, %v4562_v19 }
 0x816   :  { %v4568_v51 = vadd.f32 1e-05, %v4565_v12 }
 0x818   :  { %5490 = vrsqrt.f32 %v4568_v51 }
 0x822   :  { %v5491_v11 = vpop.eup %5490 }
 0x823   :  { %v4574_v55 = vmul.f32 %v5491_v11, %v7244_v21  ;;  %v4592_v21 = vpack.c.bf16 %v4512_v40, %v4512_v40 }
 0x825   :  { %v4577_v60 = vmul.f32 %v4574_v55, %v4534_v41  ;;  %v4595_v32 = vpack.c.bf16 %v4574_v55, %v4574_v55 }
 0x827   :  { %v4583_v38 = vrot.slane %v4577_v60, 7  ;;  %v4613_v39 = vshrl.u32 %v4595_v32, 16 }
 0x829   :  { %v4589_v56 = vsub.f32 %v7269_v27, %v4583_v38  ;;  %v4614_v53 = vpack.i.b16 %v4613_v39, %v4613_v39 }
 0x82a   :  { %v4362_v57 = vpop.f32.mrb[16].mxu1 }
 0x82b   :  { %v4619_v63 = vrot.slane %v4614_v53, %v7327_v15  ;;  %v4625_v59 = vpack.c.bf16 %v4589_v56, %v4589_v56  ;;  %v5412_v20 = vadd.f32 %v4362_v57, %v4237_v31  ;;  %v4364_v16 = vpop.f32.mrb[17].mxu1 }
 0x82c   :  { %v5413_v61 = vadd.f32 %v4364_v16, %v4241_v45  ;;  %v4366_v34 = vpop.f32.mrb[18].mxu1 }
 0x82d   :  { %v4641_v36 = vpack.i.b16 %v4625_v59, %v4625_v59  ;;  %v4489_v62 = vmin.f32 %v5412_v20, 0.0  ;;  %v4367_v24 = vpop.f32.mrb[19].mxu1  ;;  %v7527_v50 = vmul.bf16 %v4619_v63, %v4592_v21  ;;  %vm4504_vm5 = vcmp.gt.f32.partialorder %v5412_v20, 0.0 }
 0x82e   :  { %v4490_v42 = vmin.f32 %v5413_v61, 0.0  ;;  %vm4505_vm6 = vcmp.gt.f32.partialorder %v5413_v61, 0.0 }
 0x82f   :  { %v7530_v30 = vrot.slane %v4641_v36, %v7281_v54  ;;  %v4492_v27 = vmul.f32 1.442695, %v4489_v62 }
 0x830   :  { %v4494_v37 = vmul.f32 1.442695, %v4490_v42 }
 0x831   :  { %v4649_v22 = vadd.bf16 %v7530_v30, %v7527_v50  ;;  %5492 = vpow2.f32 %v4492_v27 }
 0x832   :  { %5494 = vpow2.f32 %v4494_v37 }
 0x83b   :  { %v5493_v35 = vpop.eup %5492 }
 0x83c   :  { %v5495_v43 = vpop.eup %5494  ;;  %v5248_v13 = vadd.f32 -1.0, %v5493_v35 }
 0x83d   :  { %v5249_v40 = vadd.f32 -1.0, %v5495_v43 }
 0x83e   :  { %v4501_v52 = vmul.f32 1.6732632, %v5248_v13 }
 0x83f   :  { %v4502_v44 = vmul.f32 1.6732632, %v5249_v40 }
 0x840   :  { %v4507_v47 = vsel %vm4504_vm5, %v5412_v20, %v4501_v52 }
 0x841   :  { %v7534_v48 = vmul.f32 1.050701, %v4507_v47  ;;  %v4508_v23 = vsel %vm4505_vm6, %v5413_v61, %v4502_v44 }
 0x842   :  { %v7536_v41 = vmul.f32 1.050701, %v4508_v23 }
 0x843   :  { %v4513_v14 = vrot.slane %v7534_v48, 4  ;;  %v4535_v29 = vmul.f32 %v7534_v48, %v7534_v48 }
 0x844   :  { %v4519_v19 = vrot.slane %v7536_v41, 4  ;;  %v4536_v12 = vmul.f32 %v7536_v41, %v7536_v41 }
 0x845   :  { %v4514_v51 = vadd.f32 %v4513_v14, %v7534_v48  ;;  %v4538_v11 = vrot.slane %v4535_v29, 4 }
 0x846   :  { %v4520_v55 = vadd.f32 %v4519_v19, %v7536_v41  ;;  %v4544_v60 = vrot.slane %v4536_v12, 4 }
 0x847   :  { %v4515_v32 = vrot.slane %v4514_v51, 2  ;;  %v4539_v38 = vadd.f32 %v4538_v11, %v4535_v29 }
 0x848   :  { %v4521_v39 = vrot.slane %v4520_v55, 2  ;;  %v4545_v31 = vadd.f32 %v4544_v60, %v4536_v12 }
 0x849   :  { %v4516_v45 = vadd.f32 %v4515_v32, %v4514_v51  ;;  %v4540_v56 = vrot.slane %v4539_v38, 2 }
 0x84a   :  { %v4522_v53 = vadd.f32 %v4521_v39, %v4520_v55  ;;  %v4546_v57 = vrot.slane %v4545_v31, 2 }
 0x84b   :  { %v4517_v63 = vrot.slane %v4516_v45, 1  ;;  %v4541_v59 = vadd.f32 %v4540_v56, %v4539_v38 }
 0x84c   :  { %v4523_v20 = vrot.slane %v4522_v53, 1  ;;  %v4547_v16 = vadd.f32 %v4546_v57, %v4545_v31 }
 0x84d   :  { %v4518_v61 = vadd.f32 %v4517_v63, %v4516_v45  ;;  %v4542_v34 = vrot.slane %v4541_v59, 1 }
 0x84e   :  { %v4524_v21 = vadd.f32 %v4523_v20, %v4522_v53  ;;  %v4548_v36 = vrot.slane %v4547_v16, 1 }
 0x84f   :  { %v4532_v62 = vmul.f32 0.125, %v4518_v61  ;;  %v4543_v24 = vadd.f32 %v4542_v34, %v4541_v59  ;;  %v4590_v59 = vpack.c.bf16 %v7534_v48, %v7534_v48 }
 0x850   :  { %v4533_v42 = vmul.f32 0.125, %v4524_v21  ;;  %v4549_v27 = vadd.f32 %v4548_v36, %v4547_v16  ;;  %v4591_v16 = vpack.c.bf16 %v7536_v41, %v7536_v41 }
 0x851   :  { %v4557_v37 = vmul.f32 0.125, %v4543_v24  ;;  %v4560_v35 = vmul.f32 %v4532_v62, %v4532_v62 }
 0x852   :  { %v4558_v43 = vmul.f32 0.125, %v4549_v27  ;;  %v4561_v13 = vmul.f32 %v4533_v42, %v4533_v42 }
 0x853   :  { %v4563_v40 = vsub.f32 %v4557_v37, %v4560_v35 }
 0x854   :  { %v4564_v52 = vsub.f32 %v4558_v43, %v4561_v13 }
 0x855   :  { %v4566_v44 = vadd.f32 1e-05, %v4563_v40 }
 0x856   :  { %v4567_v47 = vadd.f32 1e-05, %v4564_v52 }
 0x857   :  { %5496 = vrsqrt.f32 %v4566_v44 }
 0x858   :  { %5498 = vrsqrt.f32 %v4567_v47 }
 0x861   :  { %v5497_v23 = vpop.eup %5496 }
 0x862   :  { %v5499_v14 = vpop.eup %5498  ;;  %v4572_v29 = vmul.f32 %v5497_v23, %v7233_v17 }
 0x863   :  { %v4573_v19 = vmul.f32 %v5499_v14, %v7238_v18 }
 0x864   :  { %v4575_v12 = vmul.f32 %v4572_v29, %v4532_v62  ;;  %v4593_v51 = vpack.c.bf16 %v4572_v29, %v4572_v29 }
 0x865   :  { %v4576_v11 = vmul.f32 %v4573_v19, %v4533_v42  ;;  %v4594_v55 = vpack.c.bf16 %v4573_v19, %v4573_v19 }
 0x866   :  { %v4581_v60 = vrot.slane %v4575_v12, 7  ;;  %v4597_v32 = vshrl.u32 %v4593_v51, 16 }
 0x867   :  { %v4582_v38 = vrot.slane %v4576_v11, 7  ;;  %v4605_v39 = vshrl.u32 %v4594_v55, 16 }
 0x868   :  { %v4587_v31 = vsub.f32 %v7259_v25, %v4581_v60  ;;  %v4598_v45 = vpack.i.b16 %v4597_v32, %v4597_v32 }
 0x869   :  { %v4588_v56 = vsub.f32 %v7264_v26, %v4582_v38  ;;  %v4606_v53 = vpack.i.b16 %v4605_v39, %v4605_v39 }
 0x86a   :  { %v4603_v57 = vrot.slane %v4598_v45, %v7327_v15  ;;  %v4623_v63 = vpack.c.bf16 %v4587_v31, %v4587_v31 }
 0x86b   :  { %v4611_v17 = vrot.slane %v4606_v53, %v7327_v15  ;;  %v4624_v18 = vpack.c.bf16 %v4588_v56, %v4588_v56 }
 0x86c   :  { %v4627_v20 = vpack.i.b16 %v4623_v63, %v4623_v63  ;;  %v7556_v34 = vmul.bf16 %v4603_v57, %v4590_v59 }
 0x86d   :  { %v4634_v61 = vpack.i.b16 %v4624_v18, %v4624_v18  ;;  %v4621_v36 = vmul.bf16 %v4611_v17, %v4591_v16 }
 0x86e   :  { %v7559_v21 = vrot.slane %v4627_v20, %v7281_v54 }
 0x86f   :  { %v4639_v62 = vrot.slane %v4634_v61, %v7281_v54 }
 0x870   :  { %v4647_v24 = vadd.bf16 %v7559_v21, %v7556_v34 }
 0x871   :  { %v4648_v42 = vadd.bf16 %v4639_v62, %v4621_v36 }
 0x872   :  { %5544 = dma.done.wait [#allocation10 + $0x5], 5120 }
 0x873   :  { %5545 = vsyncadd [#allocation10 + $0x5], 4294962176  ;;  %4736 = vmatprep.mubr.bf16.mxu0 %v4648_v42  ;;  %v4654_v48 = vld [vmem:[#allocation7 + $0x8] sm:$0xff]  ;;  %v4653_v27 = vld [vmem:[#allocation7] sm:$0xff]  ;;  %v4696_v34 = vrot.slane %v7259_v25, %v7300_v33  ;;  %v4700_v21 = vrot.slane %v7264_v26, %v7300_v33  ;;  %4914 = vmatprep.subr.bf16.mxu1 %v7679_v46 }
 0x874   :  { %v4656_v37 = vld [vmem:[#allocation7 + $0x18] sm:$0xff]  ;;  %4704 = vmatprep.subr.bf16.mxu0 %v4654_v48  ;;  %v4655_v41 = vld [vmem:[#allocation7 + $0x10] sm:$0xff]  ;;  %v4658_v35 = vld [vmem:[#allocation7 + $0x28] sm:$0xff] }
 0x875   :  { %4705 = vmatpush1.bf16.msra.mxu0 %v4653_v27  ;;  %v4657_v43 = vld [vmem:[#allocation7 + $0x20] sm:$0xff]  ;;  %v4660_v13 = vld [vmem:[#allocation7 + $0x38] sm:$0xff]  ;;  %v4659_v54 = vld [vmem:[#allocation7 + $0x30] sm:$0xff] }
 0x876   :  { %4706 = vmatprep.subr.bf16.mxu0 %v4656_v37  ;;  %v4662_v40 = vld [vmem:[#allocation7 + $0x48] sm:$0xff]  ;;  %v4661_v52 = vld [vmem:[#allocation7 + $0x40] sm:$0xff]  ;;  %v4664_v44 = vld [vmem:[#allocation7 + $0x58] sm:$0xff] }
 0x877   :  { %v4663_v47 = vld [vmem:[#allocation7 + $0x50] sm:$0xff]  ;;  %v4666_v23 = vld [vmem:[#allocation7 + $0x68] sm:$0xff]  ;;  %v4665_v14 = vld [vmem:[#allocation7 + $0x60] sm:$0xff] }
 0x878   :  { %v4668_v29 = vld [vmem:[#allocation7 + $0x78] sm:$0xff]  ;;  %v4667_v19 = vld [vmem:[#allocation7 + $0x70] sm:$0xff]  ;;  %v4670_v12 = vld [vmem:[#allocation7 + $0x88] sm:$0xff] }
 0x879   :  { %4707 = vmatpush1.bf16.msra.mxu0 %v4655_v41  ;;  %v4669_v51 = vld [vmem:[#allocation7 + $0x80] sm:$0xff]  ;;  %v4672_v11 = vld [vmem:[#allocation7 + $0x98] sm:$0xff]  ;;  %v4671_v55 = vld [vmem:[#allocation7 + $0x90] sm:$0xff] }
 0x87a   :  { %4708 = vmatprep.subr.bf16.mxu0 %v4658_v35  ;;  %v4674_v60 = vld [vmem:[#allocation7 + $0xa8] sm:$0xff]  ;;  %v4673_v32 = vld [vmem:[#allocation7 + $0xa0] sm:$0xff]  ;;  %v4676_v38 = vld [vmem:[#allocation7 + $0xb8] sm:$0xff] }
 0x87b   :  { %v4675_v39 = vld [vmem:[#allocation7 + $0xb0] sm:$0xff]  ;;  %v4678_v31 = vld [vmem:[#allocation7 + $0xc8] sm:$0xff]  ;;  %v4677_v45 = vld [vmem:[#allocation7 + $0xc0] sm:$0xff] }
 0x87c   :  { %v4680_v56 = vld [vmem:[#allocation7 + $0xd8] sm:$0xff]  ;;  %v4679_v53 = vld [vmem:[#allocation7 + $0xd0] sm:$0xff]  ;;  %v4682_v57 = vld [vmem:[#allocation7 + $0xe8] sm:$0xff] }
 0x87d   :  { %4709 = vmatpush1.bf16.msra.mxu0 %v4657_v43  ;;  %v4681_v63 = vld [vmem:[#allocation7 + $0xe0] sm:$0xff]  ;;  %v4684_v17 = vld [vmem:[#allocation7 + $0xf8] sm:$0xff]  ;;  %v4683_v18 = vld [vmem:[#allocation7 + $0xf0] sm:$0xff] }
 0x87e   :  { %4710 = vmatprep.subr.bf16.mxu0 %v4660_v13  ;;  %v4686_v59 = vld [vmem:[#allocation7 + $0x108] sm:$0xff]  ;;  %v4685_v20 = vld [vmem:[#allocation7 + $0x100] sm:$0xff]  ;;  %v4688_v16 = vld [vmem:[#allocation7 + $0x118] sm:$0xff] }
 0x87f   :  { %v4687_v61 = vld [vmem:[#allocation7 + $0x110] sm:$0xff]  ;;  %v4690_v36 = vld [vmem:[#allocation7 + $0x128] sm:$0xff]  ;;  %v4689_v62 = vld [vmem:[#allocation7 + $0x120] sm:$0xff] }
 0x880   :  { %v4692_v42 = vld [vmem:[#allocation7 + $0x138] sm:$0xff]  ;;  %v4691_v48 = vld [vmem:[#allocation7 + $0x130] sm:$0xff] }
 0x881   :  { %4711 = vmatpush1.bf16.msra.mxu0 %v4659_v54 }
 0x882   :  { %4712 = vmatprep.subr.bf16.mxu0 %v4662_v40 }
 0x885   :  { %4713 = vmatpush1.bf16.msra.mxu0 %v4661_v52 }
 0x886   :  { %4714 = vmatprep.subr.bf16.mxu0 %v4664_v44 }
 0x889   :  { %4715 = vmatpush1.bf16.msra.mxu0 %v4663_v47 }
 0x88a   :  { %4716 = vmatprep.subr.bf16.mxu0 %v4666_v23 }
 0x88d   :  { %4717 = vmatpush1.bf16.msra.mxu0 %v4665_v14 }
 0x88e   :  { %4718 = vmatprep.subr.bf16.mxu0 %v4668_v29 }
 0x891   :  { %4719 = vmatpush1.bf16.msra.mxu0 %v4667_v19 }
 0x892   :  { %4720 = vmatprep.subr.bf16.mxu0 %v4670_v12 }
 0x895   :  { %4721 = vmatpush1.bf16.msra.mxu0 %v4669_v51 }
 0x896   :  { %4722 = vmatprep.subr.bf16.mxu0 %v4672_v11 }
 0x899   :  { %4723 = vmatpush1.bf16.msra.mxu0 %v4671_v55 }
 0x89a   :  { %4724 = vmatprep.subr.bf16.mxu0 %v4674_v60 }
 0x89d   :  { %4725 = vmatpush1.bf16.msra.mxu0 %v4673_v32 }
 0x89e   :  { %4726 = vmatprep.subr.bf16.mxu0 %v4676_v38 }
 0x8a1   :  { %4727 = vmatpush1.bf16.msra.mxu0 %v4675_v39 }
 0x8a2   :  { %4728 = vmatprep.subr.bf16.mxu0 %v4678_v31 }
 0x8a5   :  { %4729 = vmatpush1.bf16.msra.mxu0 %v4677_v45 }
 0x8a6   :  { %4730 = vmatprep.subr.bf16.mxu0 %v4680_v56 }
 0x8a9   :  { %4731 = vmatpush1.bf16.msra.mxu0 %v4679_v53 }
 0x8aa   :  { %4732 = vmatprep.subr.bf16.mxu0 %v4682_v57 }
 0x8ad   :  { %4733 = vmatpush1.bf16.msra.mxu0 %v4681_v63 }
 0x8ae   :  { %4734 = vmatprep.subr.bf16.mxu0 %v4684_v17 }
 0x8b1   :  { %4735 = vmatpush1.bf16.msra.mxu0 %v4683_v18 }
 0x8b2   :  { %4745 = vmatprep.subr.bf16.mxu0 %v4686_v59 }
 0x8b4   :  { %4737 = vmatmul.mubr.bf16.vlgmr.msra.gmra.mrb[28].mxu0 %v4647_v24 }
 0x8b5   :  { %4746 = vmatpush1.bf16.msra.mxu0 %v4685_v20  ;;  %4777 = vmatprep.mubr.bf16.mxu0 %v7679_v46 }
 0x8b6   :  { %4747 = vmatprep.subr.bf16.mxu0 %v4688_v16 }
 0x8b9   :  { %4748 = vmatpush1.bf16.msra.mxu0 %v4687_v61 }
 0x8ba   :  { %4749 = vmatprep.subr.bf16.mxu0 %v4690_v36 }
 0x8bd   :  { %4750 = vmatpush1.bf16.msra.mxu0 %v4689_v62 }
 0x8be   :  { %4751 = vmatprep.subr.bf16.mxu0 %v4692_v42 }
 0x8c1   :  { %4752 = vmatpush1.bf16.msra.mxu0 %v4691_v48 }
 0x8c4   :  { %5251 = vmatmul.mubr.msk.bf16.vlgmr.msra.gmra.mrb[28].mxu0 %vm3348_vm9, %v4649_v22 }
 0x997   :  { %v4779_v24 = vpop.f32.mrb[28].mxu0 }
 0x998   :  { %v5414_v27 = vadd.f32 %v4779_v24, %v4696_v34  ;;  %v4781_v37 = vpop.f32.mrb[29].mxu0 }
 0x999   :  { %v5415_v41 = vadd.f32 %v4781_v37, %v4700_v21  ;;  %v4783_v35 = vpop.f32.mrb[30].mxu0 }
 0x99a   :  { %v4786_v43 = vmin.f32 %v5414_v27, 0.0  ;;  %v4784_v13 = vpop.f32.mrb[31].mxu0  ;;  %vm4796_vm8 = vcmp.gt.f32.partialorder %v5414_v27, 0.0 }
 0x99b   :  { %v4787_v54 = vmin.f32 %v5415_v41, 0.0  ;;  %vm4797_vm9 = vcmp.gt.f32.partialorder %v5415_v41, 0.0 }
 0x99c   :  { %v4788_v40 = vmul.f32 1.442695, %v4786_v43 }
 0x99d   :  { %v4790_v52 = vmul.f32 1.442695, %v4787_v54 }
 0x99e   :  { %5500 = vpow2.f32 %v4788_v40 }
 0x99f   :  { %5502 = vpow2.f32 %v4790_v52 }
 0x9a8   :  { %v5501_v50 = vpop.eup %5500 }
 0x9a9   :  { %v5503_v30 = vpop.eup %5502  ;;  %v5252_v22 = vadd.f32 -1.0, %v5501_v50 }
 0x9aa   :  { %v5253_v44 = vadd.f32 -1.0, %v5503_v30 }
 0x9ab   :  { %v4794_v47 = vmul.f32 1.6732632, %v5252_v22 }
 0x9ac   :  { %v4795_v23 = vmul.f32 1.6732632, %v5253_v44 }
 0x9ad   :  { %v4798_v14 = vsel %vm4796_vm8, %v5414_v27, %v4794_v47 }
 0x9ae   :  { %v7576_v29 = vmul.f32 1.050701, %v4798_v14  ;;  %v4799_v19 = vsel %vm4797_vm9, %v5415_v41, %v4795_v23 }
 0x9af   :  { %v7578_v12 = vmul.f32 1.050701, %v4799_v19 }
 0x9b0   :  { %v4802_v51 = vrot.slane %v7576_v29, 4  ;;  %v4817_v11 = vmul.f32 %v7576_v29, %v7576_v29 }
 0x9b1   :  { %v4808_v55 = vsel %vm3095_vm7, %v7578_v12, 0.0  ;;  %v4818_v60 = vmul.f32 %v7578_v12, %v7578_v12 }
 0x9b2   :  { %v4803_v32 = vadd.f32 %v4802_v51, %v7576_v29  ;;  %v4819_v38 = vrot.slane %v4817_v11, 4  ;;  %v4809_v39 = vrot.slane %v4808_v55, 4 }
 0x9b3   :  { %v4825_v31 = vsel %vm3095_vm7, %v4818_v60, 0.0 }
 0x9b4   :  { %v4804_v45 = vrot.slane %v4803_v32, 2  ;;  %v4820_v56 = vadd.f32 %v4819_v38, %v4817_v11  ;;  %v4810_v53 = vadd.f32 %v4809_v39, %v4808_v55  ;;  %v4826_v57 = vrot.slane %v4825_v31, 4 }
 0x9b6   :  { %v4805_v63 = vadd.f32 %v4804_v45, %v4803_v32  ;;  %v4821_v17 = vrot.slane %v4820_v56, 2  ;;  %v4811_v18 = vrot.slane %v4810_v53, 2  ;;  %v4827_v59 = vadd.f32 %v4826_v57, %v4825_v31 }
 0x9b8   :  { %v4806_v20 = vrot.slane %v4805_v63, 1  ;;  %v4822_v16 = vadd.f32 %v4821_v17, %v4820_v56  ;;  %v4812_v61 = vadd.f32 %v4811_v18, %v4810_v53  ;;  %v4828_v36 = vrot.slane %v4827_v59, 2 }
 0x9b9   :  { %v4854_v17 = vpack.c.bf16 %v7576_v29, %v7576_v29 }
 0x9ba   :  { %v4807_v62 = vadd.f32 %v4806_v20, %v4805_v63  ;;  %v4823_v42 = vrot.slane %v4822_v16, 1  ;;  %v4813_v48 = vrot.slane %v4812_v61, 1  ;;  %v4829_v34 = vadd.f32 %v4828_v36, %v4827_v59 }
 0x9bb   :  { %v4855_v36 = vpack.c.bf16 %v7578_v12, %v7578_v12 }
 0x9bc   :  { %v4815_v21 = vmul.f32 0.125, %v4807_v62  ;;  %v4824_v24 = vadd.f32 %v4823_v42, %v4822_v16  ;;  %v4814_v27 = vadd.f32 %v4813_v48, %v4812_v61  ;;  %v4830_v37 = vrot.slane %v4829_v34, 1 }
 0x9be   :  { %v4832_v41 = vmul.f32 0.125, %v4824_v24  ;;  %v4834_v35 = vmul.f32 %v4815_v21, %v4815_v21  ;;  %v4816_v43 = vmul.f32 0.125, %v4814_v27  ;;  %v4831_v13 = vadd.f32 %v4830_v37, %v4829_v34 }
 0x9c0   :  { %v4836_v54 = vsub.f32 %v4832_v41, %v4834_v35  ;;  %v4833_v40 = vmul.f32 0.125, %v4831_v13  ;;  %v4835_v52 = vmul.f32 %v4816_v43, %v4816_v43 }
 0x9c2   :  { %v4838_v50 = vadd.f32 1e-05, %v4836_v54  ;;  %v4837_v30 = vsub.f32 %v4833_v40, %v4835_v52 }
 0x9c4   :  { %5504 = vrsqrt.f32 %v4838_v50  ;;  %v4839_v22 = vadd.f32 1e-05, %v4837_v30 }
 0x9c6   :  { %5506 = vrsqrt.f32 %v4839_v22 }
 0x9ce   :  { %v5505_v44 = vpop.eup %5504 }
 0x9cf   :  { %v4842_v47 = vmul.f32 %v5505_v44, %v7259_v25 }
 0x9d0   :  { %v5507_v23 = vpop.eup %5506 }
 0x9d1   :  { %v4844_v14 = vmul.f32 %v4842_v47, %v4815_v21  ;;  %v4856_v19 = vpack.c.bf16 %v4842_v47, %v4842_v47  ;;  %v4843_v51 = vmul.f32 %v5507_v23, %v7264_v26 }
 0x9d3   :  { %v4848_v11 = vrot.slane %v4844_v14, 7  ;;  %v4845_v55 = vmul.f32 %v4843_v51, %v4816_v43  ;;  %v4857_v60 = vpack.c.bf16 %v4843_v51, %v4843_v51  ;;  %v4859_v38 = vpack.i.b16 %v4856_v19, %v4856_v19 }
 0x9d5   :  { %v4852_v32 = vsub.f32 %v7259_v25, %v4848_v11  ;;  %v4849_v39 = vrot.slane %v4845_v55, 7  ;;  %v4866_v56 = vpack.i.b16 %v4857_v60, %v4857_v60  ;;  %v4864_v53 = vrot.slane %v4859_v38, %v7300_v33 }
 0x9d7   :  { %v4874_v31 = vpack.c.bf16 %v4852_v32, %v4852_v32  ;;  %v4853_v45 = vsub.f32 %v7264_v26, %v4849_v39  ;;  %v4871_v59 = vrot.slane %v4866_v56, %v7300_v33  ;;  %v4872_v16 = vmul.bf16 %v4864_v53, %v4854_v17 }
 0x9d9   :  { %v4877_v57 = vshrl.u32 %v4874_v31, 16  ;;  %v4875_v63 = vpack.c.bf16 %v4853_v45, %v4853_v45  ;;  %v4873_v42 = vmul.bf16 %v4871_v59, %v4855_v36 }
 0x9db   :  { %v4878_v18 = vpack.i.b16 %v4877_v57, %v4877_v57  ;;  %v4885_v20 = vshrl.u32 %v4875_v63, 16 }
 0x9dd   :  { %v4883_v61 = vrot.slane %v4878_v18, %v7300_v33  ;;  %v4886_v62 = vpack.i.b16 %v4885_v20, %v4885_v20 }
 0x9df   :  { %v4892_v26 = vadd.bf16 %v4883_v61, %v4872_v16  ;;  %v4891_v48 = vrot.slane %v4886_v62, %v7300_v33 }
 0x9e1   :  { %v4893_v34 = vadd.bf16 %v4891_v48, %v4873_v42 }
 0x9e3   :  { %5254 = vmatprep.mubr.msk.bf16.mxu1 %vm3095_vm7, %v4893_v34 }
 0x9e4   :  { %5546 = dma.done.wait [#allocation10 + $0x6], 1280 }
 0x9e5   :  { %5547 = vsyncadd [#allocation10 + $0x6], 4294966016  ;;  %4915 = vmatpush1.bf16.msra.mxu1 %v7150_v0  ;;  %v4909_v0 = vsub.s32 4, %v7278_v49  ;;  %5394 = vmatprep.subr.bf16.mxu0 %v7678_v58 }
 0x9e6   :  { %4916 = vmatprep.subr.bf16.mxu1 %v7679_v46  ;;  %5404 = vmatprep.mubr.msk.bf16.mxu0 %vm5553_vm1, %v7678_v58 }
 0x9e9   :  { %4917 = vmatpush1.bf16.msra.mxu1 %v7155_v1  ;;  %v4910_v1 = vrot.slane %v7259_v25, %v4909_v0 }
 0x9ea   :  { %4918 = vmatprep.subr.bf16.mxu1 %v7679_v46 }
 0x9ed   :  { %4919 = vmatpush1.bf16.msra.mxu1 %v7160_v2 }
 0x9ee   :  { %4920 = vmatprep.subr.bf16.mxu1 %v7679_v46 }
 0x9f1   :  { %4921 = vmatpush1.bf16.msra.mxu1 %v7165_v3 }
 0x9f2   :  { %4922 = vmatprep.subr.bf16.mxu1 %v7679_v46 }
 0x9f5   :  { %4923 = vmatpush1.bf16.msra.mxu1 %v7170_v4 }
 0x9f6   :  { %4924 = vmatprep.subr.bf16.mxu1 %v7679_v46 }
 0x9f9   :  { %4925 = vmatpush1.bf16.msra.mxu1 %v7175_v5 }
 0x9fa   :  { %4926 = vmatprep.subr.bf16.mxu1 %v7679_v46 }
 0x9fd   :  { %4927 = vmatpush1.bf16.msra.mxu1 %v7180_v6 }
 0x9fe   :  { %4928 = vmatprep.subr.bf16.mxu1 %v7679_v46 }
 0xa01   :  { %4929 = vmatpush1.bf16.msra.mxu1 %v7185_v7 }
 0xa02   :  { %4930 = vmatprep.subr.bf16.mxu1 %v7679_v46 }
 0xa05   :  { %4931 = vmatpush1.bf16.msra.mxu1 %v7190_v8 }
 0xa06   :  { %4932 = vmatprep.subr.bf16.mxu1 %v7679_v46 }
 0xa09   :  { %4933 = vmatpush1.bf16.msra.mxu1 %v7195_v9 }
 0xa0c   :  { %4947 = vmatmul.mubr.bf16.vlgmr.msra.gmra.mrb[20].mxu1 %v4892_v26 }
 0xadf   :  { %v4948_v2 = vpop.f32.mrb[20].mxu1 }
 0xae0   :  { %v4949_v3 = vadd.f32 %v4948_v2, %v4910_v1  ;;  %v4950_v4 = vpop.f32.mrb[21].mxu1 }
 0xae1   :  { %v4951_v5 = vpop.f32.mrb[22].mxu1 }
 0xae2   :  { %v4954_v6 = vmin.f32 %v4949_v3, 0.0  ;;  %v4952_v33 = vpop.f32.mrb[23].mxu1  ;;  %vm4959_vm7 = vcmp.gt.f32.partialorder %v4949_v3, 0.0 }
 0xae4   :  { %v4955_v7 = vmul.f32 1.442695, %v4954_v6 }
 0xae6   :  { %5508 = vpow2.f32 %v4955_v7 }
 0xaf0   :  { %v5509_v29 = vpop.eup %5508 }
 0xaf1   :  { %v5255_v12 = vadd.f32 -1.0, %v5509_v29 }
 0xaf3   :  { %v4958_v8 = vmul.f32 1.6732632, %v5255_v12 }
 0xaf5   :  { %v4960_v46 = vsel %vm4959_vm7, %v4949_v3, %v4958_v8 }
 0xaf6   :  { %v4961_v21 = vmul.f32 1.050701, %v4960_v46 }
 0xaf8   :  { %v4962_v9 = vsel %vm2959_vm4, %v4961_v21, 0.0  ;;  %v4970_v24 = vmul.f32 %v4961_v21, %v4961_v21  ;;  %v4989_v57 = vpack.c.bf16 %v4961_v21, %v4961_v21 }
 0xaf9   :  { %v4963_v27 = vrot.slane %v4962_v9, 4 }
 0xafa   :  { %v4971_v37 = vsel %vm2959_vm4, %v4970_v24, 0.0 }
 0xafb   :  { %v4964_v41 = vadd.f32 %v4963_v27, %v4962_v9  ;;  %v4972_v35 = vrot.slane %v4971_v37, 4 }
 0xafd   :  { %v4965_v43 = vrot.slane %v4964_v41, 2  ;;  %v4973_v13 = vadd.f32 %v4972_v35, %v4971_v37 }
 0xaff   :  { %v4966_v54 = vadd.f32 %v4965_v43, %v4964_v41  ;;  %v4974_v40 = vrot.slane %v4973_v13, 2 }
 0xb01   :  { %v4967_v52 = vrot.slane %v4966_v54, 1  ;;  %v4975_v50 = vadd.f32 %v4974_v40, %v4973_v13 }
 0xb03   :  { %v4968_v30 = vadd.f32 %v4967_v52, %v4966_v54  ;;  %v4976_v22 = vrot.slane %v4975_v50, 1 }
 0xb05   :  { %v4969_v44 = vmul.f32 0.125, %v4968_v30  ;;  %v4977_v47 = vadd.f32 %v4976_v22, %v4975_v50 }
 0xb07   :  { %v4978_v23 = vmul.f32 0.125, %v4977_v47  ;;  %v4979_v14 = vmul.f32 %v4969_v44, %v4969_v44 }
 0xb09   :  { %v4980_v19 = vsub.f32 %v4978_v23, %v4979_v14 }
 0xb0b   :  { %v4981_v51 = vadd.f32 1e-05, %v4980_v19 }
 0xb0d   :  { %5510 = vrsqrt.f32 %v4981_v51 }
 0xb17   :  { %v5511_v11 = vpop.eup %5510 }
 0xb18   :  { %v4983_v55 = vmul.f32 %v5511_v11, %v7259_v25 }
 0xb1a   :  { %v4984_v60 = vmul.f32 %v4983_v55, %v4969_v44  ;;  %v4990_v32 = vpack.c.bf16 %v4983_v55, %v4983_v55 }
 0xb1c   :  { %v4986_v38 = vrot.slane %v4984_v60, 7  ;;  %v4992_v39 = vshrl.u32 %v4990_v32, 16 }
 0xb1e   :  { %v4988_v31 = vsub.f32 %v7259_v25, %v4986_v38  ;;  %v4993_v45 = vpack.i.b16 %v4992_v39, %v4992_v39 }
 0xb20   :  { %v4998_v56 = vrot.slane %v4993_v45, %v7292_v28  ;;  %v5000_v53 = vpack.c.bf16 %v4988_v31, %v4988_v31 }
 0xb22   :  { %v5002_v63 = vpack.i.b16 %v5000_v53, %v5000_v53  ;;  %v4999_v17 = vmul.bf16 %v4998_v56, %v4989_v57 }
 0xb24   :  { %v5007_v18 = vrot.slane %v5002_v63, %v7327_v15 }
 0xb26   :  { %v5008_v59 = vadd.bf16 %v5007_v18, %v4999_v17 }
 0xb27   :  { %5548 = dma.done.wait [#allocation10 + $0x7], 640 }
 0xb28   :  { %5549 = vsyncadd [#allocation10 + $0x7], 4294966656  ;;  %5395 = vmatpush3.bf16.msra.mxu0 %v7200_v10  ;;  %v7680_v20 = vld [vmem:[#allocation30_spill] sm:$0xff]  ;;  %v7681_v28 = vld [vmem:[#allocation31_spill] sm:$0xff]  ;;  %v5019_v10 = vsub.s32 7, %v7278_v49  ;;  %s5555_s1 = smov [#allocation11]  }
 0xb29   :  { %5396 = vmatprep.subr.bf16.mxu0 %v7678_v58  ;;  %v7682_v15 = vld [vmem:[#allocation32_spill] sm:$0xff]  ;;  %v7683_v16 = vld [vmem:[#allocation33_spill] sm:$0xff]  ;;  %s5071_s2 = sshll.u32 %s5555_s1, 4  ;;  %s5072_s2 = int_to_ptr.vmem [resolvable:$true] %s5071_s2 }
 0xb2a   :  { %v5020_v61 = vrot.slane %v7259_v25, %v5019_v10  ;;  %s5512_s25 = scalar_lea.vmem %s5072_s2, 128  ;;  %p5517_p1 = scmp.lt.s32.totalorder %s5072_s2, %s5072_s2 }
 0xb2b   :  { %p5513_p0 = scmp.ne.s32.totalorder %s5072_s2, %s5512_s25  ;;  %p5518_p2 = scmp.lt.s32.totalorder %s5512_s25, %s5512_s25 }
 0xb2c   :  { %5397 = vmatpush3.bf16.msra.mxu0 %v7680_v20 }
 0xb2d   :  { %5398 = vmatprep.subr.bf16.mxu0 %v7678_v58  ;;  %p5519_p3 = por %p5518_p2, %p5517_p1 }
 0xb2f   :  { %p5520_p4 = pnand %p5519_p3, %p5513_p0 }
 0xb30   :  { %5399 = vmatpush3.bf16.msra.mxu0 %v7681_v28 }
 0xb31   :  { %5400 = vmatprep.subr.bf16.mxu0 %v7678_v58 }
 0xb34   :  { %5401 = vmatpush3.bf16.msra.mxu0 %v7682_v15 }
 0xb35   :  { %5402 = vmatprep.subr.bf16.mxu0 %v7678_v58 }
 0xb38   :  { %5403 = vmatpush3.bf16.msra.mxu0 %v7683_v16 }
 0xb3b   :  { %5405 = vmatmul.mubr.msk.bf16.vlgmr.msra.gmra.mrb[32].mxu0 %vm2959_vm4, %v5008_v59 }
 0xc0e   :  { %v5058_v36 = vpop.f32.mrb[32].mxu0 }
 0xc0f   :  { %v5059_v62 = vadd.f32 %v5058_v36, %v5020_v61  ;;  %v5406_v26 = vpop.f32.mrb[33].mxu0 }
 0xc10   :  { %v5061_v42 = vpop.f32.mrb[34].mxu0 }
 0xc11   :  { %5064 = vst.msk [vmem:[#allocation11] sm:$0xff] %vm2833_vm0, %v5059_v62  ;;  %v5407_v48 = vpop.f32.mrb[35].mxu0 }
 0xc12   :  { %5523 = shalt.err (!%p5520_p4)
}
 0xc13   :  { %s5524_s27 = scalar_lea.hbm %s7668_s10, 128 }
 0xc14   :  { %p5525_p5 = scmp.ne.s32.totalorder %s7668_s10, %s5524_s27  ;;  %p5528_p6 = scmp.lt.u32.totalorder %s5524_s27, %s7668_s10 }
 0xc16   :  { %p5530_p7 = pnand %p5528_p6, %p5525_p5 }
 0xc18   :  { %5533 = shalt.err (!%p5530_p7)
}
 0xc19   :  { %5074 = dma.vmem_to_hbm [thread:$0]  %s5072_s2, 128, %s7668_s10, [#allocation12]  }
 0xc1a   :  { %5550 = dma.done.wait [#allocation12], 128  }
 0xc1b   :  { %5551 = vsyncadd [#allocation12], 4294967168 }
 0xc1c   :  { %5078 = vsyncpa [#allocation12], 1 }
 0xc1d   :  { %5079 = vsyncmov [#allocation10] }
 0xc20   :  { %s5080_s7 = vpop.sfrf %5079 }
 0xc21   :  { %p5257_p8 = scmp.ne.s32.totalorder %s5080_s7, 0 }
 0xc23   :  { %5084 = shalt.err (%p5257_p8)  }
 0xc24   :  { %5086 = vsyncmov [#allocation10 + $0x1] }
 0xc27   :  { %s5087_s13 = vpop.sfrf %5086 }
 0xc28   :  { %p5258_p9 = scmp.ne.s32.totalorder %s5087_s13, 0 }
 0xc2a   :  { %5091 = shalt.err (%p5258_p9)  }
 0xc2b   :  { %5093 = vsyncmov [#allocation10 + $0x2] }
 0xc2e   :  { %s5094_s14 = vpop.sfrf %5093 }
 0xc2f   :  { %p5259_p10 = scmp.ne.s32.totalorder %s5094_s14, 0 }
 0xc31   :  { %5098 = shalt.err (%p5259_p10)  }
 0xc32   :  { %5100 = vsyncmov [#allocation10 + $0x3] }
 0xc35   :  { %s5101_s3 = vpop.sfrf %5100 }
 0xc36   :  { %p5260_p11 = scmp.ne.s32.totalorder %s5101_s3, 0 }
 0xc38   :  { %5105 = shalt.err (%p5260_p11)  }
 0xc39   :  { %5107 = vsyncmov [#allocation10 + $0x4] }
 0xc3c   :  { %s5108_s10 = vpop.sfrf %5107 }
 0xc3d   :  { %p5261_p12 = scmp.ne.s32.totalorder %s5108_s10, 0 }
 0xc3f   :  { %5112 = shalt.err (%p5261_p12)  }
 0xc40   :  { %5114 = vsyncmov [#allocation10 + $0x5] }
 0xc43   :  { %s5115_s0 = vpop.sfrf %5114 }
 0xc44   :  { %p5262_p13 = scmp.ne.s32.totalorder %s5115_s0, 0 }
 0xc46   :  { %5119 = shalt.err (%p5262_p13)  }
 0xc47   :  { %5121 = vsyncmov [#allocation10 + $0x6] }
 0xc4a   :  { %s5122_s9 = vpop.sfrf %5121 }
 0xc4b   :  { %p5263_p0 = scmp.ne.s32.totalorder %s5122_s9, 0 }
 0xc4d   :  { %5126 = shalt.err (%p5263_p0)  }
 0xc4e   :  { %5128 = vsyncmov [#allocation10 + $0x7] }
 0xc51   :  { %s5129_s15 = vpop.sfrf %5128 }
 0xc52   :  { %p5264_p1 = scmp.ne.s32.totalorder %s5129_s15, 0 }
 0xc54   :  { %5133 = shalt.err (%p5264_p1)  }

</bundles_post_ra>
